<compile_context>
chip_gen: v6e
topology: v6e:2x2x1
jax: 0.10.0
libtpu: 0.0.40
codegen_flags: <defaults>
</compile_context>

<pallas_src>
import functools

import jax
import jax.numpy as jnp
from jax.experimental import pallas as pl
from jax.experimental.pallas import tpu as pltpu


def _round_up(x, m):
    return (x + m - 1) // m * m


# ----------------------------------------------------------------------------
# Pallas kernels
# ----------------------------------------------------------------------------
def _mm_bias_act_kernel(a_ref, b_ref, bias_ref, o_ref, *, act):
    acc = jnp.dot(a_ref[...], b_ref[...], preferred_element_type=jnp.float32)
    acc = acc + bias_ref[...]
    if act == "relu":
        acc = jnp.maximum(acc, 0.0)
    elif act == "sigmoid":
        acc = jax.nn.sigmoid(acc)
    o_ref[...] = acc.astype(o_ref.dtype)


def matmul_bias_act(a, b, bias, act="none", out_dtype=jnp.bfloat16):
    """Fused (M,K)@(K,N) + bias (+activation), tiled over M on the MXU.

    bf16 inputs, f32 accumulation; N zero-padded to a multiple of 128 so the
    stores are lane-dense; boundary M block is partial (no pad/slice copies).
    """
    M, K = a.shape
    _, N = b.shape
    Np = _round_up(N, 128)

    a = a.astype(jnp.bfloat16)
    b = jnp.pad(b.astype(jnp.bfloat16), ((0, 0), (0, Np - N)))
    bias2 = jnp.pad(bias.astype(jnp.float32), (0, Np - N)).reshape(1, Np)

    # Large tiles (memory-bound regime), but keep >= 2 grid steps when M allows
    # so both v7x TensorCores engage.
    if M >= 2048:
        TM = 1024
    else:
        TM = max(8, _round_up(-(-M // 2), 8))
    grid = (pl.cdiv(M, TM),)

    cost = pl.CostEstimate(
        flops=int(2 * M * K * Np),
        transcendentals=int(M * Np if act == "sigmoid" else 0),
        bytes_accessed=int(M * K * 2 + K * Np * 2 + Np * 4
                           + M * Np * jnp.dtype(out_dtype).itemsize),
    )

    kernel = functools.partial(_mm_bias_act_kernel, act=act)
    out = pl.pallas_call(
        kernel,
        out_shape=jax.ShapeDtypeStruct((M, Np), out_dtype),
        grid_spec=pltpu.PrefetchScalarGridSpec(
            num_scalar_prefetch=0,
            grid=grid,
            in_specs=[
                pl.BlockSpec((TM, K), lambda i: (i, 0)),
                pl.BlockSpec((K, Np), lambda i: (0, 0)),
                pl.BlockSpec((1, Np), lambda i: (0, 0)),
            ],
            out_specs=pl.BlockSpec((TM, Np), lambda i: (i, 0)),
        ),
        compiler_params=pltpu.CompilerParams(
            dimension_semantics=("parallel",),
            vmem_limit_bytes=32 * 1024 * 1024,
        ),
        cost_estimate=cost,
    )(a, b, bias2)
    return out[:, :N] if Np != N else out


def _upadd2x_kernel(fine_ref, coarse_ref, o_ref):
    # fine_ref / o_ref: (T, 2, Wc, 2*C)   fine level viewed with H and W split by 2,
    #                                     the W factor folded into the lane dim.
    # coarse_ref      : (T, Wc, C)
    c = coarse_ref[...]
    cc = jnp.concatenate([c, c], axis=-1)            # duplicate along W (lane dim)
    o_ref[...] = fine_ref[...] + cc[:, None, :, :]   # duplicate along H (major dim)


def upsample2x_add(fine, coarse):
    """fine + nearest_upsample_2x(coarse), fused in one tiled Pallas kernel.

    Avoids materializing the 4x-inflated upsampled tensor in HBM: the coarse
    level is read once at its native resolution and replicated in VMEM.
    """
    N, H, W, C = fine.shape
    Hc, Wc = H // 2, W // 2
    assert coarse.shape == (N, Hc, Wc, C)
    R = N * Hc
    fine4 = fine.reshape(R, 2, Wc, 2 * C)     # pure (contiguous) reshape
    coarse3 = coarse.reshape(R, Wc, C)

    if R >= 512:
        T = 256
    else:
        T = max(1, -(-R // 2))                # two grid steps when possible
    grid = (pl.cdiv(R, T),)

    isz = jnp.dtype(fine.dtype).itemsize
    cost = pl.CostEstimate(
        flops=int(N * H * W * C),
        transcendentals=0,
        bytes_accessed=int((2 * N * H * W * C + N * Hc * Wc * C) * isz),
    )

    out = pl.pallas_call(
        _upadd2x_kernel,
        out_shape=jax.ShapeDtypeStruct((R, 2, Wc, 2 * C), fine.dtype),
        grid_spec=pltpu.PrefetchScalarGridSpec(
            num_scalar_prefetch=0,
            grid=grid,
            in_specs=[
                pl.BlockSpec((T, 2, Wc, 2 * C), lambda i: (i, 0, 0, 0)),
                pl.BlockSpec((T, Wc, C), lambda i: (i, 0, 0)),
            ],
            out_specs=pl.BlockSpec((T, 2, Wc, 2 * C), lambda i: (i, 0, 0, 0)),
        ),
        compiler_params=pltpu.CompilerParams(
            dimension_semantics=("parallel",),
            vmem_limit_bytes=32 * 1024 * 1024,
        ),
        cost_estimate=cost,
    )(fine4, coarse3)
    return out.reshape(N, H, W, C)


# ----------------------------------------------------------------------------
# Conv / deconv wrappers (im2col in JAX, matmul hot-path in Pallas)
# ----------------------------------------------------------------------------
def conv2d(x, w, b, *, stride=1, padding=1, act="none", out_dtype=jnp.bfloat16):
    """x: (N,H,W,Cin) bf16;  w: (kh,kw,Cin,Cout) bf16;  b: (Cout,) f32."""
    N, H, W, Cin = x.shape
    kh, kw, _, Cout = w.shape
    Ho = (H + 2 * padding - kh) // stride + 1
    Wo = (W + 2 * padding - kw) // stride + 1
    if padding:
        x = jnp.pad(x, ((0, 0), (padding, padding), (padding, padding), (0, 0)))
    if kh == 1 and kw == 1 and stride == 1:
        patches = x.reshape(N * Ho * Wo, Cin)         # 1x1 conv: no im2col at all
    else:
        cols = []
        for i in range(kh):
            for j in range(kw):
                cols.append(
                    x[:, i:i + (Ho - 1) * stride + 1:stride,
                         j:j + (Wo - 1) * stride + 1:stride, :])
        patches = jnp.concatenate(cols, axis=-1).reshape(N * Ho * Wo, kh * kw * Cin)
        # TODO(synk): fold im2col into the Pallas kernel (halo'd input blocks / tap
        # accumulation) to avoid materializing the kh*kw-expanded patches in HBM.
    w_mat = w.reshape(kh * kw * Cin, Cout)
    y = matmul_bias_act(patches, w_mat, b, act=act, out_dtype=out_dtype)
    return y.reshape(N, Ho, Wo, Cout)


def deconv2x2_s2(x, w, b, *, act="none", out_dtype=jnp.bfloat16):
    """ConvTranspose2d(k=2, s=2).  x: (N,H,W,Cin);  w: (Cin,Cout,2,2) (PyTorch layout)."""
    N, H, W, Cin = x.shape
    _, Cout, kh, kw = w.shape
    w_mat = jnp.transpose(w, (0, 2, 3, 1)).reshape(Cin, kh * kw * Cout)
    b_tiled = jnp.tile(b, kh * kw)
    y = matmul_bias_act(x.reshape(N * H * W, Cin), w_mat, b_tiled,
                        act=act, out_dtype=out_dtype)
    y = y.reshape(N, H, W, kh, kw, Cout)
    y = jnp.transpose(y, (0, 1, 3, 2, 4, 5)).reshape(N, H * kh, W * kw, Cout)
    return y


def upsample_nearest(x, factor):
    # JAX-level nearest upsample, only for bringing p3/p4/p5 (tiny, 8ch) to the
    # concat resolution.  TODO(synk): fuse the x2/x4/x8 upsample + channel concat
    # into a single lane-dense Pallas kernel.
    x = jnp.repeat(x, factor, axis=1)
    return jnp.repeat(x, factor, axis=2)


# ----------------------------------------------------------------------------
# Parameter construction (deterministic, BN folded as eval-mode affine)
# ----------------------------------------------------------------------------
def _conv_w(key, cin, cout, k):
    fan_in = cin * k * k
    return jax.random.normal(key, (k, k, cin, cout), jnp.float32) * (2.0 / fan_in) ** 0.5


def _deconv_w(key, cin, cout, k):
    fan_in = cin * k * k
    return jax.random.normal(key, (cin, cout, k, k), jnp.float32) * (2.0 / fan_in) ** 0.5


def _bn(key, c):
    k1, k2, k3, k4 = jax.random.split(key, 4)
    gamma = 1.0 + 0.1 * jax.random.normal(k1, (c,), jnp.float32)
    beta = 0.1 * jax.random.normal(k2, (c,), jnp.float32)
    mean = 0.1 * jax.random.normal(k3, (c,), jnp.float32)
    var = 1.0 + 0.1 * jax.random.uniform(k4, (c,), jnp.float32)
    return gamma, beta, mean, var


def _fold_bn(w, b, bn, cout_axis):
    gamma, beta, mean, var = bn
    scale = gamma / jnp.sqrt(var + 1e-5)
    shape = [1] * w.ndim
    shape[cout_axis] = -1
    return w * scale.reshape(shape), (b - mean) * scale + beta


def init_params(key):
    keys = iter(jax.random.split(key, 64))
    p = {}

    def conv_bn(cin, cout, k):
        w = _conv_w(next(keys), cin, cout, k)
        b = jnp.zeros((cout,), jnp.float32)
        w, b = _fold_bn(w, b, _bn(next(keys), cout), cout_axis=3)
        return w.astype(jnp.bfloat16), b

    def deconv_bn(cin, cout, k, with_bn=True):
        w = _deconv_w(next(keys), cin, cout, k)
        b = jnp.zeros((cout,), jnp.float32)
        if with_bn:
            w, b = _fold_bn(w, b, _bn(next(keys), cout), cout_axis=1)
        return w.astype(jnp.bfloat16), b

    # backbone: stem + 4 stages, channels [8, 8, 16, 32, 64]
    p["stem"] = conv_bn(3, 8, 3)
    p["layer1"] = conv_bn(8, 8, 3)     # c2, stride 4
    p["layer2"] = conv_bn(8, 16, 3)    # c3, stride 8
    p["layer3"] = conv_bn(16, 32, 3)   # c4, stride 16
    p["layer4"] = conv_bn(32, 64, 3)   # c5, stride 32

    # neck: FPN, inner_channels = 32, out_channels = 32
    inner = 32
    for name, cin in (("in2", 8), ("in3", 16), ("in4", 32), ("in5", 64)):
        p[name] = conv_bn(cin, inner, 1)
    for name in ("p2", "p3", "p4", "p5"):
        p[name] = conv_bn(inner, inner // 4, 3)

    # head: DBHead binarize branch
    p["head_conv"] = conv_bn(inner, inner // 4, 3)
    p["head_up1"] = deconv_bn(inner // 4, inner // 4, 2, with_bn=True)
    p["head_up2"] = deconv_bn(inner // 4, 1, 2, with_bn=False)
    return p


# ----------------------------------------------------------------------------
# Forward pass
# ----------------------------------------------------------------------------
def model_forward(params, x_nchw):
    x = jnp.transpose(x_nchw, (0, 2, 3, 1)).astype(jnp.bfloat16)  # NCHW -> NHWC bf16

    # backbone
    s = conv2d(x, *params["stem"], stride=2, padding=1, act="relu")
    c2 = conv2d(s, *params["layer1"], stride=2, padding=1, act="relu")
    c3 = conv2d(c2, *params["layer2"], stride=2, padding=1, act="relu")
    c4 = conv2d(c3, *params["layer3"], stride=2, padding=1, act="relu")
    c5 = conv2d(c4, *params["layer4"], stride=2, padding=1, act="relu")

    # neck (FPN)
    in2 = conv2d(c2, *params["in2"], stride=1, padding=0, act="relu")
    in3 = conv2d(c3, *params["in3"], stride=1, padding=0, act="relu")
    in4 = conv2d(c4, *params["in4"], stride=1, padding=0, act="relu")
    in5 = conv2d(c5, *params["in5"], stride=1, padding=0, act="relu")

    out4 = upsample2x_add(in4, in5)    # fused upsample(2x) + add, no HBM inflation
    out3 = upsample2x_add(in3, out4)
    out2 = upsample2x_add(in2, out3)

    p5 = conv2d(in5, *params["p5"], stride=1, padding=1, act="relu")
    p4 = conv2d(out4, *params["p4"], stride=1, padding=1, act="relu")
    p3 = conv2d(out3, *params["p3"], stride=1, padding=1, act="relu")
    p2 = conv2d(out2, *params["p2"], stride=1, padding=1, act="relu")

    neck_out = jnp.concatenate(
        [p2, upsample_nearest(p3, 2), upsample_nearest(p4, 4), upsample_nearest(p5, 8)],
        axis=-1)  # (N, H/4, W/4, 32)

    # head (DBHead, eval branch -> shrink/probability map)
    h = conv2d(neck_out, *params["head_conv"], stride=1, padding=1, act="relu")
    h = deconv2x2_s2(h, *params["head_up1"], act="relu")
    y = deconv2x2_s2(h, *params["head_up2"], act="sigmoid",
                     out_dtype=jnp.float32)  # (N, H, W, 1)

    return jnp.transpose(y, (0, 3, 1, 2))  # -> NCHW (N, 1, H, W)


if __name__ == "__main__":
    key = jax.random.PRNGKey(0)
    k_param, k_input = jax.random.split(key)
    params = init_params(k_param)

    # small input: batch=2, channels=3, spatial=32 (must be divisible by 32)
    x = jax.random.normal(k_input, (2, 3, 32, 32), jnp.float32)

    fwd = jax.jit(model_forward)
    y = jax.block_until_ready(fwd(params, x))

    assert y.shape == (2, 1, 32, 32), y.shape
    assert bool(jnp.all(jnp.isfinite(y)))
    assert bool(jnp.all((y >= 0.0) & (y <= 1.0)))
    print("KERNEL_OK")
</pallas_src>

<mosaic_0001>
module attributes {stable_mosaic.version = 11 : i64} {
  func.func @_mm_bias_act_kernel(%arg0: i32, %arg1: memref<256x27xbf16, #tpu.memory_space<vmem>>, %arg2: memref<27x128xbf16, #tpu.memory_space<vmem>>, %arg3: memref<1x128xf32, #tpu.memory_space<vmem>>, %arg4: memref<256x128xbf16, #tpu.memory_space<vmem>>) attributes {dimension_semantics = [#tpu.dimension_semantics<parallel>], iteration_bounds = array<i64: 2>, scalar_prefetch = 0 : i64, scratch_operands = 0 : i64, tpu.core_type = #tpu.core_type<tc>, window_params = [{transform_indices = @transform_0, window_bounds = array<i64: 256, 27>}, {pipeline_mode = #tpu.pipeline_mode<synchronous>, transform_indices = @transform_1, window_bounds = array<i64: 27, 128>}, {pipeline_mode = #tpu.pipeline_mode<synchronous>, transform_indices = @transform_2, window_bounds = array<i64: 1, 128>}, {transform_indices = @transform_3, window_bounds = array<i64: 256, 128>}]} {
    %c0 = arith.constant 0 : index
    %c0_0 = arith.constant 0 : index
    %0 = vector.load %arg1[%c0, %c0_0] : memref<256x27xbf16, #tpu.memory_space<vmem>>, vector<256x27xbf16>
    %c0_1 = arith.constant 0 : index
    %c0_2 = arith.constant 0 : index
    %1 = vector.load %arg2[%c0_1, %c0_2] : memref<27x128xbf16, #tpu.memory_space<vmem>>, vector<27x128xbf16>
    %cst = arith.constant dense<0.000000e+00> : vector<256x128xf32>
    %2 = tpu.matmul %0, %1, %cst {dimension_numbers = #tpu.dot_dimension_numbers<[1], [0], [0], [1], [0, 0, 1, 1], [], []>} : vector<256x27xbf16>, vector<27x128xbf16>, vector<256x128xf32> -> vector<256x128xf32>
    %c0_3 = arith.constant 0 : index
    %c0_4 = arith.constant 0 : index
    %3 = vector.load %arg3[%c0_3, %c0_4] : memref<1x128xf32, #tpu.memory_space<vmem>>, vector<1x128xf32>
    %4 = vector.broadcast %3 : vector<1x128xf32> to vector<256x128xf32>
    %5 = arith.addf %2, %4 : vector<256x128xf32>
    %cst_5 = arith.constant 0.000000e+00 : f32
    %6 = vector.broadcast %cst_5 : f32 to vector<256x128xf32>
    %7 = arith.maximumf %5, %6 : vector<256x128xf32>
    %8 = arith.truncf %7 : vector<256x128xf32> to vector<256x128xbf16>
    %c0_6 = arith.constant 0 : index
    %c0_7 = arith.constant 0 : index
    %9 = vector.load %arg4[%c0_6, %c0_7] : memref<256x128xbf16, #tpu.memory_space<vmem>>, vector<256x128xbf16>
    tpu.vector_store %arg4[%c0_6, %c0_7], %8 {strides = array<i32>} : memref<256x128xbf16, #tpu.memory_space<vmem>>, vector<256x128xbf16>,
    return
  }
  func.func @transform_0(%arg0: i32) -> (i32, i32) {
    %c0_i32 = arith.constant 0 : i32
    %c0_i32_0 = arith.constant 0 : i32
    return %arg0, %c0_i32 : i32, i32
  }
  func.func @transform_1(%arg0: i32) -> (i32, i32) {
    %c0_i32 = arith.constant 0 : i32
    %c0_i32_0 = arith.constant 0 : i32
    %c0_i32_1 = arith.constant 0 : i32
    return %c0_i32, %c0_i32_0 : i32, i32
  }
  func.func @transform_2(%arg0: i32) -> (i32, i32) {
    %c0_i32 = arith.constant 0 : i32
    %c0_i32_0 = arith.constant 0 : i32
    %c0_i32_1 = arith.constant 0 : i32
    return %c0_i32, %c0_i32_0 : i32, i32
  }
  func.func @transform_3(%arg0: i32) -> (i32, i32) {
    %c0_i32 = arith.constant 0 : i32
    %c0_i32_0 = arith.constant 0 : i32
    return %arg0, %c0_i32 : i32, i32
  }
}

module attributes {stable_mosaic.version = 11 : i64} {
  func.func @_mm_bias_act_kernel(%arg0: i32, %arg1: memref<64x72xbf16, #tpu.memory_space<vmem>>, %arg2: memref<72x128xbf16, #tpu.memory_space<vmem>>, %arg3: memref<1x128xf32, #tpu.memory_space<vmem>>, %arg4: memref<64x128xbf16, #tpu.memory_space<vmem>>) attributes {dimension_semantics = [#tpu.dimension_semantics<parallel>], iteration_bounds = array<i64: 2>, scalar_prefetch = 0 : i64, scratch_operands = 0 : i64, tpu.core_type = #tpu.core_type<tc>, window_params = [{transform_indices = @transform_0, window_bounds = array<i64: 64, 72>}, {pipeline_mode = #tpu.pipeline_mode<synchronous>, transform_indices = @transform_1, window_bounds = array<i64: 72, 128>}, {pipeline_mode = #tpu.pipeline_mode<synchronous>, transform_indices = @transform_2, window_bounds = array<i64: 1, 128>}, {transform_indices = @transform_3, window_bounds = array<i64: 64, 128>}]} {
    %c0 = arith.constant 0 : index
    %c0_0 = arith.constant 0 : index
    %0 = vector.load %arg1[%c0, %c0_0] : memref<64x72xbf16, #tpu.memory_space<vmem>>, vector<64x72xbf16>
    %c0_1 = arith.constant 0 : index
    %c0_2 = arith.constant 0 : index
    %1 = vector.load %arg2[%c0_1, %c0_2] : memref<72x128xbf16, #tpu.memory_space<vmem>>, vector<72x128xbf16>
    %cst = arith.constant dense<0.000000e+00> : vector<64x128xf32>
    %2 = tpu.matmul %0, %1, %cst {dimension_numbers = #tpu.dot_dimension_numbers<[1], [0], [0], [1], [0, 0, 1, 1], [], []>} : vector<64x72xbf16>, vector<72x128xbf16>, vector<64x128xf32> -> vector<64x128xf32>
    %c0_3 = arith.constant 0 : index
    %c0_4 = arith.constant 0 : index
    %3 = vector.load %arg3[%c0_3, %c0_4] : memref<1x128xf32, #tpu.memory_space<vmem>>, vector<1x128xf32>
    %4 = vector.broadcast %3 : vector<1x128xf32> to vector<64x128xf32>
    %5 = arith.addf %2, %4 : vector<64x128xf32>
    %cst_5 = arith.constant 0.000000e+00 : f32
    %6 = vector.broadcast %cst_5 : f32 to vector<64x128xf32>
    %7 = arith.maximumf %5, %6 : vector<64x128xf32>
    %8 = arith.truncf %7 : vector<64x128xf32> to vector<64x128xbf16>
    %c0_6 = arith.constant 0 : index
    %c0_7 = arith.constant 0 : index
    %9 = vector.load %arg4[%c0_6, %c0_7] : memref<64x128xbf16, #tpu.memory_space<vmem>>, vector<64x128xbf16>
    tpu.vector_store %arg4[%c0_6, %c0_7], %8 {strides = array<i32>} : memref<64x128xbf16, #tpu.memory_space<vmem>>, vector<64x128xbf16>,
    return
  }
  func.func @transform_0(%arg0: i32) -> (i32, i32) {
    %c0_i32 = arith.constant 0 : i32
    %c0_i32_0 = arith.constant 0 : i32
    return %arg0, %c0_i32 : i32, i32
  }
  func.func @transform_1(%arg0: i32) -> (i32, i32) {
    %c0_i32 = arith.constant 0 : i32
    %c0_i32_0 = arith.constant 0 : i32
    %c0_i32_1 = arith.constant 0 : i32
    return %c0_i32, %c0_i32_0 : i32, i32
  }
  func.func @transform_2(%arg0: i32) -> (i32, i32) {
    %c0_i32 = arith.constant 0 : i32
    %c0_i32_0 = arith.constant 0 : i32
    %c0_i32_1 = arith.constant 0 : i32
    return %c0_i32, %c0_i32_0 : i32, i32
  }
  func.func @transform_3(%arg0: i32) -> (i32, i32) {
    %c0_i32 = arith.constant 0 : i32
    %c0_i32_0 = arith.constant 0 : i32
    return %arg0, %c0_i32 : i32, i32
  }
}

module attributes {stable_mosaic.version = 11 : i64} {
  func.func @_mm_bias_act_kernel(%arg0: i32, %arg1: memref<16x72xbf16, #tpu.memory_space<vmem>>, %arg2: memref<72x128xbf16, #tpu.memory_space<vmem>>, %arg3: memref<1x128xf32, #tpu.memory_space<vmem>>, %arg4: memref<16x128xbf16, #tpu.memory_space<vmem>>) attributes {dimension_semantics = [#tpu.dimension_semantics<parallel>], iteration_bounds = array<i64: 2>, scalar_prefetch = 0 : i64, scratch_operands = 0 : i64, tpu.core_type = #tpu.core_type<tc>, window_params = [{transform_indices = @transform_0, window_bounds = array<i64: 16, 72>}, {pipeline_mode = #tpu.pipeline_mode<synchronous>, transform_indices = @transform_1, window_bounds = array<i64: 72, 128>}, {pipeline_mode = #tpu.pipeline_mode<synchronous>, transform_indices = @transform_2, window_bounds = array<i64: 1, 128>}, {transform_indices = @transform_3, window_bounds = array<i64: 16, 128>}]} {
    %c0 = arith.constant 0 : index
    %c0_0 = arith.constant 0 : index
    %0 = vector.load %arg1[%c0, %c0_0] : memref<16x72xbf16, #tpu.memory_space<vmem>>, vector<16x72xbf16>
    %c0_1 = arith.constant 0 : index
    %c0_2 = arith.constant 0 : index
    %1 = vector.load %arg2[%c0_1, %c0_2] : memref<72x128xbf16, #tpu.memory_space<vmem>>, vector<72x128xbf16>
    %cst = arith.constant dense<0.000000e+00> : vector<16x128xf32>
    %2 = tpu.matmul %0, %1, %cst {dimension_numbers = #tpu.dot_dimension_numbers<[1], [0], [0], [1], [0, 0, 1, 1], [], []>} : vector<16x72xbf16>, vector<72x128xbf16>, vector<16x128xf32> -> vector<16x128xf32>
    %c0_3 = arith.constant 0 : index
    %c0_4 = arith.constant 0 : index
    %3 = vector.load %arg3[%c0_3, %c0_4] : memref<1x128xf32, #tpu.memory_space<vmem>>, vector<1x128xf32>
    %4 = vector.broadcast %3 : vector<1x128xf32> to vector<16x128xf32>
    %5 = arith.addf %2, %4 : vector<16x128xf32>
    %cst_5 = arith.constant 0.000000e+00 : f32
    %6 = vector.broadcast %cst_5 : f32 to vector<16x128xf32>
    %7 = arith.maximumf %5, %6 : vector<16x128xf32>
    %8 = arith.truncf %7 : vector<16x128xf32> to vector<16x128xbf16>
    %c0_6 = arith.constant 0 : index
    %c0_7 = arith.constant 0 : index
    %9 = vector.load %arg4[%c0_6, %c0_7] : memref<16x128xbf16, #tpu.memory_space<vmem>>, vector<16x128xbf16>
    tpu.vector_store %arg4[%c0_6, %c0_7], %8 {strides = array<i32>} : memref<16x128xbf16, #tpu.memory_space<vmem>>, vector<16x128xbf16>,
    return
  }
  func.func @transform_0(%arg0: i32) -> (i32, i32) {
    %c0_i32 = arith.constant 0 : i32
    %c0_i32_0 = arith.constant 0 : i32
    return %arg0, %c0_i32 : i32, i32
  }
  func.func @transform_1(%arg0: i32) -> (i32, i32) {
    %c0_i32 = arith.constant 0 : i32
    %c0_i32_0 = arith.constant 0 : i32
    %c0_i32_1 = arith.constant 0 : i32
    return %c0_i32, %c0_i32_0 : i32, i32
  }
  func.func @transform_2(%arg0: i32) -> (i32, i32) {
    %c0_i32 = arith.constant 0 : i32
    %c0_i32_0 = arith.constant 0 : i32
    %c0_i32_1 = arith.constant 0 : i32
    return %c0_i32, %c0_i32_0 : i32, i32
  }
  func.func @transform_3(%arg0: i32) -> (i32, i32) {
    %c0_i32 = arith.constant 0 : i32
    %c0_i32_0 = arith.constant 0 : i32
    return %arg0, %c0_i32 : i32, i32
  }
}

module attributes {stable_mosaic.version = 11 : i64} {
  func.func @_mm_bias_act_kernel(%arg0: i32, %arg1: memref<8x144xbf16, #tpu.memory_space<vmem>>, %arg2: memref<144x128xbf16, #tpu.memory_space<vmem>>, %arg3: memref<1x128xf32, #tpu.memory_space<vmem>>, %arg4: memref<8x128xbf16, #tpu.memory_space<vmem>>) attributes {dimension_semantics = [#tpu.dimension_semantics<parallel>], iteration_bounds = array<i64: 1>, scalar_prefetch = 0 : i64, scratch_operands = 0 : i64, tpu.core_type = #tpu.core_type<tc>, window_params = [{transform_indices = @transform_0, window_bounds = array<i64: 8, 144>}, {pipeline_mode = #tpu.pipeline_mode<synchronous>, transform_indices = @transform_1, window_bounds = array<i64: 144, 128>}, {pipeline_mode = #tpu.pipeline_mode<synchronous>, transform_indices = @transform_2, window_bounds = array<i64: 1, 128>}, {transform_indices = @transform_3, window_bounds = array<i64: 8, 128>}]} {
    %c0 = arith.constant 0 : index
    %c0_0 = arith.constant 0 : index
    %0 = vector.load %arg1[%c0, %c0_0] : memref<8x144xbf16, #tpu.memory_space<vmem>>, vector<8x144xbf16>
    %c0_1 = arith.constant 0 : index
    %c0_2 = arith.constant 0 : index
    %1 = vector.load %arg2[%c0_1, %c0_2] : memref<144x128xbf16, #tpu.memory_space<vmem>>, vector<144x128xbf16>
    %cst = arith.constant dense<0.000000e+00> : vector<8x128xf32>
    %2 = tpu.matmul %0, %1, %cst {dimension_numbers = #tpu.dot_dimension_numbers<[1], [0], [0], [1], [0, 0, 1, 1], [], []>} : vector<8x144xbf16>, vector<144x128xbf16>, vector<8x128xf32> -> vector<8x128xf32>
    %c0_3 = arith.constant 0 : index
    %c0_4 = arith.constant 0 : index
    %3 = vector.load %arg3[%c0_3, %c0_4] : memref<1x128xf32, #tpu.memory_space<vmem>>, vector<1x128xf32>
    %4 = vector.broadcast %3 : vector<1x128xf32> to vector<8x128xf32>
    %5 = arith.addf %2, %4 : vector<8x128xf32>
    %cst_5 = arith.constant 0.000000e+00 : f32
    %6 = vector.broadcast %cst_5 : f32 to vector<8x128xf32>
    %7 = arith.maximumf %5, %6 : vector<8x128xf32>
    %8 = arith.truncf %7 : vector<8x128xf32> to vector<8x128xbf16>
    %c0_6 = arith.constant 0 : index
    %c0_7 = arith.constant 0 : index
    %9 = vector.load %arg4[%c0_6, %c0_7] : memref<8x128xbf16, #tpu.memory_space<vmem>>, vector<8x128xbf16>
    tpu.vector_store %arg4[%c0_6, %c0_7], %8 {strides = array<i32>} : memref<8x128xbf16, #tpu.memory_space<vmem>>, vector<8x128xbf16>,
    return
  }
  func.func @transform_0(%arg0: i32) -> (i32, i32) {
    %c0_i32 = arith.constant 0 : i32
    %c0_i32_0 = arith.constant 0 : i32
    return %arg0, %c0_i32 : i32, i32
  }
  func.func @transform_1(%arg0: i32) -> (i32, i32) {
    %c0_i32 = arith.constant 0 : i32
    %c0_i32_0 = arith.constant 0 : i32
    %c0_i32_1 = arith.constant 0 : i32
    return %c0_i32, %c0_i32_0 : i32, i32
  }
  func.func @transform_2(%arg0: i32) -> (i32, i32) {
    %c0_i32 = arith.constant 0 : i32
    %c0_i32_0 = arith.constant 0 : i32
    %c0_i32_1 = arith.constant 0 : i32
    return %c0_i32, %c0_i32_0 : i32, i32
  }
  func.func @transform_3(%arg0: i32) -> (i32, i32) {
    %c0_i32 = arith.constant 0 : i32
    %c0_i32_0 = arith.constant 0 : i32
    return %arg0, %c0_i32 : i32, i32
  }
}

module attributes {stable_mosaic.version = 11 : i64} {
  func.func @_mm_bias_act_kernel(%arg0: i32, %arg1: memref<8x288xbf16, #tpu.memory_space<vmem>>, %arg2: memref<288x128xbf16, #tpu.memory_space<vmem>>, %arg3: memref<1x128xf32, #tpu.memory_space<vmem>>, %arg4: memref<8x128xbf16, #tpu.memory_space<vmem>>) attributes {dimension_semantics = [#tpu.dimension_semantics<parallel>], iteration_bounds = array<i64: 1>, scalar_prefetch = 0 : i64, scratch_operands = 0 : i64, tpu.core_type = #tpu.core_type<tc>, window_params = [{transform_indices = @transform_0, window_bounds = array<i64: 8, 288>}, {pipeline_mode = #tpu.pipeline_mode<synchronous>, transform_indices = @transform_1, window_bounds = array<i64: 288, 128>}, {pipeline_mode = #tpu.pipeline_mode<synchronous>, transform_indices = @transform_2, window_bounds = array<i64: 1, 128>}, {transform_indices = @transform_3, window_bounds = array<i64: 8, 128>}]} {
    %c0 = arith.constant 0 : index
    %c0_0 = arith.constant 0 : index
    %0 = vector.load %arg1[%c0, %c0_0] : memref<8x288xbf16, #tpu.memory_space<vmem>>, vector<8x288xbf16>
    %c0_1 = arith.constant 0 : index
    %c0_2 = arith.constant 0 : index
    %1 = vector.load %arg2[%c0_1, %c0_2] : memref<288x128xbf16, #tpu.memory_space<vmem>>, vector<288x128xbf16>
    %cst = arith.constant dense<0.000000e+00> : vector<8x128xf32>
    %2 = tpu.matmul %0, %1, %cst {dimension_numbers = #tpu.dot_dimension_numbers<[1], [0], [0], [1], [0, 0, 1, 1], [], []>} : vector<8x288xbf16>, vector<288x128xbf16>, vector<8x128xf32> -> vector<8x128xf32>
    %c0_3 = arith.constant 0 : index
    %c0_4 = arith.constant 0 : index
    %3 = vector.load %arg3[%c0_3, %c0_4] : memref<1x128xf32, #tpu.memory_space<vmem>>, vector<1x128xf32>
    %4 = vector.broadcast %3 : vector<1x128xf32> to vector<8x128xf32>
    %5 = arith.addf %2, %4 : vector<8x128xf32>
    %cst_5 = arith.constant 0.000000e+00 : f32
    %6 = vector.broadcast %cst_5 : f32 to vector<8x128xf32>
    %7 = arith.maximumf %5, %6 : vector<8x128xf32>
    %8 = arith.truncf %7 : vector<8x128xf32> to vector<8x128xbf16>
    %c0_6 = arith.constant 0 : index
    %c0_7 = arith.constant 0 : index
    %9 = vector.load %arg4[%c0_6, %c0_7] : memref<8x128xbf16, #tpu.memory_space<vmem>>, vector<8x128xbf16>
    tpu.vector_store %arg4[%c0_6, %c0_7], %8 {strides = array<i32>} : memref<8x128xbf16, #tpu.memory_space<vmem>>, vector<8x128xbf16>,
    return
  }
  func.func @transform_0(%arg0: i32) -> (i32, i32) {
    %c0_i32 = arith.constant 0 : i32
    %c0_i32_0 = arith.constant 0 : i32
    return %arg0, %c0_i32 : i32, i32
  }
  func.func @transform_1(%arg0: i32) -> (i32, i32) {
    %c0_i32 = arith.constant 0 : i32
    %c0_i32_0 = arith.constant 0 : i32
    %c0_i32_1 = arith.constant 0 : i32
    return %c0_i32, %c0_i32_0 : i32, i32
  }
  func.func @transform_2(%arg0: i32) -> (i32, i32) {
    %c0_i32 = arith.constant 0 : i32
    %c0_i32_0 = arith.constant 0 : i32
    %c0_i32_1 = arith.constant 0 : i32
    return %c0_i32, %c0_i32_0 : i32, i32
  }
  func.func @transform_3(%arg0: i32) -> (i32, i32) {
    %c0_i32 = arith.constant 0 : i32
    %c0_i32_0 = arith.constant 0 : i32
    return %arg0, %c0_i32 : i32, i32
  }
}

module attributes {stable_mosaic.version = 11 : i64} {
  func.func @_mm_bias_act_kernel(%arg0: i32, %arg1: memref<8x64xbf16, #tpu.memory_space<vmem>>, %arg2: memref<64x128xbf16, #tpu.memory_space<vmem>>, %arg3: memref<1x128xf32, #tpu.memory_space<vmem>>, %arg4: memref<8x128xbf16, #tpu.memory_space<vmem>>) attributes {dimension_semantics = [#tpu.dimension_semantics<parallel>], iteration_bounds = array<i64: 1>, scalar_prefetch = 0 : i64, scratch_operands = 0 : i64, tpu.core_type = #tpu.core_type<tc>, window_params = [{transform_indices = @transform_0, window_bounds = array<i64: 8, 64>}, {pipeline_mode = #tpu.pipeline_mode<synchronous>, transform_indices = @transform_1, window_bounds = array<i64: 64, 128>}, {pipeline_mode = #tpu.pipeline_mode<synchronous>, transform_indices = @transform_2, window_bounds = array<i64: 1, 128>}, {transform_indices = @transform_3, window_bounds = array<i64: 8, 128>}]} {
    %c0 = arith.constant 0 : index
    %c0_0 = arith.constant 0 : index
    %0 = vector.load %arg1[%c0, %c0_0] : memref<8x64xbf16, #tpu.memory_space<vmem>>, vector<8x64xbf16>
    %c0_1 = arith.constant 0 : index
    %c0_2 = arith.constant 0 : index
    %1 = vector.load %arg2[%c0_1, %c0_2] : memref<64x128xbf16, #tpu.memory_space<vmem>>, vector<64x128xbf16>
    %cst = arith.constant dense<0.000000e+00> : vector<8x128xf32>
    %2 = tpu.matmul %0, %1, %cst {dimension_numbers = #tpu.dot_dimension_numbers<[1], [0], [0], [1], [0, 0, 1, 1], [], []>} : vector<8x64xbf16>, vector<64x128xbf16>, vector<8x128xf32> -> vector<8x128xf32>
    %c0_3 = arith.constant 0 : index
    %c0_4 = arith.constant 0 : index
    %3 = vector.load %arg3[%c0_3, %c0_4] : memref<1x128xf32, #tpu.memory_space<vmem>>, vector<1x128xf32>
    %4 = vector.broadcast %3 : vector<1x128xf32> to vector<8x128xf32>
    %5 = arith.addf %2, %4 : vector<8x128xf32>
    %cst_5 = arith.constant 0.000000e+00 : f32
    %6 = vector.broadcast %cst_5 : f32 to vector<8x128xf32>
    %7 = arith.maximumf %5, %6 : vector<8x128xf32>
    %8 = arith.truncf %7 : vector<8x128xf32> to vector<8x128xbf16>
    %c0_6 = arith.constant 0 : index
    %c0_7 = arith.constant 0 : index
    %9 = vector.load %arg4[%c0_6, %c0_7] : memref<8x128xbf16, #tpu.memory_space<vmem>>, vector<8x128xbf16>
    tpu.vector_store %arg4[%c0_6, %c0_7], %8 {strides = array<i32>} : memref<8x128xbf16, #tpu.memory_space<vmem>>, vector<8x128xbf16>,
    return
  }
  func.func @transform_0(%arg0: i32) -> (i32, i32) {
    %c0_i32 = arith.constant 0 : i32
    %c0_i32_0 = arith.constant 0 : i32
    return %arg0, %c0_i32 : i32, i32
  }
  func.func @transform_1(%arg0: i32) -> (i32, i32) {
    %c0_i32 = arith.constant 0 : i32
    %c0_i32_0 = arith.constant 0 : i32
    %c0_i32_1 = arith.constant 0 : i32
    return %c0_i32, %c0_i32_0 : i32, i32
  }
  func.func @transform_2(%arg0: i32) -> (i32, i32) {
    %c0_i32 = arith.constant 0 : i32
    %c0_i32_0 = arith.constant 0 : i32
    %c0_i32_1 = arith.constant 0 : i32
    return %c0_i32, %c0_i32_0 : i32, i32
  }
  func.func @transform_3(%arg0: i32) -> (i32, i32) {
    %c0_i32 = arith.constant 0 : i32
    %c0_i32_0 = arith.constant 0 : i32
    return %arg0, %c0_i32 : i32, i32
  }
}

module attributes {stable_mosaic.version = 11 : i64} {
  func.func @_mm_bias_act_kernel(%arg0: i32, %arg1: memref<8x32xbf16, #tpu.memory_space<vmem>>, %arg2: memref<32x128xbf16, #tpu.memory_space<vmem>>, %arg3: memref<1x128xf32, #tpu.memory_space<vmem>>, %arg4: memref<8x128xbf16, #tpu.memory_space<vmem>>) attributes {dimension_semantics = [#tpu.dimension_semantics<parallel>], iteration_bounds = array<i64: 1>, scalar_prefetch = 0 : i64, scratch_operands = 0 : i64, tpu.core_type = #tpu.core_type<tc>, window_params = [{transform_indices = @transform_0, window_bounds = array<i64: 8, 32>}, {pipeline_mode = #tpu.pipeline_mode<synchronous>, transform_indices = @transform_1, window_bounds = array<i64: 32, 128>}, {pipeline_mode = #tpu.pipeline_mode<synchronous>, transform_indices = @transform_2, window_bounds = array<i64: 1, 128>}, {transform_indices = @transform_3, window_bounds = array<i64: 8, 128>}]} {
    %c0 = arith.constant 0 : index
    %c0_0 = arith.constant 0 : index
    %0 = vector.load %arg1[%c0, %c0_0] : memref<8x32xbf16, #tpu.memory_space<vmem>>, vector<8x32xbf16>
    %c0_1 = arith.constant 0 : index
    %c0_2 = arith.constant 0 : index
    %1 = vector.load %arg2[%c0_1, %c0_2] : memref<32x128xbf16, #tpu.memory_space<vmem>>, vector<32x128xbf16>
    %cst = arith.constant dense<0.000000e+00> : vector<8x128xf32>
    %2 = tpu.matmul %0, %1, %cst {dimension_numbers = #tpu.dot_dimension_numbers<[1], [0], [0], [1], [0, 0, 1, 1], [], []>} : vector<8x32xbf16>, vector<32x128xbf16>, vector<8x128xf32> -> vector<8x128xf32>
    %c0_3 = arith.constant 0 : index
    %c0_4 = arith.constant 0 : index
    %3 = vector.load %arg3[%c0_3, %c0_4] : memref<1x128xf32, #tpu.memory_space<vmem>>, vector<1x128xf32>
    %4 = vector.broadcast %3 : vector<1x128xf32> to vector<8x128xf32>
    %5 = arith.addf %2, %4 : vector<8x128xf32>
    %cst_5 = arith.constant 0.000000e+00 : f32
    %6 = vector.broadcast %cst_5 : f32 to vector<8x128xf32>
    %7 = arith.maximumf %5, %6 : vector<8x128xf32>
    %8 = arith.truncf %7 : vector<8x128xf32> to vector<8x128xbf16>
    %c0_6 = arith.constant 0 : index
    %c0_7 = arith.constant 0 : index
    %9 = vector.load %arg4[%c0_6, %c0_7] : memref<8x128xbf16, #tpu.memory_space<vmem>>, vector<8x128xbf16>
    tpu.vector_store %arg4[%c0_6, %c0_7], %8 {strides = array<i32>} : memref<8x128xbf16, #tpu.memory_space<vmem>>, vector<8x128xbf16>,
    return
  }
  func.func @transform_0(%arg0: i32) -> (i32, i32) {
    %c0_i32 = arith.constant 0 : i32
    %c0_i32_0 = arith.constant 0 : i32
    return %arg0, %c0_i32 : i32, i32
  }
  func.func @transform_1(%arg0: i32) -> (i32, i32) {
    %c0_i32 = arith.constant 0 : i32
    %c0_i32_0 = arith.constant 0 : i32
    %c0_i32_1 = arith.constant 0 : i32
    return %c0_i32, %c0_i32_0 : i32, i32
  }
  func.func @transform_2(%arg0: i32) -> (i32, i32) {
    %c0_i32 = arith.constant 0 : i32
    %c0_i32_0 = arith.constant 0 : i32
    %c0_i32_1 = arith.constant 0 : i32
    return %c0_i32, %c0_i32_0 : i32, i32
  }
  func.func @transform_3(%arg0: i32) -> (i32, i32) {
    %c0_i32 = arith.constant 0 : i32
    %c0_i32_0 = arith.constant 0 : i32
    return %arg0, %c0_i32 : i32, i32
  }
}

module attributes {stable_mosaic.version = 11 : i64} {
  func.func @_upadd2x_kernel(%arg0: i32, %arg1: memref<1x2x1x64xbf16, #tpu.memory_space<vmem>>, %arg2: memref<1x1x32xbf16, #tpu.memory_space<vmem>>, %arg3: memref<1x2x1x64xbf16, #tpu.memory_space<vmem>>) attributes {dimension_semantics = [#tpu.dimension_semantics<parallel>], iteration_bounds = array<i64: 2>, scalar_prefetch = 0 : i64, scratch_operands = 0 : i64, tpu.core_type = #tpu.core_type<tc>, window_params = [{transform_indices = @transform_0, window_bounds = array<i64: 1, 2, 1, 64>}, {transform_indices = @transform_1, window_bounds = array<i64: 1, 1, 32>}, {transform_indices = @transform_2, window_bounds = array<i64: 1, 2, 1, 64>}]} {
    %c0 = arith.constant 0 : index
    %c0_0 = arith.constant 0 : index
    %c0_1 = arith.constant 0 : index
    %0 = vector.load %arg2[%c0, %c0_0, %c0_1] : memref<1x1x32xbf16, #tpu.memory_space<vmem>>, vector<1x1x32xbf16>
    %1 = tpu.concatenate %0, %0 in 2 : vector<1x1x32xbf16>, vector<1x1x32xbf16> -> vector<1x1x64xbf16>
    %c0_2 = arith.constant 0 : index
    %c0_3 = arith.constant 0 : index
    %c0_4 = arith.constant 0 : index
    %c0_5 = arith.constant 0 : index
    %2 = vector.load %arg1[%c0_2, %c0_3, %c0_4, %c0_5] : memref<1x2x1x64xbf16, #tpu.memory_space<vmem>>, vector<1x2x1x64xbf16>
    %3 = vector.shape_cast %1 : vector<1x1x64xbf16> to vector<1x1x1x64xbf16>
    %4 = vector.broadcast %3 : vector<1x1x1x64xbf16> to vector<1x2x1x64xbf16>
    %5 = arith.addf %2, %4 : vector<1x2x1x64xbf16>
    %c0_6 = arith.constant 0 : index
    %c0_7 = arith.constant 0 : index
    %c0_8 = arith.constant 0 : index
    %c0_9 = arith.constant 0 : index
    %6 = vector.load %arg3[%c0_6, %c0_7, %c0_8, %c0_9] : memref<1x2x1x64xbf16, #tpu.memory_space<vmem>>, vector<1x2x1x64xbf16>
    tpu.vector_store %arg3[%c0_6, %c0_7, %c0_8, %c0_9], %5 {strides = array<i32>} : memref<1x2x1x64xbf16, #tpu.memory_space<vmem>>, vector<1x2x1x64xbf16>,
    return
  }
  func.func @transform_0(%arg0: i32) -> (i32, i32, i32, i32) {
    %c0_i32 = arith.constant 0 : i32
    %c0_i32_0 = arith.constant 0 : i32
    %c0_i32_1 = arith.constant 0 : i32
    %c0_i32_2 = arith.constant 0 : i32
    return %arg0, %c0_i32, %c0_i32_0, %c0_i32_1 : i32, i32, i32, i32
  }
  func.func @transform_1(%arg0: i32) -> (i32, i32, i32) {
    %c0_i32 = arith.constant 0 : i32
    %c0_i32_0 = arith.constant 0 : i32
    %c0_i32_1 = arith.constant 0 : i32
    return %arg0, %c0_i32, %c0_i32_0 : i32, i32, i32
  }
  func.func @transform_2(%arg0: i32) -> (i32, i32, i32, i32) {
    %c0_i32 = arith.constant 0 : i32
    %c0_i32_0 = arith.constant 0 : i32
    %c0_i32_1 = arith.constant 0 : i32
    %c0_i32_2 = arith.constant 0 : i32
    return %arg0, %c0_i32, %c0_i32_0, %c0_i32_1 : i32, i32, i32, i32
  }
}

module attributes {stable_mosaic.version = 11 : i64} {
  func.func @_mm_bias_act_kernel(%arg0: i32, %arg1: memref<16x16xbf16, #tpu.memory_space<vmem>>, %arg2: memref<16x128xbf16, #tpu.memory_space<vmem>>, %arg3: memref<1x128xf32, #tpu.memory_space<vmem>>, %arg4: memref<16x128xbf16, #tpu.memory_space<vmem>>) attributes {dimension_semantics = [#tpu.dimension_semantics<parallel>], iteration_bounds = array<i64: 2>, scalar_prefetch = 0 : i64, scratch_operands = 0 : i64, tpu.core_type = #tpu.core_type<tc>, window_params = [{transform_indices = @transform_0, window_bounds = array<i64: 16, 16>}, {pipeline_mode = #tpu.pipeline_mode<synchronous>, transform_indices = @transform_1, window_bounds = array<i64: 16, 128>}, {pipeline_mode = #tpu.pipeline_mode<synchronous>, transform_indices = @transform_2, window_bounds = array<i64: 1, 128>}, {transform_indices = @transform_3, window_bounds = array<i64: 16, 128>}]} {
    %c0 = arith.constant 0 : index
    %c0_0 = arith.constant 0 : index
    %0 = vector.load %arg1[%c0, %c0_0] : memref<16x16xbf16, #tpu.memory_space<vmem>>, vector<16x16xbf16>
    %c0_1 = arith.constant 0 : index
    %c0_2 = arith.constant 0 : index
    %1 = vector.load %arg2[%c0_1, %c0_2] : memref<16x128xbf16, #tpu.memory_space<vmem>>, vector<16x128xbf16>
    %cst = arith.constant dense<0.000000e+00> : vector<16x128xf32>
    %2 = tpu.matmul %0, %1, %cst {dimension_numbers = #tpu.dot_dimension_numbers<[1], [0], [0], [1], [0, 0, 1, 1], [], []>} : vector<16x16xbf16>, vector<16x128xbf16>, vector<16x128xf32> -> vector<16x128xf32>
    %c0_3 = arith.constant 0 : index
    %c0_4 = arith.constant 0 : index
    %3 = vector.load %arg3[%c0_3, %c0_4] : memref<1x128xf32, #tpu.memory_space<vmem>>, vector<1x128xf32>
    %4 = vector.broadcast %3 : vector<1x128xf32> to vector<16x128xf32>
    %5 = arith.addf %2, %4 : vector<16x128xf32>
    %cst_5 = arith.constant 0.000000e+00 : f32
    %6 = vector.broadcast %cst_5 : f32 to vector<16x128xf32>
    %7 = arith.maximumf %5, %6 : vector<16x128xf32>
    %8 = arith.truncf %7 : vector<16x128xf32> to vector<16x128xbf16>
    %c0_6 = arith.constant 0 : index
    %c0_7 = arith.constant 0 : index
    %9 = vector.load %arg4[%c0_6, %c0_7] : memref<16x128xbf16, #tpu.memory_space<vmem>>, vector<16x128xbf16>
    tpu.vector_store %arg4[%c0_6, %c0_7], %8 {strides = array<i32>} : memref<16x128xbf16, #tpu.memory_space<vmem>>, vector<16x128xbf16>,
    return
  }
  func.func @transform_0(%arg0: i32) -> (i32, i32) {
    %c0_i32 = arith.constant 0 : i32
    %c0_i32_0 = arith.constant 0 : i32
    return %arg0, %c0_i32 : i32, i32
  }
  func.func @transform_1(%arg0: i32) -> (i32, i32) {
    %c0_i32 = arith.constant 0 : i32
    %c0_i32_0 = arith.constant 0 : i32
    %c0_i32_1 = arith.constant 0 : i32
    return %c0_i32, %c0_i32_0 : i32, i32
  }
  func.func @transform_2(%arg0: i32) -> (i32, i32) {
    %c0_i32 = arith.constant 0 : i32
    %c0_i32_0 = arith.constant 0 : i32
    %c0_i32_1 = arith.constant 0 : i32
    return %c0_i32, %c0_i32_0 : i32, i32
  }
  func.func @transform_3(%arg0: i32) -> (i32, i32) {
    %c0_i32 = arith.constant 0 : i32
    %c0_i32_0 = arith.constant 0 : i32
    return %arg0, %c0_i32 : i32, i32
  }
}

module attributes {stable_mosaic.version = 11 : i64} {
  func.func @_upadd2x_kernel(%arg0: i32, %arg1: memref<2x2x2x64xbf16, #tpu.memory_space<vmem>>, %arg2: memref<2x2x32xbf16, #tpu.memory_space<vmem>>, %arg3: memref<2x2x2x64xbf16, #tpu.memory_space<vmem>>) attributes {dimension_semantics = [#tpu.dimension_semantics<parallel>], iteration_bounds = array<i64: 2>, scalar_prefetch = 0 : i64, scratch_operands = 0 : i64, tpu.core_type = #tpu.core_type<tc>, window_params = [{transform_indices = @transform_0, window_bounds = array<i64: 2, 2, 2, 64>}, {transform_indices = @transform_1, window_bounds = array<i64: 2, 2, 32>}, {transform_indices = @transform_2, window_bounds = array<i64: 2, 2, 2, 64>}]} {
    %c0 = arith.constant 0 : index
    %c0_0 = arith.constant 0 : index
    %c0_1 = arith.constant 0 : index
    %0 = vector.load %arg2[%c0, %c0_0, %c0_1] : memref<2x2x32xbf16, #tpu.memory_space<vmem>>, vector<2x2x32xbf16>
    %1 = tpu.concatenate %0, %0 in 2 : vector<2x2x32xbf16>, vector<2x2x32xbf16> -> vector<2x2x64xbf16>
    %c0_2 = arith.constant 0 : index
    %c0_3 = arith.constant 0 : index
    %c0_4 = arith.constant 0 : index
    %c0_5 = arith.constant 0 : index
    %2 = vector.load %arg1[%c0_2, %c0_3, %c0_4, %c0_5] : memref<2x2x2x64xbf16, #tpu.memory_space<vmem>>, vector<2x2x2x64xbf16>
    %3 = vector.shape_cast %1 : vector<2x2x64xbf16> to vector<2x1x2x64xbf16>
    %4 = vector.broadcast %3 : vector<2x1x2x64xbf16> to vector<2x2x2x64xbf16>
    %5 = arith.addf %2, %4 : vector<2x2x2x64xbf16>
    %c0_6 = arith.constant 0 : index
    %c0_7 = arith.constant 0 : index
    %c0_8 = arith.constant 0 : index
    %c0_9 = arith.constant 0 : index
    %6 = vector.load %arg3[%c0_6, %c0_7, %c0_8, %c0_9] : memref<2x2x2x64xbf16, #tpu.memory_space<vmem>>, vector<2x2x2x64xbf16>
    tpu.vector_store %arg3[%c0_6, %c0_7, %c0_8, %c0_9], %5 {strides = array<i32>} : memref<2x2x2x64xbf16, #tpu.memory_space<vmem>>, vector<2x2x2x64xbf16>,
    return
  }
  func.func @transform_0(%arg0: i32) -> (i32, i32, i32, i32) {
    %c0_i32 = arith.constant 0 : i32
    %c0_i32_0 = arith.constant 0 : i32
    %c0_i32_1 = arith.constant 0 : i32
    %c0_i32_2 = arith.constant 0 : i32
    return %arg0, %c0_i32, %c0_i32_0, %c0_i32_1 : i32, i32, i32, i32
  }
  func.func @transform_1(%arg0: i32) -> (i32, i32, i32) {
    %c0_i32 = arith.constant 0 : i32
    %c0_i32_0 = arith.constant 0 : i32
    %c0_i32_1 = arith.constant 0 : i32
    return %arg0, %c0_i32, %c0_i32_0 : i32, i32, i32
  }
  func.func @transform_2(%arg0: i32) -> (i32, i32, i32, i32) {
    %c0_i32 = arith.constant 0 : i32
    %c0_i32_0 = arith.constant 0 : i32
    %c0_i32_1 = arith.constant 0 : i32
    %c0_i32_2 = arith.constant 0 : i32
    return %arg0, %c0_i32, %c0_i32_0, %c0_i32_1 : i32, i32, i32, i32
  }
}

module attributes {stable_mosaic.version = 11 : i64} {
  func.func @_mm_bias_act_kernel(%arg0: i32, %arg1: memref<64x8xbf16, #tpu.memory_space<vmem>>, %arg2: memref<8x128xbf16, #tpu.memory_space<vmem>>, %arg3: memref<1x128xf32, #tpu.memory_space<vmem>>, %arg4: memref<64x128xbf16, #tpu.memory_space<vmem>>) attributes {dimension_semantics = [#tpu.dimension_semantics<parallel>], iteration_bounds = array<i64: 2>, scalar_prefetch = 0 : i64, scratch_operands = 0 : i64, tpu.core_type = #tpu.core_type<tc>, window_params = [{transform_indices = @transform_0, window_bounds = array<i64: 64, 8>}, {pipeline_mode = #tpu.pipeline_mode<synchronous>, transform_indices = @transform_1, window_bounds = array<i64: 8, 128>}, {pipeline_mode = #tpu.pipeline_mode<synchronous>, transform_indices = @transform_2, window_bounds = array<i64: 1, 128>}, {transform_indices = @transform_3, window_bounds = array<i64: 64, 128>}]} {
    %c0 = arith.constant 0 : index
    %c0_0 = arith.constant 0 : index
    %0 = vector.load %arg1[%c0, %c0_0] : memref<64x8xbf16, #tpu.memory_space<vmem>>, vector<64x8xbf16>
    %c0_1 = arith.constant 0 : index
    %c0_2 = arith.constant 0 : index
    %1 = vector.load %arg2[%c0_1, %c0_2] : memref<8x128xbf16, #tpu.memory_space<vmem>>, vector<8x128xbf16>
    %cst = arith.constant dense<0.000000e+00> : vector<64x128xf32>
    %2 = tpu.matmul %0, %1, %cst {dimension_numbers = #tpu.dot_dimension_numbers<[1], [0], [0], [1], [0, 0, 1, 1], [], []>} : vector<64x8xbf16>, vector<8x128xbf16>, vector<64x128xf32> -> vector<64x128xf32>
    %c0_3 = arith.constant 0 : index
    %c0_4 = arith.constant 0 : index
    %3 = vector.load %arg3[%c0_3, %c0_4] : memref<1x128xf32, #tpu.memory_space<vmem>>, vector<1x128xf32>
    %4 = vector.broadcast %3 : vector<1x128xf32> to vector<64x128xf32>
    %5 = arith.addf %2, %4 : vector<64x128xf32>
    %cst_5 = arith.constant 0.000000e+00 : f32
    %6 = vector.broadcast %cst_5 : f32 to vector<64x128xf32>
    %7 = arith.maximumf %5, %6 : vector<64x128xf32>
    %8 = arith.truncf %7 : vector<64x128xf32> to vector<64x128xbf16>
    %c0_6 = arith.constant 0 : index
    %c0_7 = arith.constant 0 : index
    %9 = vector.load %arg4[%c0_6, %c0_7] : memref<64x128xbf16, #tpu.memory_space<vmem>>, vector<64x128xbf16>
    tpu.vector_store %arg4[%c0_6, %c0_7], %8 {strides = array<i32>} : memref<64x128xbf16, #tpu.memory_space<vmem>>, vector<64x128xbf16>,
    return
  }
  func.func @transform_0(%arg0: i32) -> (i32, i32) {
    %c0_i32 = arith.constant 0 : i32
    %c0_i32_0 = arith.constant 0 : i32
    return %arg0, %c0_i32 : i32, i32
  }
  func.func @transform_1(%arg0: i32) -> (i32, i32) {
    %c0_i32 = arith.constant 0 : i32
    %c0_i32_0 = arith.constant 0 : i32
    %c0_i32_1 = arith.constant 0 : i32
    return %c0_i32, %c0_i32_0 : i32, i32
  }
  func.func @transform_2(%arg0: i32) -> (i32, i32) {
    %c0_i32 = arith.constant 0 : i32
    %c0_i32_0 = arith.constant 0 : i32
    %c0_i32_1 = arith.constant 0 : i32
    return %c0_i32, %c0_i32_0 : i32, i32
  }
  func.func @transform_3(%arg0: i32) -> (i32, i32) {
    %c0_i32 = arith.constant 0 : i32
    %c0_i32_0 = arith.constant 0 : i32
    return %arg0, %c0_i32 : i32, i32
  }
}

module attributes {stable_mosaic.version = 11 : i64} {
  func.func @_upadd2x_kernel(%arg0: i32, %arg1: memref<4x2x4x64xbf16, #tpu.memory_space<vmem>>, %arg2: memref<4x4x32xbf16, #tpu.memory_space<vmem>>, %arg3: memref<4x2x4x64xbf16, #tpu.memory_space<vmem>>) attributes {dimension_semantics = [#tpu.dimension_semantics<parallel>], iteration_bounds = array<i64: 2>, scalar_prefetch = 0 : i64, scratch_operands = 0 : i64, tpu.core_type = #tpu.core_type<tc>, window_params = [{transform_indices = @transform_0, window_bounds = array<i64: 4, 2, 4, 64>}, {transform_indices = @transform_1, window_bounds = array<i64: 4, 4, 32>}, {transform_indices = @transform_2, window_bounds = array<i64: 4, 2, 4, 64>}]} {
    %c0 = arith.constant 0 : index
    %c0_0 = arith.constant 0 : index
    %c0_1 = arith.constant 0 : index
    %0 = vector.load %arg2[%c0, %c0_0, %c0_1] : memref<4x4x32xbf16, #tpu.memory_space<vmem>>, vector<4x4x32xbf16>
    %1 = tpu.concatenate %0, %0 in 2 : vector<4x4x32xbf16>, vector<4x4x32xbf16> -> vector<4x4x64xbf16>
    %c0_2 = arith.constant 0 : index
    %c0_3 = arith.constant 0 : index
    %c0_4 = arith.constant 0 : index
    %c0_5 = arith.constant 0 : index
    %2 = vector.load %arg1[%c0_2, %c0_3, %c0_4, %c0_5] : memref<4x2x4x64xbf16, #tpu.memory_space<vmem>>, vector<4x2x4x64xbf16>
    %3 = vector.shape_cast %1 : vector<4x4x64xbf16> to vector<4x1x4x64xbf16>
    %4 = vector.broadcast %3 : vector<4x1x4x64xbf16> to vector<4x2x4x64xbf16>
    %5 = arith.addf %2, %4 : vector<4x2x4x64xbf16>
    %c0_6 = arith.constant 0 : index
    %c0_7 = arith.constant 0 : index
    %c0_8 = arith.constant 0 : index
    %c0_9 = arith.constant 0 : index
    %6 = vector.load %arg3[%c0_6, %c0_7, %c0_8, %c0_9] : memref<4x2x4x64xbf16, #tpu.memory_space<vmem>>, vector<4x2x4x64xbf16>
    tpu.vector_store %arg3[%c0_6, %c0_7, %c0_8, %c0_9], %5 {strides = array<i32>} : memref<4x2x4x64xbf16, #tpu.memory_space<vmem>>, vector<4x2x4x64xbf16>,
    return
  }
  func.func @transform_0(%arg0: i32) -> (i32, i32, i32, i32) {
    %c0_i32 = arith.constant 0 : i32
    %c0_i32_0 = arith.constant 0 : i32
    %c0_i32_1 = arith.constant 0 : i32
    %c0_i32_2 = arith.constant 0 : i32
    return %arg0, %c0_i32, %c0_i32_0, %c0_i32_1 : i32, i32, i32, i32
  }
  func.func @transform_1(%arg0: i32) -> (i32, i32, i32) {
    %c0_i32 = arith.constant 0 : i32
    %c0_i32_0 = arith.constant 0 : i32
    %c0_i32_1 = arith.constant 0 : i32
    return %arg0, %c0_i32, %c0_i32_0 : i32, i32, i32
  }
  func.func @transform_2(%arg0: i32) -> (i32, i32, i32, i32) {
    %c0_i32 = arith.constant 0 : i32
    %c0_i32_0 = arith.constant 0 : i32
    %c0_i32_1 = arith.constant 0 : i32
    %c0_i32_2 = arith.constant 0 : i32
    return %arg0, %c0_i32, %c0_i32_0, %c0_i32_1 : i32, i32, i32, i32
  }
}

module attributes {stable_mosaic.version = 11 : i64} {
  func.func @_mm_bias_act_kernel(%arg0: i32, %arg1: memref<64x288xbf16, #tpu.memory_space<vmem>>, %arg2: memref<288x128xbf16, #tpu.memory_space<vmem>>, %arg3: memref<1x128xf32, #tpu.memory_space<vmem>>, %arg4: memref<64x128xbf16, #tpu.memory_space<vmem>>) attributes {dimension_semantics = [#tpu.dimension_semantics<parallel>], iteration_bounds = array<i64: 2>, scalar_prefetch = 0 : i64, scratch_operands = 0 : i64, tpu.core_type = #tpu.core_type<tc>, window_params = [{transform_indices = @transform_0, window_bounds = array<i64: 64, 288>}, {pipeline_mode = #tpu.pipeline_mode<synchronous>, transform_indices = @transform_1, window_bounds = array<i64: 288, 128>}, {pipeline_mode = #tpu.pipeline_mode<synchronous>, transform_indices = @transform_2, window_bounds = array<i64: 1, 128>}, {transform_indices = @transform_3, window_bounds = array<i64: 64, 128>}]} {
    %c0 = arith.constant 0 : index
    %c0_0 = arith.constant 0 : index
    %0 = vector.load %arg1[%c0, %c0_0] : memref<64x288xbf16, #tpu.memory_space<vmem>>, vector<64x288xbf16>
    %c0_1 = arith.constant 0 : index
    %c0_2 = arith.constant 0 : index
    %1 = vector.load %arg2[%c0_1, %c0_2] : memref<288x128xbf16, #tpu.memory_space<vmem>>, vector<288x128xbf16>
    %cst = arith.constant dense<0.000000e+00> : vector<64x128xf32>
    %2 = tpu.matmul %0, %1, %cst {dimension_numbers = #tpu.dot_dimension_numbers<[1], [0], [0], [1], [0, 0, 1, 1], [], []>} : vector<64x288xbf16>, vector<288x128xbf16>, vector<64x128xf32> -> vector<64x128xf32>
    %c0_3 = arith.constant 0 : index
    %c0_4 = arith.constant 0 : index
    %3 = vector.load %arg3[%c0_3, %c0_4] : memref<1x128xf32, #tpu.memory_space<vmem>>, vector<1x128xf32>
    %4 = vector.broadcast %3 : vector<1x128xf32> to vector<64x128xf32>
    %5 = arith.addf %2, %4 : vector<64x128xf32>
    %cst_5 = arith.constant 0.000000e+00 : f32
    %6 = vector.broadcast %cst_5 : f32 to vector<64x128xf32>
    %7 = arith.maximumf %5, %6 : vector<64x128xf32>
    %8 = arith.truncf %7 : vector<64x128xf32> to vector<64x128xbf16>
    %c0_6 = arith.constant 0 : index
    %c0_7 = arith.constant 0 : index
    %9 = vector.load %arg4[%c0_6, %c0_7] : memref<64x128xbf16, #tpu.memory_space<vmem>>, vector<64x128xbf16>
    tpu.vector_store %arg4[%c0_6, %c0_7], %8 {strides = array<i32>} : memref<64x128xbf16, #tpu.memory_space<vmem>>, vector<64x128xbf16>,
    return
  }
  func.func @transform_0(%arg0: i32) -> (i32, i32) {
    %c0_i32 = arith.constant 0 : i32
    %c0_i32_0 = arith.constant 0 : i32
    return %arg0, %c0_i32 : i32, i32
  }
  func.func @transform_1(%arg0: i32) -> (i32, i32) {
    %c0_i32 = arith.constant 0 : i32
    %c0_i32_0 = arith.constant 0 : i32
    %c0_i32_1 = arith.constant 0 : i32
    return %c0_i32, %c0_i32_0 : i32, i32
  }
  func.func @transform_2(%arg0: i32) -> (i32, i32) {
    %c0_i32 = arith.constant 0 : i32
    %c0_i32_0 = arith.constant 0 : i32
    %c0_i32_1 = arith.constant 0 : i32
    return %c0_i32, %c0_i32_0 : i32, i32
  }
  func.func @transform_3(%arg0: i32) -> (i32, i32) {
    %c0_i32 = arith.constant 0 : i32
    %c0_i32_0 = arith.constant 0 : i32
    return %arg0, %c0_i32 : i32, i32
  }
}

module attributes {stable_mosaic.version = 11 : i64} {
  func.func @_mm_bias_act_kernel(%arg0: i32, %arg1: memref<16x288xbf16, #tpu.memory_space<vmem>>, %arg2: memref<288x128xbf16, #tpu.memory_space<vmem>>, %arg3: memref<1x128xf32, #tpu.memory_space<vmem>>, %arg4: memref<16x128xbf16, #tpu.memory_space<vmem>>) attributes {dimension_semantics = [#tpu.dimension_semantics<parallel>], iteration_bounds = array<i64: 2>, scalar_prefetch = 0 : i64, scratch_operands = 0 : i64, tpu.core_type = #tpu.core_type<tc>, window_params = [{transform_indices = @transform_0, window_bounds = array<i64: 16, 288>}, {pipeline_mode = #tpu.pipeline_mode<synchronous>, transform_indices = @transform_1, window_bounds = array<i64: 288, 128>}, {pipeline_mode = #tpu.pipeline_mode<synchronous>, transform_indices = @transform_2, window_bounds = array<i64: 1, 128>}, {transform_indices = @transform_3, window_bounds = array<i64: 16, 128>}]} {
    %c0 = arith.constant 0 : index
    %c0_0 = arith.constant 0 : index
    %0 = vector.load %arg1[%c0, %c0_0] : memref<16x288xbf16, #tpu.memory_space<vmem>>, vector<16x288xbf16>
    %c0_1 = arith.constant 0 : index
    %c0_2 = arith.constant 0 : index
    %1 = vector.load %arg2[%c0_1, %c0_2] : memref<288x128xbf16, #tpu.memory_space<vmem>>, vector<288x128xbf16>
    %cst = arith.constant dense<0.000000e+00> : vector<16x128xf32>
    %2 = tpu.matmul %0, %1, %cst {dimension_numbers = #tpu.dot_dimension_numbers<[1], [0], [0], [1], [0, 0, 1, 1], [], []>} : vector<16x288xbf16>, vector<288x128xbf16>, vector<16x128xf32> -> vector<16x128xf32>
    %c0_3 = arith.constant 0 : index
    %c0_4 = arith.constant 0 : index
    %3 = vector.load %arg3[%c0_3, %c0_4] : memref<1x128xf32, #tpu.memory_space<vmem>>, vector<1x128xf32>
    %4 = vector.broadcast %3 : vector<1x128xf32> to vector<16x128xf32>
    %5 = arith.addf %2, %4 : vector<16x128xf32>
    %cst_5 = arith.constant 0.000000e+00 : f32
    %6 = vector.broadcast %cst_5 : f32 to vector<16x128xf32>
    %7 = arith.maximumf %5, %6 : vector<16x128xf32>
    %8 = arith.truncf %7 : vector<16x128xf32> to vector<16x128xbf16>
    %c0_6 = arith.constant 0 : index
    %c0_7 = arith.constant 0 : index
    %9 = vector.load %arg4[%c0_6, %c0_7] : memref<16x128xbf16, #tpu.memory_space<vmem>>, vector<16x128xbf16>
    tpu.vector_store %arg4[%c0_6, %c0_7], %8 {strides = array<i32>} : memref<16x128xbf16, #tpu.memory_space<vmem>>, vector<16x128xbf16>,
    return
  }
  func.func @transform_0(%arg0: i32) -> (i32, i32) {
    %c0_i32 = arith.constant 0 : i32
    %c0_i32_0 = arith.constant 0 : i32
    return %arg0, %c0_i32 : i32, i32
  }
  func.func @transform_1(%arg0: i32) -> (i32, i32) {
    %c0_i32 = arith.constant 0 : i32
    %c0_i32_0 = arith.constant 0 : i32
    %c0_i32_1 = arith.constant 0 : i32
    return %c0_i32, %c0_i32_0 : i32, i32
  }
  func.func @transform_2(%arg0: i32) -> (i32, i32) {
    %c0_i32 = arith.constant 0 : i32
    %c0_i32_0 = arith.constant 0 : i32
    %c0_i32_1 = arith.constant 0 : i32
    return %c0_i32, %c0_i32_0 : i32, i32
  }
  func.func @transform_3(%arg0: i32) -> (i32, i32) {
    %c0_i32 = arith.constant 0 : i32
    %c0_i32_0 = arith.constant 0 : i32
    return %arg0, %c0_i32 : i32, i32
  }
}

module attributes {stable_mosaic.version = 11 : i64} {
  func.func @_mm_bias_act_kernel(%arg0: i32, %arg1: memref<8x288xbf16, #tpu.memory_space<vmem>>, %arg2: memref<288x128xbf16, #tpu.memory_space<vmem>>, %arg3: memref<1x128xf32, #tpu.memory_space<vmem>>, %arg4: memref<8x128xbf16, #tpu.memory_space<vmem>>) attributes {dimension_semantics = [#tpu.dimension_semantics<parallel>], iteration_bounds = array<i64: 1>, scalar_prefetch = 0 : i64, scratch_operands = 0 : i64, tpu.core_type = #tpu.core_type<tc>, window_params = [{transform_indices = @transform_0, window_bounds = array<i64: 8, 288>}, {pipeline_mode = #tpu.pipeline_mode<synchronous>, transform_indices = @transform_1, window_bounds = array<i64: 288, 128>}, {pipeline_mode = #tpu.pipeline_mode<synchronous>, transform_indices = @transform_2, window_bounds = array<i64: 1, 128>}, {transform_indices = @transform_3, window_bounds = array<i64: 8, 128>}]} {
    %c0 = arith.constant 0 : index
    %c0_0 = arith.constant 0 : index
    %0 = vector.load %arg1[%c0, %c0_0] : memref<8x288xbf16, #tpu.memory_space<vmem>>, vector<8x288xbf16>
    %c0_1 = arith.constant 0 : index
    %c0_2 = arith.constant 0 : index
    %1 = vector.load %arg2[%c0_1, %c0_2] : memref<288x128xbf16, #tpu.memory_space<vmem>>, vector<288x128xbf16>
    %cst = arith.constant dense<0.000000e+00> : vector<8x128xf32>
    %2 = tpu.matmul %0, %1, %cst {dimension_numbers = #tpu.dot_dimension_numbers<[1], [0], [0], [1], [0, 0, 1, 1], [], []>} : vector<8x288xbf16>, vector<288x128xbf16>, vector<8x128xf32> -> vector<8x128xf32>
    %c0_3 = arith.constant 0 : index
    %c0_4 = arith.constant 0 : index
    %3 = vector.load %arg3[%c0_3, %c0_4] : memref<1x128xf32, #tpu.memory_space<vmem>>, vector<1x128xf32>
    %4 = vector.broadcast %3 : vector<1x128xf32> to vector<8x128xf32>
    %5 = arith.addf %2, %4 : vector<8x128xf32>
    %cst_5 = arith.constant 0.000000e+00 : f32
    %6 = vector.broadcast %cst_5 : f32 to vector<8x128xf32>
    %7 = arith.maximumf %5, %6 : vector<8x128xf32>
    %8 = arith.truncf %7 : vector<8x128xf32> to vector<8x128xbf16>
    %c0_6 = arith.constant 0 : index
    %c0_7 = arith.constant 0 : index
    %9 = vector.load %arg4[%c0_6, %c0_7] : memref<8x128xbf16, #tpu.memory_space<vmem>>, vector<8x128xbf16>
    tpu.vector_store %arg4[%c0_6, %c0_7], %8 {strides = array<i32>} : memref<8x128xbf16, #tpu.memory_space<vmem>>, vector<8x128xbf16>,
    return
  }
  func.func @transform_0(%arg0: i32) -> (i32, i32) {
    %c0_i32 = arith.constant 0 : i32
    %c0_i32_0 = arith.constant 0 : i32
    return %arg0, %c0_i32 : i32, i32
  }
  func.func @transform_1(%arg0: i32) -> (i32, i32) {
    %c0_i32 = arith.constant 0 : i32
    %c0_i32_0 = arith.constant 0 : i32
    %c0_i32_1 = arith.constant 0 : i32
    return %c0_i32, %c0_i32_0 : i32, i32
  }
  func.func @transform_2(%arg0: i32) -> (i32, i32) {
    %c0_i32 = arith.constant 0 : i32
    %c0_i32_0 = arith.constant 0 : i32
    %c0_i32_1 = arith.constant 0 : i32
    return %c0_i32, %c0_i32_0 : i32, i32
  }
  func.func @transform_3(%arg0: i32) -> (i32, i32) {
    %c0_i32 = arith.constant 0 : i32
    %c0_i32_0 = arith.constant 0 : i32
    return %arg0, %c0_i32 : i32, i32
  }
}

module attributes {stable_mosaic.version = 11 : i64} {
  func.func @_mm_bias_act_kernel(%arg0: i32, %arg1: memref<256x8xbf16, #tpu.memory_space<vmem>>, %arg2: memref<8x128xbf16, #tpu.memory_space<vmem>>, %arg3: memref<1x128xf32, #tpu.memory_space<vmem>>, %arg4: memref<256x128xf32, #tpu.memory_space<vmem>>) attributes {dimension_semantics = [#tpu.dimension_semantics<parallel>], iteration_bounds = array<i64: 2>, scalar_prefetch = 0 : i64, scratch_operands = 0 : i64, tpu.core_type = #tpu.core_type<tc>, window_params = [{transform_indices = @transform_0, window_bounds = array<i64: 256, 8>}, {pipeline_mode = #tpu.pipeline_mode<synchronous>, transform_indices = @transform_1, window_bounds = array<i64: 8, 128>}, {pipeline_mode = #tpu.pipeline_mode<synchronous>, transform_indices = @transform_2, window_bounds = array<i64: 1, 128>}, {transform_indices = @transform_3, window_bounds = array<i64: 256, 128>}]} {
    %c0 = arith.constant 0 : index
    %c0_0 = arith.constant 0 : index
    %0 = vector.load %arg1[%c0, %c0_0] : memref<256x8xbf16, #tpu.memory_space<vmem>>, vector<256x8xbf16>
    %c0_1 = arith.constant 0 : index
    %c0_2 = arith.constant 0 : index
    %1 = vector.load %arg2[%c0_1, %c0_2] : memref<8x128xbf16, #tpu.memory_space<vmem>>, vector<8x128xbf16>
    %cst = arith.constant dense<0.000000e+00> : vector<256x128xf32>
    %2 = tpu.matmul %0, %1, %cst {dimension_numbers = #tpu.dot_dimension_numbers<[1], [0], [0], [1], [0, 0, 1, 1], [], []>} : vector<256x8xbf16>, vector<8x128xbf16>, vector<256x128xf32> -> vector<256x128xf32>
    %c0_3 = arith.constant 0 : index
    %c0_4 = arith.constant 0 : index
    %3 = vector.load %arg3[%c0_3, %c0_4] : memref<1x128xf32, #tpu.memory_space<vmem>>, vector<1x128xf32>
    %4 = vector.broadcast %3 : vector<1x128xf32> to vector<256x128xf32>
    %5 = arith.addf %2, %4 : vector<256x128xf32>
    %6 = arith.negf %5 : vector<256x128xf32>
    %7 = math.exp %6 : vector<256x128xf32>
    %cst_5 = arith.constant 1.000000e+00 : f32
    %8 = vector.broadcast %cst_5 : f32 to vector<256x128xf32>
    %9 = arith.addf %8, %7 : vector<256x128xf32>
    %10 = arith.divf %8, %9 : vector<256x128xf32>
    %c0_6 = arith.constant 0 : index
    %c0_7 = arith.constant 0 : index
    %11 = vector.load %arg4[%c0_6, %c0_7] : memref<256x128xf32, #tpu.memory_space<vmem>>, vector<256x128xf32>
    tpu.vector_store %arg4[%c0_6, %c0_7], %10 {strides = array<i32>} : memref<256x128xf32, #tpu.memory_space<vmem>>, vector<256x128xf32>,
    return
  }
  func.func @transform_0(%arg0: i32) -> (i32, i32) {
    %c0_i32 = arith.constant 0 : i32
    %c0_i32_0 = arith.constant 0 : i32
    return %arg0, %c0_i32 : i32, i32
  }
  func.func @transform_1(%arg0: i32) -> (i32, i32) {
    %c0_i32 = arith.constant 0 : i32
    %c0_i32_0 = arith.constant 0 : i32
    %c0_i32_1 = arith.constant 0 : i32
    return %c0_i32, %c0_i32_0 : i32, i32
  }
  func.func @transform_2(%arg0: i32) -> (i32, i32) {
    %c0_i32 = arith.constant 0 : i32
    %c0_i32_0 = arith.constant 0 : i32
    %c0_i32_1 = arith.constant 0 : i32
    return %c0_i32, %c0_i32_0 : i32, i32
  }
  func.func @transform_3(%arg0: i32) -> (i32, i32) {
    %c0_i32 = arith.constant 0 : i32
    %c0_i32_0 = arith.constant 0 : i32
    return %arg0, %c0_i32 : i32, i32
  }
}

</mosaic_0001>

<bundles_post_ra>
// kernel: model_forward.19
= control target key start
LH: loop header
LB: loop body
LE: loop exit
PB: predicated region body
PF: predicated region fallthrough
CT: control target
= control target key end

     0   :  { %s1093_s12 = smov 0   ;;  %s1212_s0 = inlined_call_operand.vmem [shape: bf16[512,27], index: 0, kind: input, shape index: {}]   ;;  %s1213_s1 = inlined_call_operand.vmem [shape: bf16[27,128], index: 1, kind: input, shape index: {}]   ;;  %s1214_s2 = inlined_call_operand.vmem [shape: f32[1,128], index: 2, kind: input, shape index: {}]   ;;  %s1215_s3 = inlined_call_operand.vmem [shape: bf16[512,128], index: 3, kind: output, shape index: {}]  }
   0x1 LB: > { %s774_s13 = sadd.s32 4294967295, %s1070_s12   ;;  %p778_p0 = scmp.ge.s32.totalorder %s1070_s12, 1  ;;  %s1070_s12 = sphi %s1093_s12, %s13_s12  }
   0x2   : > { %p138_p1 = scmp.lt.s32.totalorder %s1070_s12, 3 }
   0x4   : > { %p139_p2 = pnand %p778_p0, %p138_p1 }
   0x5   : > { %s779_s16 = sshll.u32 (!%p139_p2), %s774_s13, 5 }
   0x6   : > { %142 = sbr.rel (%p139_p2) target bundleno = 254 (0xfe), region = 32  ;;  %p163_p3 = scmp.lt.s32.totalorder (!%p139_p2), %s779_s16, 63 }
   0xb   : > { %v1046_v0 = vld [vmem:[%s1213_s1 + $0x8] sm:$0x3f]   ;;  %vm358_vm0 = vcmask 1044480   ;;  %vm359_vm1 = vcmask 1045504   ;;  %v1072_v1 = vmov 65535   ;;  %v1047_v5 = vld [vmem:[%s1213_s1] sm:$0xff]  }
   0xc   : > { %v360_v2 = vsel %vm358_vm0, 4294967295, %v1072_v1  ;;  %s1217_s16 = smov (!%p163_p3, %s779_s16), 63  ;;  %vm309_vm2 = vcmask 220160   ;;  %v1152_v22 = vld [vmem:[%s1214_s2] ss:$0 sm:$0xff] }
   0xd   : > { %v361_v3 = vsel %vm359_vm1, %v360_v2, 0  ;;  %s780_s19 = sshll.u32 %s1217_s16, 2 }
   0xe   : > { %v363_v4 = vand.u32 %v1046_v0, %v361_v3  ;;  %s1115_s22 = scalar_lea.vmem %s1212_s0, %s780_s19  ;;  %s1167_s27 = scalar_lea.vmem %s1215_s3, %s780_s19 }
   0xf   : > { %v1048_v6 = vld [vmem:[%s1115_s22] sm:$0xff]   ;;  %v1050_v8 = vld [vmem:[%s1115_s22 + $0x8] sm:$0xff]   ;;  %v1052_v10 = vld [vmem:[%s1115_s22 + $0x10] sm:$0xff]  }
  0x10   : > { %997 = vmatprep.subr.bf16.mxu0 %v363_v4  ;;  %1033 = vmatprep.subr.bf16.mxu1 %v363_v4  ;;  %v1049_v7 = vld [vmem:[%s1115_s22 + $0x40] sm:$0xff]   ;;  %v1051_v9 = vld [vmem:[%s1115_s22 + $0x48] sm:$0xff]   ;;  %v1053_v11 = vld [vmem:[%s1115_s22 + $0x50] sm:$0xff]  }
  0x11   : > { %998 = vmatpush3.bf16.msra.mxu0 %v363_v4  ;;  %1035 = vmatpush3.bf16.msra.mxu1 %v363_v4  ;;  %v1054_v12 = vld [vmem:[%s1115_s22 + $0x18] sm:$0xff]   ;;  %v1056_v14 = vld [vmem:[%s1115_s22 + $0x20] sm:$0xff]   ;;  %v1058_v16 = vld [vmem:[%s1115_s22 + $0x28] sm:$0xff]  }
  0x12   : > { %999 = vmatprep.subr.bf16.mxu0 %v1047_v5  ;;  %1034 = vmatprep.subr.bf16.mxu1 %v1047_v5  ;;  %v1055_v13 = vld [vmem:[%s1115_s22 + $0x58] sm:$0xff]   ;;  %v1057_v15 = vld [vmem:[%s1115_s22 + $0x60] sm:$0xff]   ;;  %v1059_v17 = vld [vmem:[%s1115_s22 + $0x68] sm:$0xff]  }
  0x13   : > { %1001 = vmatprep.mubr.msk.bf16.mxu0 %vm309_vm2, %v1048_v6  ;;  %1017 = vmatprep.mubr.msk.bf16.mxu1 %vm309_vm2, %v1049_v7  ;;  %v1060_v18 = vld [vmem:[%s1115_s22 + $0x30] sm:$0xff]   ;;  %v1062_v20 = vld [vmem:[%s1115_s22 + $0x38] sm:$0xff]  }
  0x14   : > { %v1061_v19 = vld [vmem:[%s1115_s22 + $0x70] sm:$0xff]   ;;  %v1063_v21 = vld [vmem:[%s1115_s22 + $0x78] sm:$0xff]  }
  0x15   : > { %1000 = vmatpush3.bf16.msra.mxu0 %v1047_v5  ;;  %1036 = vmatpush3.bf16.msra.mxu1 %v1047_v5 }
  0x18   : > { %1002 = vmatmul.mubr.msk.bf16.vlgmr.msra.gmra.mxu0 %vm309_vm2, %v1050_v8  ;;  %1018 = vmatmul.mubr.msk.bf16.vlgmr.msra.gmra.mxu1 %vm309_vm2, %v1051_v9 }
  0x19   : > { %1005 = vmatprep.mubr.msk.bf16.mxu0 %vm309_vm2, %v1052_v10  ;;  %1021 = vmatprep.mubr.msk.bf16.mxu1 %vm309_vm2, %v1053_v11 }
  0x20   : > { %1006 = vmatmul.mubr.msk.bf16.gmra.mxu0 %vm309_vm2, %v1054_v12  ;;  %1022 = vmatmul.mubr.msk.bf16.gmra.mxu1 %vm309_vm2, %v1055_v13 }
  0x21   : > { %1009 = vmatprep.mubr.msk.bf16.mxu0 %vm309_vm2, %v1056_v14  ;;  %1025 = vmatprep.mubr.msk.bf16.mxu1 %vm309_vm2, %v1057_v15 }
  0x28   : > { %1010 = vmatmul.mubr.msk.bf16.gmra.mxu0 %vm309_vm2, %v1058_v16  ;;  %1026 = vmatmul.mubr.msk.bf16.gmra.mxu1 %vm309_vm2, %v1059_v17 }
  0x29   : > { %1013 = vmatprep.mubr.msk.bf16.mxu0 %vm309_vm2, %v1060_v18  ;;  %1029 = vmatprep.mubr.msk.bf16.mxu1 %vm309_vm2, %v1061_v19 }
  0x30   : > { %1014 = vmatmul.mubr.msk.bf16.gmra.mxu0 %vm309_vm2, %v1062_v20  ;;  %1030 = vmatmul.mubr.msk.bf16.gmra.mxu1 %vm309_vm2, %v1063_v21 }
  0xd8   : > { %v1003_v23 = vpop.f32.mrf.mxu0  ;;  %v1019_v24 = vpop.f32.mrf.mxu1 }
  0xd9   : > { %v408_v25 = vadd.f32 %v1003_v23, %v1152_v22  ;;  %v472_v26 = vadd.f32 %v1019_v24, %v1152_v22 }
  0xda   : > { %v399_v27 = vpop.f32.mrf.mxu0  ;;  %v463_v28 = vpop.f32.mrf.mxu1 }
  0xdb   : > { %v400_v29 = vadd.f32 %v1152_v22, %v399_v27  ;;  %v464_v30 = vadd.f32 %v1152_v22, %v463_v28  ;;  %v528_v35 = vmax.f32 %v408_v25, 0.0  ;;  %v544_v36 = vmax.f32 %v472_v26, 0.0 }
  0xdc   : > { %v1004_v31 = vpop.f32.mrf.mxu0  ;;  %v1020_v32 = vpop.f32.mrf.mxu1 }
  0xdd   : > { %v411_v33 = vadd.f32 %v1004_v31, %v1152_v22  ;;  %v475_v34 = vadd.f32 %v1020_v32, %v1152_v22  ;;  %v526_v43 = vmax.f32 %v400_v29, 0.0  ;;  %v542_v44 = vmax.f32 %v464_v30, 0.0 }
  0xde   : > { %v402_v37 = vpop.f32.mrf.mxu0  ;;  %v466_v38 = vpop.f32.mrf.mxu1 }
  0xdf   : > { %v529_v39 = vmax.f32 %v411_v33, 0.0  ;;  %v545_v40 = vmax.f32 %v475_v34, 0.0  ;;  %v403_v41 = vadd.f32 %v1152_v22, %v402_v37  ;;  %v467_v42 = vadd.f32 %v1152_v22, %v466_v38 }
  0xe0   : > { %v1007_v45 = vpop.f32.mrf.mxu0  ;;  %v1023_v46 = vpop.f32.mrf.mxu1 }
  0xe1   : > { %v892_v47 = vpack.c.bf16 %v529_v39, %v528_v35  ;;  %v932_v48 = vpack.c.bf16 %v545_v40, %v544_v36  ;;  %v527_v49 = vmax.f32 %v403_v41, 0.0  ;;  %v543_v50 = vmax.f32 %v467_v42, 0.0 }
  0xe2   : > { %v424_v51 = vadd.f32 %v1007_v45, %v1152_v22  ;;  %v488_v52 = vadd.f32 %v1023_v46, %v1152_v22  ;;  %v415_v53 = vpop.f32.mrf.mxu0  ;;  %v479_v54 = vpop.f32.mrf.mxu1 }
  0xe3   : > { %964 = vst [vmem:[%s1167_s27 + $0x8] sm:$0xff] %v892_v47   ;;  %972 = vst [vmem:[%s1167_s27 + $0x48] sm:$0xff] %v932_v48   ;;  %v887_v55 = vpack.c.bf16 %v527_v49, %v526_v43  ;;  %v927_v56 = vpack.c.bf16 %v543_v50, %v542_v44  ;;  %v416_v57 = vadd.f32 %v1152_v22, %v415_v53 }
  0xe4   : > { %v480_v58 = vadd.f32 %v1152_v22, %v479_v54  ;;  %v1008_v59 = vpop.f32.mrf.mxu0  ;;  %v1024_v60 = vpop.f32.mrf.mxu1  ;;  %v532_v63 = vmax.f32 %v424_v51, 0.0  ;;  %v548_v0 = vmax.f32 %v488_v52, 0.0 }
  0xe5   : > { %888 = vst [vmem:[%s1167_s27] sm:$0xff] %v887_v55   ;;  %971 = vst [vmem:[%s1167_s27 + $0x40] sm:$0xff] %v927_v56   ;;  %v427_v61 = vadd.f32 %v1008_v59, %v1152_v22  ;;  %v491_v62 = vadd.f32 %v1024_v60, %v1152_v22  ;;  %v530_v7 = vmax.f32 %v416_v57, 0.0 }
  0xe6   : > { %v418_v1 = vpop.f32.mrf.mxu0  ;;  %v482_v2 = vpop.f32.mrf.mxu1  ;;  %v546_v8 = vmax.f32 %v480_v58, 0.0 }
  0xe7   : > { %v533_v3 = vmax.f32 %v427_v61, 0.0  ;;  %v549_v4 = vmax.f32 %v491_v62, 0.0  ;;  %v419_v5 = vadd.f32 %v1152_v22, %v418_v1  ;;  %v483_v6 = vadd.f32 %v1152_v22, %v482_v2 }
  0xe8   : > { %v1011_v9 = vpop.f32.mrf.mxu0  ;;  %v1027_v10 = vpop.f32.mrf.mxu1 }
  0xe9   : > { %v902_v11 = vpack.c.bf16 %v533_v3, %v532_v63  ;;  %v942_v12 = vpack.c.bf16 %v549_v4, %v548_v0  ;;  %v531_v13 = vmax.f32 %v419_v5, 0.0  ;;  %v547_v14 = vmax.f32 %v483_v6, 0.0 }
  0xea   : > { %v440_v15 = vadd.f32 %v1011_v9, %v1152_v22  ;;  %v504_v16 = vadd.f32 %v1027_v10, %v1152_v22  ;;  %v431_v17 = vpop.f32.mrf.mxu0  ;;  %v495_v18 = vpop.f32.mrf.mxu1 }
  0xeb   : > { %966 = vst [vmem:[%s1167_s27 + $0x18] sm:$0xff] %v902_v11   ;;  %974 = vst [vmem:[%s1167_s27 + $0x58] sm:$0xff] %v942_v12   ;;  %v897_v19 = vpack.c.bf16 %v531_v13, %v530_v7  ;;  %v937_v20 = vpack.c.bf16 %v547_v14, %v546_v8  ;;  %v432_v21 = vadd.f32 %v1152_v22, %v431_v17 }
  0xec   : > { %v496_v23 = vadd.f32 %v1152_v22, %v495_v18  ;;  %v1012_v24 = vpop.f32.mrf.mxu0  ;;  %v1028_v25 = vpop.f32.mrf.mxu1  ;;  %v536_v28 = vmax.f32 %v440_v15, 0.0  ;;  %v552_v29 = vmax.f32 %v504_v16, 0.0 }
  0xed   : > { %965 = vst [vmem:[%s1167_s27 + $0x10] sm:$0xff] %v897_v19   ;;  %973 = vst [vmem:[%s1167_s27 + $0x50] sm:$0xff] %v937_v20   ;;  %v443_v26 = vadd.f32 %v1012_v24, %v1152_v22  ;;  %v507_v27 = vadd.f32 %v1028_v25, %v1152_v22  ;;  %v534_v36 = vmax.f32 %v432_v21, 0.0 }
  0xee   : > { %v434_v30 = vpop.f32.mrf.mxu0  ;;  %v498_v31 = vpop.f32.mrf.mxu1  ;;  %v550_v37 = vmax.f32 %v496_v23, 0.0 }
  0xef   : > { %v537_v32 = vmax.f32 %v443_v26, 0.0  ;;  %v553_v33 = vmax.f32 %v507_v27, 0.0  ;;  %v435_v34 = vadd.f32 %v1152_v22, %v434_v30  ;;  %v499_v35 = vadd.f32 %v1152_v22, %v498_v31 }
  0xf0   : > { %v1015_v38 = vpop.f32.mrf.mxu0  ;;  %v1031_v39 = vpop.f32.mrf.mxu1 }
  0xf1   : > { %v912_v40 = vpack.c.bf16 %v537_v32, %v536_v28  ;;  %v952_v41 = vpack.c.bf16 %v553_v33, %v552_v29  ;;  %v535_v42 = vmax.f32 %v435_v34, 0.0  ;;  %v551_v43 = vmax.f32 %v499_v35, 0.0 }
  0xf2   : > { %v456_v44 = vadd.f32 %v1015_v38, %v1152_v22  ;;  %v520_v45 = vadd.f32 %v1031_v39, %v1152_v22  ;;  %v447_v46 = vpop.f32.mrf.mxu0  ;;  %v511_v47 = vpop.f32.mrf.mxu1 }
  0xf3   : > { %968 = vst [vmem:[%s1167_s27 + $0x28] sm:$0xff] %v912_v40   ;;  %976 = vst [vmem:[%s1167_s27 + $0x68] sm:$0xff] %v952_v41   ;;  %v907_v48 = vpack.c.bf16 %v535_v42, %v534_v36  ;;  %v947_v49 = vpack.c.bf16 %v551_v43, %v550_v37  ;;  %v448_v50 = vadd.f32 %v1152_v22, %v447_v46 }
  0xf4   : > { %v512_v51 = vadd.f32 %v1152_v22, %v511_v47  ;;  %v1016_v52 = vpop.f32.mrf.mxu0  ;;  %v1032_v53 = vpop.f32.mrf.mxu1  ;;  %v540_v56 = vmax.f32 %v456_v44, 0.0  ;;  %v556_v57 = vmax.f32 %v520_v45, 0.0 }
  0xf5   : > { %967 = vst [vmem:[%s1167_s27 + $0x20] sm:$0xff] %v907_v48   ;;  %975 = vst [vmem:[%s1167_s27 + $0x60] sm:$0xff] %v947_v49   ;;  %v459_v54 = vadd.f32 %v1016_v52, %v1152_v22  ;;  %v523_v55 = vadd.f32 %v1032_v53, %v1152_v22  ;;  %v538_v0 = vmax.f32 %v448_v50, 0.0 }
  0xf6   : > { %v450_v58 = vpop.f32.mrf.mxu0  ;;  %v514_v59 = vpop.f32.mrf.mxu1  ;;  %v554_v1 = vmax.f32 %v512_v51, 0.0 }
  0xf7   : > { %v541_v60 = vmax.f32 %v459_v54, 0.0  ;;  %v557_v61 = vmax.f32 %v523_v55, 0.0  ;;  %v451_v62 = vadd.f32 %v1152_v22, %v450_v58  ;;  %v515_v63 = vadd.f32 %v1152_v22, %v514_v59 }
  0xf9   : > { %v922_v2 = vpack.c.bf16 %v541_v60, %v540_v56  ;;  %v962_v3 = vpack.c.bf16 %v557_v61, %v556_v57  ;;  %v539_v4 = vmax.f32 %v451_v62, 0.0  ;;  %v555_v5 = vmax.f32 %v515_v63, 0.0 }
  0xfb   : > { %970 = vst [vmem:[%s1167_s27 + $0x38] sm:$0xff] %v922_v2   ;;  %978 = vst [vmem:[%s1167_s27 + $0x78] sm:$0xff] %v962_v3   ;;  %v917_v6 = vpack.c.bf16 %v539_v4, %v538_v0  ;;  %v957_v7 = vpack.c.bf16 %v555_v5, %v554_v1 }
  0xfd   : > { %969 = vst [vmem:[%s1167_s27 + $0x30] sm:$0xff] %v917_v6   ;;  %977 = vst [vmem:[%s1167_s27 + $0x70] sm:$0xff] %v957_v7  }
  0xfe PF: > { %s13_s12 = sadd.s32 1, %s1070_s12  }
  0xff   : > { %p10_p4 = scmp.ge.s32.totalorder %s13_s12, 4  }
 0x101   :  { %12 = sbr.rel (!%p10_p4) target bundleno = 1 (0x1), region = 62 }

// kernel: model_forward.20
= control target key start
LH: loop header
LB: loop body
LE: loop exit
PB: predicated region body
PF: predicated region fallthrough
CT: control target
= control target key end

     0   :  { %s580_s12 = smov 0   ;;  %s626_s0 = inlined_call_operand.vmem [shape: bf16[128,72], index: 0, kind: input, shape index: {}]   ;;  %s627_s1 = inlined_call_operand.vmem [shape: bf16[72,128], index: 1, kind: input, shape index: {}]   ;;  %s628_s2 = inlined_call_operand.vmem [shape: f32[1,128], index: 2, kind: input, shape index: {}]   ;;  %s629_s3 = inlined_call_operand.vmem [shape: bf16[128,128], index: 3, kind: output, shape index: {}]  }
   0x1 LB: > { %s432_s13 = sadd.s32 4294967295, %s558_s12   ;;  %p436_p0 = scmp.ge.s32.totalorder %s558_s12, 1  ;;  %s558_s12 = sphi %s580_s12, %s13_s12  }
   0x2   : > { %p138_p1 = scmp.lt.s32.totalorder %s558_s12, 3 }
   0x4   : > { %p139_p2 = pnand %p436_p0, %p138_p1 }
   0x5   : > { %s437_s18 = sshll.u32 (!%p139_p2), %s432_s13, 3 }
   0x6   : > { %142 = sbr.rel (%p139_p2) target bundleno = 238 (0xee), region = 32  ;;  %p163_p3 = scmp.lt.s32.totalorder (!%p139_p2), %s437_s18, 15 }
   0xb   : > { %v543_v0 = vld [vmem:[%s627_s1 + $0x20] ss:$0 sps:$4 sm:$0xff]   ;;  %vm259_vm0 = vcmask 1043456   ;;  %v544_v1 = vld [vmem:[%s627_s1 + $0x18] sm:$0xff]   ;;  %v545_v3 = vld [vmem:[%s627_s1 + $0x10] sm:$0xff]   ;;  %s631_s18 = smov (!%p163_p3, %s437_s18), 15 }
   0xc   : > { %533 = vmatprep.subr.msk.bf16.mxu0 %vm259_vm0, %v543_v0  ;;  %534 = vmatprep.subr.msk.bf16.mxu1 %vm259_vm0, %v543_v0  ;;  %v261_v2 = vsel %vm259_vm0, %v543_v0, 0  ;;  %v546_v4 = vld [vmem:[%s627_s1 + $0x8] sm:$0xff]   ;;  %s438_s23 = sshll.u32 %s631_s18, 2  ;;  %vm246_vm1 = vcmask 588800   ;;  %v547_v7 = vld [vmem:[%s627_s1] sm:$0xff]  }
   0xd   : > { %506 = vmatpush3.bf16.msra.mxu0 %v261_v2  ;;  %528 = vmatpush3.bf16.msra.mxu1 %v261_v2  ;;  %s166_s26 = scalar_lea.vmem %s626_s0, %s438_s23  ;;  %v441_v10 = vld [vmem:[%s628_s2] ss:$0 sm:$0xff]  ;;  %s172_s6 = scalar_lea.vmem %s629_s3, %s438_s23 }
   0xe   : > { %507 = vmatprep.subr.bf16.mxu0 %v544_v1  ;;  %524 = vmatprep.subr.bf16.mxu1 %v544_v1  ;;  %v548_v5 = vld [vmem:[%s166_s26] sm:$0xff]   ;;  %v549_v6 = vld [vmem:[%s166_s26 + $0x10] sm:$0xff]   ;;  %v550_v8 = vld [vmem:[%s166_s26 + $0x8] sm:$0xff]  }
   0xf   : > { %515 = vmatprep.mubr.msk.bf16.mxu0 %vm246_vm1, %v548_v5  ;;  %519 = vmatprep.mubr.msk.bf16.mxu1 %vm246_vm1, %v549_v6  ;;  %v551_v9 = vld [vmem:[%s166_s26 + $0x18] sm:$0xff]  }
  0x11   : > { %508 = vmatpush3.bf16.msra.mxu0 %v544_v1  ;;  %529 = vmatpush3.bf16.msra.mxu1 %v544_v1 }
  0x12   : > { %509 = vmatprep.subr.bf16.mxu0 %v545_v3  ;;  %525 = vmatprep.subr.bf16.mxu1 %v545_v3 }
  0x15   : > { %510 = vmatpush3.bf16.msra.mxu0 %v545_v3  ;;  %530 = vmatpush3.bf16.msra.mxu1 %v545_v3 }
  0x16   : > { %511 = vmatprep.subr.bf16.mxu0 %v546_v4  ;;  %526 = vmatprep.subr.bf16.mxu1 %v546_v4 }
  0x19   : > { %512 = vmatpush3.bf16.msra.mxu0 %v546_v4  ;;  %531 = vmatpush3.bf16.msra.mxu1 %v546_v4 }
  0x1a   : > { %513 = vmatprep.subr.bf16.mxu0 %v547_v7  ;;  %527 = vmatprep.subr.bf16.mxu1 %v547_v7 }
  0x1d   : > { %514 = vmatpush3.bf16.msra.mxu0 %v547_v7  ;;  %532 = vmatpush3.bf16.msra.mxu1 %v547_v7 }
  0x20   : > { %516 = vmatmul.mubr.msk.bf16.vlgmr.msra.gmra.mxu0 %vm246_vm1, %v550_v8  ;;  %520 = vmatmul.mubr.msk.bf16.vlgmr.msra.gmra.mxu1 %vm246_vm1, %v551_v9 }
  0xe0   : > { %v517_v11 = vpop.f32.mrf.mxu0  ;;  %v521_v12 = vpop.f32.mrf.mxu1 }
  0xe1   : > { %v306_v13 = vadd.f32 %v517_v11, %v441_v10  ;;  %v322_v14 = vadd.f32 %v521_v12, %v441_v10 }
  0xe2   : > { %v297_v15 = vpop.f32.mrf.mxu0  ;;  %v313_v16 = vpop.f32.mrf.mxu1 }
  0xe3   : > { %v298_v17 = vadd.f32 %v441_v10, %v297_v15  ;;  %v314_v18 = vadd.f32 %v441_v10, %v313_v16  ;;  %v330_v23 = vmax.f32 %v306_v13, 0.0  ;;  %v334_v24 = vmax.f32 %v322_v14, 0.0 }
  0xe4   : > { %v518_v19 = vpop.f32.mrf.mxu0  ;;  %v522_v20 = vpop.f32.mrf.mxu1 }
  0xe5   : > { %v309_v21 = vadd.f32 %v518_v19, %v441_v10  ;;  %v325_v22 = vadd.f32 %v522_v20, %v441_v10  ;;  %v328_v31 = vmax.f32 %v298_v17, 0.0  ;;  %v332_v32 = vmax.f32 %v314_v18, 0.0 }
  0xe6   : > { %v300_v25 = vpop.f32.mrf.mxu0  ;;  %v316_v26 = vpop.f32.mrf.mxu1 }
  0xe7   : > { %v331_v27 = vmax.f32 %v309_v21, 0.0  ;;  %v335_v28 = vmax.f32 %v325_v22, 0.0  ;;  %v301_v29 = vadd.f32 %v441_v10, %v300_v25  ;;  %v317_v30 = vadd.f32 %v441_v10, %v316_v26 }
  0xe9   : > { %v481_v33 = vpack.c.bf16 %v331_v27, %v330_v23  ;;  %v491_v34 = vpack.c.bf16 %v335_v28, %v334_v24  ;;  %v329_v35 = vmax.f32 %v301_v29, 0.0  ;;  %v333_v36 = vmax.f32 %v317_v30, 0.0 }
  0xeb   : > { %493 = vst [vmem:[%s172_s6 + $0x8] sm:$0xff] %v481_v33   ;;  %495 = vst [vmem:[%s172_s6 + $0x18] sm:$0xff] %v491_v34   ;;  %v476_v37 = vpack.c.bf16 %v329_v35, %v328_v31  ;;  %v486_v38 = vpack.c.bf16 %v333_v36, %v332_v32 }
  0xed   : > { %477 = vst [vmem:[%s172_s6] sm:$0xff] %v476_v37   ;;  %494 = vst [vmem:[%s172_s6 + $0x10] sm:$0xff] %v486_v38  }
  0xee PF: > { %s13_s12 = sadd.s32 1, %s558_s12  }
  0xef   : > { %p10_p4 = scmp.ge.s32.totalorder %s13_s12, 4  }
  0xf1   :  { %12 = sbr.rel (!%p10_p4) target bundleno = 1 (0x1), region = 62 }

// kernel: model_forward.21
= control target key start
LH: loop header
LB: loop body
LE: loop exit
PB: predicated region body
PF: predicated region fallthrough
CT: control target
= control target key end

     0   :  { %s436_s12 = smov 0   ;;  %s471_s0 = inlined_call_operand.vmem [shape: bf16[32,72], index: 0, kind: input, shape index: {}]   ;;  %s472_s1 = inlined_call_operand.vmem [shape: bf16[72,128], index: 1, kind: input, shape index: {}]   ;;  %s473_s2 = inlined_call_operand.vmem [shape: f32[1,128], index: 2, kind: input, shape index: {}]   ;;  %s474_s3 = inlined_call_operand.vmem [shape: bf16[32,128], index: 3, kind: output, shape index: {}]  }
   0x1 LB: > { %s342_s13 = sadd.s32 4294967295, %s412_s12   ;;  %p346_p0 = scmp.ge.s32.totalorder %s412_s12, 1  ;;  %s412_s12 = sphi %s436_s12, %s13_s12  }
   0x2   : > { %p138_p1 = scmp.lt.s32.totalorder %s412_s12, 3 }
   0x4   : > { %p139_p2 = pnand %p346_p0, %p138_p1 }
   0x5   : > { %s347_s18 = sshll.u32 (!%p139_p2), %s342_s13, 1 }
   0x6   : > { %142 = sbr.rel (%p139_p2) target bundleno = 236 (0xec), region = 32  ;;  %p163_p3 = scmp.lt.s32.totalorder (!%p139_p2), %s347_s18, 3 }
   0xb   : > { %v400_v0 = vld [vmem:[%s472_s1 + $0x20] ss:$0 sps:$4 sm:$0xff]   ;;  %vm229_vm0 = vcmask 1043456   ;;  %v414_v1 = vmov 0.0   ;;  %vm415_vm1 = vmmov 0   ;;  %v401_v3 = vld [vmem:[%s472_s1 + $0x18] sm:$0xff]  }
   0xc   : > { %376 = vmatprep.subr.bf16.mxu0 %v414_v1  ;;  %v231_v2 = vsel %vm229_vm0, %v400_v0, 0  ;;  %386 = vmatprep.mubr.msk.bf16.mxu0 %vm415_vm1, %v414_v1  ;;  %s476_s18 = smov (!%p163_p3, %s347_s18), 3  ;;  %v402_v4 = vld [vmem:[%s472_s1 + $0x10] sm:$0xff]   ;;  %v403_v5 = vld [vmem:[%s472_s1 + $0x8] sm:$0xff]   ;;  %v404_v6 = vld [vmem:[%s472_s1] sm:$0xff]   ;;  %vm225_vm2 = vcmask 588800  }
   0xd   : > { %377 = vmatpush3.bf16.msra.mxu0 %v231_v2  ;;  %s348_s21 = sshll.u32 %s476_s18, 2  ;;  %v351_v8 = vld [vmem:[%s473_s2] ss:$0 sm:$0xff] }
   0xe   : > { %378 = vmatprep.subr.bf16.mxu0 %v414_v1  ;;  %s166_s24 = scalar_lea.vmem %s471_s0, %s348_s21  ;;  %s172_s6 = scalar_lea.vmem %s474_s3, %s348_s21 }
   0xf   : > { %v405_v7 = vld [vmem:[%s166_s24] sm:$0xff]  }
  0x11   : > { %379 = vmatpush3.bf16.msra.mxu0 %v401_v3 }
  0x12   : > { %380 = vmatprep.subr.bf16.mxu0 %v414_v1 }
  0x15   : > { %381 = vmatpush3.bf16.msra.mxu0 %v402_v4 }
  0x16   : > { %382 = vmatprep.subr.bf16.mxu0 %v414_v1 }
  0x19   : > { %383 = vmatpush3.bf16.msra.mxu0 %v403_v5 }
  0x1a   : > { %384 = vmatprep.subr.bf16.mxu0 %v414_v1 }
  0x1d   : > { %385 = vmatpush3.bf16.msra.mxu0 %v404_v6 }
  0x20   : > { %387 = vmatmul.mubr.msk.bf16.vlgmr.msra.gmra.mxu0 %vm225_vm2, %v405_v7 }
  0xe0   : > { %v267_v9 = vpop.f32.mrf.mxu0 }
  0xe1   : > { %v268_v11 = vadd.f32 %v351_v8, %v267_v9 }
  0xe2   : > { %v388_v10 = vpop.f32.mrf.mxu0 }
  0xe3   : > { %v274_v15 = vmax.f32 %v268_v11, 0.0 }
  0xe4   : > { %v270_v12 = vpop.f32.mrf.mxu0 }
  0xe5   : > { %v271_v13 = vadd.f32 %v351_v8, %v270_v12 }
  0xe6   : > { %v389_v14 = vpop.f32.mrf.mxu0 }
  0xe7   : > { %v275_v16 = vmax.f32 %v271_v13, 0.0 }
  0xe9   : > { %v368_v17 = vpack.c.bf16 %v275_v16, %v274_v15 }
  0xeb   : > { %369 = vst [vmem:[%s172_s6] sm:$0xff] %v368_v17  }
  0xec PF: > { %s13_s12 = sadd.s32 1, %s412_s12  }
  0xed   : > { %p10_p4 = scmp.ge.s32.totalorder %s13_s12, 4  }
  0xef   :  { %12 = sbr.rel (!%p10_p4) target bundleno = 1 (0x1), region = 62 }

// kernel: model_forward.22
= control target key start
LH: loop header
LB: loop body
LE: loop exit
PB: predicated region body
PF: predicated region fallthrough
CT: control target
= control target key end

     0   :  { %v177_v0 = vmov 0   ;;  %vm101_vm0 = vcmask 130048   ;;  %s234_s1 = inlined_call_operand.vmem [shape: bf16[144,128], index: 1, kind: input, shape index: {}]   ;;  %s235_s0 = inlined_call_operand.vmem [shape: bf16[8,144], index: 0, kind: input, shape index: {}]   ;;  %s236_s2 = inlined_call_operand.vmem [shape: f32[1,128], index: 2, kind: input, shape index: {}]   ;;  %s237_s3 = inlined_call_operand.vmem [shape: bf16[8,128], index: 3, kind: output, shape index: {}]  }
   0x1   :  { %105 = vmatprep.subr.bf16.mxu0 %v177_v0  ;;  %v166_v1 = vld [vmem:[%s234_s1 + $0x38] sm:$0xff]   ;;  %v167_v2 = vld [vmem:[%s234_s1 + $0x30] sm:$0xff]   ;;  %v168_v3 = vld [vmem:[%s234_s1 + $0x28] sm:$0xff]  }
   0x2   :  { %106 = vmatpush1.bf16.msra.mxu0 %v166_v1  ;;  %v15_v4 = vld [vmem:[%s235_s0] sm:$0xff]  ;;  %v170_v7 = vld [vmem:[%s234_s1 + $0x18] sm:$0xff]   ;;  %v171_v8 = vld [vmem:[%s234_s1 + $0x10] sm:$0xff]  }
   0x3   :  { %107 = vmatprep.subr.bf16.mxu0 %v177_v0  ;;  %v169_v5 = vld [vmem:[%s234_s1 + $0x20] sm:$0xff]   ;;  %v154_v6 = vcombine.high %v15_v4, %v15_v4  ;;  %v172_v9 = vld [vmem:[%s234_s1 + $0x8] sm:$0xff]   ;;  %v153_v12 = vcombine.low %v15_v4, %v15_v4 }
   0x4   :  { %v173_v10 = vld [vmem:[%s234_s1] sm:$0xff]  }
   0x5   :  { %164 = vmatprep.mubr.msk.bf16.mxu0 %vm101_vm0, %v154_v6  ;;  %v174_v11 = vld [vmem:[%s234_s1 + $0x40] sm:$0xff]  }
   0x6   :  { %108 = vmatpush1.bf16.msra.mxu0 %v167_v2  ;;  %v152_v13 = vld [vmem:[%s236_s2] ss:$0 sm:$0xff] }
   0x7   :  { %109 = vmatprep.subr.bf16.mxu0 %v177_v0 }
   0xa   :  { %110 = vmatpush1.bf16.msra.mxu0 %v168_v3 }
   0xb   :  { %111 = vmatprep.subr.bf16.mxu0 %v177_v0 }
   0xe   :  { %112 = vmatpush1.bf16.msra.mxu0 %v169_v5 }
   0xf   :  { %113 = vmatprep.subr.bf16.mxu0 %v177_v0 }
  0x12   :  { %114 = vmatpush1.bf16.msra.mxu0 %v170_v7 }
  0x13   :  { %115 = vmatprep.subr.bf16.mxu0 %v177_v0 }
  0x16   :  { %116 = vmatpush1.bf16.msra.mxu0 %v171_v8 }
  0x17   :  { %117 = vmatprep.subr.bf16.mxu0 %v177_v0 }
  0x1a   :  { %118 = vmatpush1.bf16.msra.mxu0 %v172_v9 }
  0x1b   :  { %119 = vmatprep.subr.bf16.mxu0 %v177_v0 }
  0x1e   :  { %120 = vmatpush1.bf16.msra.mxu0 %v173_v10 }
  0x1f   :  { %135 = vmatprep.subr.bf16.mxu0 %v177_v0 }
  0x22   :  { %136 = vmatpush2.bf16.msra.mxu0 %v174_v11 }
  0x25   :  { %138 = vmatmul.mubr.bf16.vlgmr.msra.gmra.mxu0 %v153_v12 }
  0xe5   :  { %v139_v14 = vpop.f32.mrf.mxu0 }
  0xe6   :  { %v140_v15 = vadd.f32 %v152_v13, %v139_v14 }
  0xe7   :  { %v141_v16 = vpop.f32.mrf.mxu0 }
  0xe8   :  { %v145_v17 = vmax.f32 %v140_v15, 0.0 }
  0xe9   :  { %v142_v18 = vpop.f32.mrf.mxu0 }
  0xea   :  { %v146_v19 = vpack.c.bf16 %v145_v17, %v145_v17 }
  0xeb   :  { %v143_v20 = vpop.f32.mrf.mxu0 }
  0xec   :  { %147 = vst [vmem:[%s237_s3] sm:$0xf] %v146_v19 }

// kernel: model_forward.27
= control target key start
LH: loop header
LB: loop body
LE: loop exit
PB: predicated region body
PF: predicated region fallthrough
CT: control target
= control target key end

     0   :  { %v238_v1 = vmov 0.0   ;;  %vm239_vm0 = vmmov 0   ;;  %v43_v3 = vlaneseq  ;;  %v240_v9 = vmov 1966171168   ;;  %s291_s0 = inlined_call_operand.vmem [shape: bf16[2,64], index: 0, kind: input, shape index: {}]   ;;  %s292_s1 = inlined_call_operand.vmem [shape: bf16[64,128], index: 1, kind: input, shape index: {}]   ;;  %s293_s2 = inlined_call_operand.vmem [shape: f32[1,128], index: 2, kind: input, shape index: {}]   ;;  %s294_s3 = inlined_call_operand.vmem [shape: bf16[2,128], index: 3, kind: output, shape index: {}]  }
   0x1   :  { %v234_v0 = vld [vmem:[%s292_s1 + $0x18] sm:$0xff]   ;;  %219 = vmatprep.subr.bf16.mxu0 %v238_v1  ;;  %v235_v2 = vld [vmem:[%s292_s1 + $0x10] sm:$0xff]   ;;  %227 = vmatprep.mubr.msk.bf16.mxu0 %vm239_vm0, %v238_v1  ;;  %v15_v4 = vld [vmem:[%s291_s0] sm:$0x1]  ;;  %v41_v10 = vunpack.c.l.s4 %v240_v9  ;;  %vm86_vm1 = vcmask 523264  }
   0x2   :  { %220 = vmatpush3.bf16.msra.mxu0 %v234_v0  ;;  %v16_v5 = vld [vmem:[%s291_s0 + $0x1] sm:$0x1]  ;;  %v17_v6 = vld [vmem:[%s291_s0 + $0x2] sm:$0x1]  ;;  %v18_v7 = vld [vmem:[%s291_s0 + $0x3] sm:$0x1] }
   0x3   :  { %221 = vmatprep.subr.bf16.mxu0 %v238_v1  ;;  %v236_v8 = vld [vmem:[%s292_s1 + $0x8] sm:$0xff]   ;;  %v44_v11 = vshrl.u32 %v43_v3, 7  ;;  %v38_v12 = vcombine.low %v15_v4, %v16_v5  ;;  %v39_v13 = vcombine.low %v17_v6, %v18_v7  ;;  %v42_v14 = vunpack.c.0.s8 %v41_v10  ;;  %v237_v15 = vld [vmem:[%s292_s1] sm:$0xff]  }
   0x4   :  { %v206_v21 = vld [vmem:[%s293_s2] ss:$0 sm:$0xff] }
   0x5   :  { %v45_v16 = vsub.s32 %v42_v14, %v44_v11 }
   0x6   :  { %222 = vmatpush3.bf16.msra.mxu0 %v235_v2 }
   0x7   :  { %223 = vmatprep.subr.bf16.mxu0 %v238_v1  ;;  %v46_v17 = vrot.slane %v38_v12, %v45_v16  ;;  %v53_v18 = vrot.slane %v39_v13, %v45_v16 }
   0x9   :  { %v54_v19 = vcombine.low %v46_v17, %v53_v18 }
   0xa   :  { %224 = vmatpush3.bf16.msra.mxu0 %v236_v8 }
   0xb   :  { %225 = vmatprep.subr.bf16.mxu0 %v238_v1  ;;  %v61_v20 = vrot.slane %v54_v19, %v45_v16 }
   0xe   :  { %226 = vmatpush3.bf16.msra.mxu0 %v237_v15 }
  0x11   :  { %228 = vmatmul.mubr.msk.bf16.vlgmr.msra.gmra.mxu0 %vm86_vm1, %v61_v20 }
  0xd1   :  { %v124_v22 = vpop.f32.mrf.mxu0 }
  0xd2   :  { %v125_v23 = vadd.f32 %v206_v21, %v124_v22 }
  0xd3   :  { %v229_v24 = vpop.f32.mrf.mxu0 }
  0xd4   :  { %v130_v25 = vmax.f32 %v125_v23, 0.0 }
  0xd5   :  { %v127_v26 = vpop.f32.mrf.mxu0 }
  0xd6   :  { %v131_v27 = vpack.c.bf16 %v130_v25, %v130_v25 }
  0xd7   :  { %v230_v28 = vpop.f32.mrf.mxu0 }
  0xd8   :  { %v139_v29 = vrot.slane %v131_v27, %v45_v16 }
  0xda   :  { %212 = vst.sshfl [vmem:[#allocation2] sm:$0x1 pattern:$0x73625140] %v139_v29 }
  0xe1   :  { %v183_v30 = vld [vmem:[#allocation2] sm:$0x1] }
  0xe2   :  { %184 = vst [vmem:[%s294_s3] sm:$0x1] %v183_v30 }

// kernel: model_forward.23
= control target key start
LH: loop header
LB: loop body
LE: loop exit
PB: predicated region body
PF: predicated region fallthrough
CT: control target
= control target key end

     0   :  { %v445_v2 = vmov 0.0   ;;  %vm446_vm0 = vmmov 0   ;;  %v71_v13 = vlaneseq  ;;  %v447_v21 = vmov 1966171168   ;;  %s540_s0 = inlined_call_operand.vmem [shape: bf16[2,288], index: 0, kind: input, shape index: {}]   ;;  %s541_s1 = inlined_call_operand.vmem [shape: bf16[288,128], index: 1, kind: input, shape index: {}]   ;;  %s542_s2 = inlined_call_operand.vmem [shape: f32[1,128], index: 2, kind: input, shape index: {}]   ;;  %s543_s3 = inlined_call_operand.vmem [shape: bf16[2,128], index: 3, kind: output, shape index: {}]  }
   0x1   :  { %v427_v0 = vld [vmem:[%s541_s1 + $0x78] sm:$0xff]   ;;  %416 = vmatprep.subr.bf16.mxu1 %v445_v2  ;;  %v429_v3 = vld [vmem:[%s541_s1 + $0x70] sm:$0xff]   ;;  %420 = vmatprep.mubr.msk.bf16.mxu1 %vm446_vm0, %v445_v2  ;;  %v431_v5 = vld [vmem:[%s541_s1 + $0x68] sm:$0xff]   ;;  %v69_v22 = vunpack.c.l.s4 %v447_v21  ;;  %vm209_vm1 = vcmask 261120  }
   0x2   :  { %v428_v1 = vld [vmem:[%s541_s1 + $0x38] sm:$0xff]   ;;  %391 = vmatprep.subr.bf16.mxu0 %v427_v0  ;;  %v430_v4 = vld [vmem:[%s541_s1 + $0x30] sm:$0xff]   ;;  %v432_v6 = vld [vmem:[%s541_s1 + $0x28] sm:$0xff]   ;;  %v72_v23 = vshrl.u32 %v71_v13, 7 }
   0x3   :  { %392 = vmatpush3.bf16.msra.mxu0 %v428_v1  ;;  %v433_v7 = vld [vmem:[%s541_s1 + $0x60] sm:$0xff]   ;;  %v435_v9 = vld [vmem:[%s541_s1 + $0x58] sm:$0xff]   ;;  %v441_v10 = vld [vmem:[%s541_s1 + $0x88] sm:$0xff]   ;;  %v70_v26 = vunpack.c.0.s8 %v69_v22 }
   0x4   :  { %393 = vmatprep.subr.bf16.mxu0 %v429_v3  ;;  %v434_v8 = vld [vmem:[%s541_s1 + $0x20] sm:$0xff]   ;;  %v436_v11 = vld [vmem:[%s541_s1 + $0x18] sm:$0xff]   ;;  %v437_v12 = vld [vmem:[%s541_s1 + $0x50] sm:$0xff]   ;;  %417 = vmatpush3.bf16.msra.mxu1 %v441_v10 }
   0x5   :  { %418 = vmatprep.subr.bf16.mxu1 %v445_v2  ;;  %v444_v14 = vld [vmem:[%s541_s1 + $0x80] sm:$0xff]   ;;  %v438_v15 = vld [vmem:[%s541_s1 + $0x10] sm:$0xff]   ;;  %v18_v19 = vld [vmem:[%s540_s0 + $0x9] sm:$0x7]  ;;  %v73_v29 = vsub.s32 %v70_v26, %v72_v23 }
   0x6   :  { %v15_v16 = vld [vmem:[%s540_s0] sm:$0x7]  ;;  %v16_v17 = vld [vmem:[%s540_s0 + $0x3] sm:$0x7]  ;;  %v17_v18 = vld [vmem:[%s540_s0 + $0x6] sm:$0x7] }
   0x7   :  { %394 = vmatpush3.bf16.msra.mxu0 %v430_v4  ;;  %v439_v20 = vld [vmem:[%s541_s1 + $0x48] sm:$0xff]   ;;  %v66_v24 = vcombine.low %v15_v16, %v16_v17  ;;  %v67_v25 = vcombine.low %v17_v18, %v18_v19  ;;  %v442_v28 = vld [vmem:[%s541_s1 + $0x40] sm:$0xff]  }
   0x8   :  { %395 = vmatprep.subr.bf16.mxu0 %v431_v5  ;;  %419 = vmatpush3.bf16.msra.mxu1 %v444_v14  ;;  %v440_v27 = vld [vmem:[%s541_s1 + $0x8] sm:$0xff]   ;;  %v443_v32 = vld [vmem:[%s541_s1] sm:$0xff]  }
   0x9   :  { %v74_v30 = vrot.slane %v66_v24, %v73_v29  ;;  %v81_v31 = vrot.slane %v67_v25, %v73_v29  ;;  %v369_v40 = vld [vmem:[%s542_s2] ss:$0 sm:$0xff] }
   0xb   :  { %396 = vmatpush3.bf16.msra.mxu0 %v432_v6  ;;  %v83_v33 = vcombine.high %v74_v30, %v81_v31  ;;  %v82_v34 = vcombine.low %v74_v30, %v81_v31 }
   0xc   :  { %397 = vmatprep.subr.bf16.mxu0 %v433_v7 }
   0xd   :  { %v97_v35 = vrot.slane %v83_v33, %v73_v29  ;;  %v90_v36 = vrot.slane %v82_v34, %v73_v29 }
   0xf   :  { %398 = vmatpush3.bf16.msra.mxu0 %v434_v8  ;;  %245 = vmatprep.mubr.bf16.mxu0 %v97_v35  ;;  %v98_v37 = vcombine.high %v90_v36, %v90_v36 }
  0x10   :  { %399 = vmatprep.subr.bf16.mxu0 %v435_v9 }
  0x11   :  { %421 = vmatmul.mubr.msk.bf16.vlgmr.msra.gmra.mxu1 %vm209_vm1, %v98_v37 }
  0x13   :  { %400 = vmatpush3.bf16.msra.mxu0 %v436_v11 }
  0x14   :  { %401 = vmatprep.subr.bf16.mxu0 %v437_v12 }
  0x17   :  { %402 = vmatpush3.bf16.msra.mxu0 %v438_v15 }
  0x18   :  { %403 = vmatprep.subr.bf16.mxu0 %v439_v20 }
  0x1b   :  { %404 = vmatpush3.bf16.msra.mxu0 %v440_v27 }
  0x1c   :  { %405 = vmatprep.subr.bf16.mxu0 %v442_v28 }
  0x1f   :  { %406 = vmatpush3.bf16.msra.mxu0 %v443_v32 }
  0x22   :  { %246 = vmatmul.mubr.bf16.vlgmr.msra.gmra.mxu0 %v90_v36 }
  0xd1   :  { %v287_v39 = vpop.f32.mrf.mxu1 }
  0xd3   :  { %v422_v42 = vpop.f32.mrf.mxu1 }
  0xd5   :  { %v290_v45 = vpop.f32.mrf.mxu1 }
  0xd7   :  { %v423_v48 = vpop.f32.mrf.mxu1 }
  0xe2   :  { %v407_v38 = vpop.f32.mrf.mxu0 }
  0xe4   :  { %v408_v41 = vpop.f32.mrf.mxu0 }
  0xe5   :  { %v409_v43 = vadd.f32 %v408_v41, %v407_v38 }
  0xe6   :  { %v410_v44 = vpop.f32.mrf.mxu0 }
  0xe7   :  { %v248_v46 = vadd.f32 %v409_v43, %v369_v40 }
  0xe8   :  { %v411_v47 = vpop.f32.mrf.mxu0 }
  0xe9   :  { %v288_v49 = vadd.f32 %v287_v39, %v248_v46 }
  0xeb   :  { %v293_v50 = vmax.f32 %v288_v49, 0.0 }
  0xed   :  { %v294_v51 = vpack.c.bf16 %v293_v50, %v293_v50 }
  0xef   :  { %v302_v52 = vrot.slane %v294_v51, %v73_v29 }
  0xf1   :  { %389 = vst.sshfl [vmem:[#allocation2] sm:$0x1 pattern:$0x73625140] %v302_v52 }
  0xf8   :  { %v346_v53 = vld [vmem:[#allocation2] sm:$0x1] }
  0xf9   :  { %347 = vst [vmem:[%s543_s3] sm:$0x1] %v346_v53 }

// kernel: model_forward.26
= control target key start
LH: loop header
LB: loop body
LE: loop exit
PB: predicated region body
PF: predicated region fallthrough
CT: control target
= control target key end

     0   :  { %v109_v0 = vmov 0.0   ;;  %vm110_vm0 = vmmov 0   ;;  %vm39_vm1 = vcmask 261120   ;;  %s146_s1 = inlined_call_operand.vmem [shape: bf16[32,128], index: 1, kind: input, shape index: {}]   ;;  %s147_s0 = inlined_call_operand.vmem [shape: bf16[8,32], index: 0, kind: input, shape index: {}]   ;;  %s148_s2 = inlined_call_operand.vmem [shape: f32[1,128], index: 2, kind: input, shape index: {}]   ;;  %s149_s3 = inlined_call_operand.vmem [shape: bf16[8,128], index: 3, kind: output, shape index: {}]  }
   0x1   :  { %97 = vmatprep.subr.bf16.mxu0 %v109_v0  ;;  %v107_v1 = vld [vmem:[%s146_s1 + $0x8] sm:$0xff]   ;;  %101 = vmatprep.mubr.msk.bf16.mxu0 %vm110_vm0, %v109_v0  ;;  %v108_v2 = vld [vmem:[%s146_s1] sm:$0xff]  }
   0x2   :  { %98 = vmatpush3.bf16.msra.mxu0 %v107_v1  ;;  %v15_v3 = vld [vmem:[%s147_s0] sm:$0xf] }
   0x3   :  { %99 = vmatprep.subr.bf16.mxu0 %v109_v0  ;;  %v90_v4 = vld [vmem:[%s148_s2] ss:$0 sm:$0xff] }
   0x6   :  { %100 = vmatpush3.bf16.msra.mxu0 %v108_v2 }
   0x9   :  { %102 = vmatmul.mubr.msk.bf16.vlgmr.msra.gmra.mxu0 %vm39_vm1, %v15_v3 }
  0xc9   :  { %v77_v5 = vpop.f32.mrf.mxu0 }
  0xca   :  { %v78_v6 = vadd.f32 %v90_v4, %v77_v5 }
  0xcb   :  { %v103_v7 = vpop.f32.mrf.mxu0 }
  0xcc   :  { %v83_v8 = vmax.f32 %v78_v6, 0.0 }
  0xcd   :  { %v80_v9 = vpop.f32.mrf.mxu0 }
  0xce   :  { %v84_v10 = vpack.c.bf16 %v83_v8, %v83_v8 }
  0xcf   :  { %v104_v11 = vpop.f32.mrf.mxu0 }
  0xd0   :  { %85 = vst [vmem:[%s149_s3] sm:$0xf] %v84_v10 }

// kernel: model_forward.28
= control target key start
LH: loop header
LB: loop body
LE: loop exit
PB: predicated region body
PF: predicated region fallthrough
CT: control target
= control target key end

     0   :  { %s295_s9 = smov 0   ;;  %s315_s0 = inlined_call_operand.vmem [shape: bf16[2,2,1,64], index: 0, kind: input, shape index: {}]   ;;  %s316_s1 = inlined_call_operand.vmem [shape: bf16[2,1,32], index: 1, kind: input, shape index: {}]   ;;  %s317_s2 = inlined_call_operand.vmem [shape: bf16[2,2,1,64], index: 2, kind: output, shape index: {}]  }
   0x1 LB: > { %s251_s10 = sadd.s32 4294967295, %s276_s9   ;;  %p255_p0 = scmp.ge.s32.totalorder %s276_s9, 1  ;;  %s276_s9 = sphi %s295_s9, %s12_s9  }
   0x2   : > { %p119_p1 = scmp.lt.s32.totalorder %s276_s9, 3 }
   0x4   : > { %p120_p2 = pnand %p255_p0, %p119_p1 }
   0x5   : > { %p142_p3 = scmp.lt.s32.totalorder (!%p120_p2), %s251_s10, 1  ;;  %s279_s14 = smov (!%p120_p2), 32  }
   0x6   : > { %123 = sbr.rel (%p120_p2) target bundleno = 142 (0x8e), region = 28 }
   0xb   : > { %v158_v0 = vlaneseq  ;;  %v278_v1 = vmov 1966171168   ;;  %s319_s10 = smov (!%p142_p3, %s251_s10), 1  ;;  %vm171_vm0 = vcmask 261120   ;;  %vm180_vm1 = vcmask 516096  }
   0xc   : > { %v156_v2 = vunpack.c.l.s4 %v278_v1  ;;  %s148_s13 = scalar_lea.vmem %s316_s1, %s319_s10  ;;  %s256_s15 = sshll.u32 %s319_s10, 1  ;;  %vm181_vm2 = vsmask.f32 256 }
   0xd   : > { %v159_v3 = vshrl.u32 %v158_v0, 7  ;;  %v153_v5 = vld [vmem:[%s148_s13] sm:$0x1]  ;;  %s145_s18 = scalar_lea.vmem %s315_s0, %s256_s15  ;;  %s152_s21 = scalar_lea.vmem %s317_s2, %s256_s15  ;;  %vm182_vm3 = vmand %vm180_vm1, %vm181_vm2 }
   0xe   : > { %v157_v4 = vunpack.c.0.s8 %v156_v2  ;;  %v176_v9 = vld [vmem:[%s145_s18] sm:$0x1]  ;;  %v177_v10 = vld [vmem:[%s145_s18 + $0x1] sm:$0x1] }
   0xf   : > { %v183_v13 = vld [vmem:[%s152_s21] sm:$0x1]  ;;  %v186_v14 = vld [vmem:[%s152_s21 + $0x1] sm:$0x1] }
  0x10   : > { %v160_v6 = vsub.s32 %v157_v4, %v159_v3 }
  0x12   : > { %v161_v7 = vrot.slane %v153_v5, %v160_v6 }
  0x14   : > { %v168_v8 = vrot.slane %v161_v7, %v160_v6 }
  0x16   : > { %169 = vrot.lane.b32.xlu0 %v168_v8, %s279_s14 }
  0x88   : > { %v170_v11 = vpop.permute.xlu0 %169 }
  0x89   : > { %v174_v12 = vsel %vm171_vm0, %v153_v5, %v170_v11 }
  0x8a   : > { %v178_v15 = vadd.bf16 %v176_v9, %v174_v12  ;;  %v179_v16 = vadd.bf16 %v177_v10, %v174_v12 }
  0x8c   : > { %v184_v17 = vsel %vm182_vm3, %v178_v15, %v183_v13  ;;  %v187_v18 = vsel %vm182_vm3, %v179_v16, %v186_v14 }
  0x8d   : > { %185 = vst [vmem:[%s152_s21] sm:$0x1] %v184_v17  ;;  %188 = vst [vmem:[%s152_s21 + $0x1] sm:$0x1] %v187_v18 }
  0x8e PF: > { %s12_s9 = sadd.s32 1, %s276_s9  }
  0x8f   : > { %p9_p4 = scmp.ge.s32.totalorder %s12_s9, 4  }
  0x91   :  { %11 = sbr.rel (!%p9_p4) target bundleno = 1 (0x1), region = 61 }

// kernel: model_forward.25
= control target key start
LH: loop header
LB: loop body
LE: loop exit
PB: predicated region body
PF: predicated region fallthrough
CT: control target
= control target key end

     0   :  { %s384_s12 = smov 0   ;;  %s407_s0 = inlined_call_operand.vmem [shape: bf16[32,16], index: 0, kind: input, shape index: {}]   ;;  %s408_s1 = inlined_call_operand.vmem [shape: bf16[16,128], index: 1, kind: input, shape index: {}]   ;;  %s409_s2 = inlined_call_operand.vmem [shape: f32[1,128], index: 2, kind: input, shape index: {}]   ;;  %s410_s3 = inlined_call_operand.vmem [shape: bf16[32,128], index: 3, kind: output, shape index: {}]  }
   0x1 LB: > { %s310_s13 = sadd.s32 4294967295, %s360_s12   ;;  %p314_p0 = scmp.ge.s32.totalorder %s360_s12, 1  ;;  %s360_s12 = sphi %s384_s12, %s13_s12  }
   0x2   : > { %p138_p1 = scmp.lt.s32.totalorder %s360_s12, 3 }
   0x4   : > { %p139_p2 = pnand %p314_p0, %p138_p1 }
   0x5   : > { %s315_s16 = sshll.u32 (!%p139_p2), %s310_s13, 1 }
   0x6   : > { %142 = sbr.rel (%p139_p2) target bundleno = 220 (0xdc), region = 32  ;;  %p163_p3 = scmp.lt.s32.totalorder (!%p139_p2), %s315_s16, 3 }
   0xb   : > { %v352_v0 = vld [vmem:[%s408_s1] sm:$0xff]   ;;  %v362_v1 = vmov 0.0   ;;  %vm363_vm0 = vmmov 0   ;;  %s412_s16 = smov (!%p163_p3, %s315_s16), 3  ;;  %vm197_vm1 = vcmask 130048  }
   0xc   : > { %336 = vmatprep.subr.bf16.mxu0 %v362_v1  ;;  %338 = vmatprep.mubr.msk.bf16.mxu0 %vm363_vm0, %v362_v1  ;;  %s316_s17 = sshll.u32 %s412_s16, 2  ;;  %v319_v3 = vld [vmem:[%s409_s2] ss:$0 sm:$0xff] }
   0xd   : > { %337 = vmatpush3.bf16.msra.mxu0 %v352_v0  ;;  %s166_s20 = scalar_lea.vmem %s407_s0, %s316_s17  ;;  %s172_s25 = scalar_lea.vmem %s410_s3, %s316_s17 }
   0xe   : > { %v353_v2 = vld [vmem:[%s166_s20] sm:$0xff]  }
  0x10   : > { %339 = vmatmul.mubr.msk.bf16.vlgmr.msra.gmra.mxu0 %vm197_vm1, %v353_v2 }
  0xd0   : > { %v235_v4 = vpop.f32.mrf.mxu0 }
  0xd1   : > { %v236_v6 = vadd.f32 %v319_v3, %v235_v4 }
  0xd2   : > { %v340_v5 = vpop.f32.mrf.mxu0 }
  0xd3   : > { %v242_v10 = vmax.f32 %v236_v6, 0.0 }
  0xd4   : > { %v238_v7 = vpop.f32.mrf.mxu0 }
  0xd5   : > { %v239_v8 = vadd.f32 %v319_v3, %v238_v7 }
  0xd6   : > { %v341_v9 = vpop.f32.mrf.mxu0 }
  0xd7   : > { %v243_v11 = vmax.f32 %v239_v8, 0.0 }
  0xd9   : > { %v332_v12 = vpack.c.bf16 %v243_v11, %v242_v10 }
  0xdb   : > { %333 = vst [vmem:[%s172_s25] sm:$0xff] %v332_v12  }
  0xdc PF: > { %s13_s12 = sadd.s32 1, %s360_s12  }
  0xdd   : > { %p10_p4 = scmp.ge.s32.totalorder %s13_s12, 4  }
  0xdf   :  { %12 = sbr.rel (!%p10_p4) target bundleno = 1 (0x1), region = 62 }

// kernel: model_forward.29
= control target key start
LH: loop header
LB: loop body
LE: loop exit
PB: predicated region body
PF: predicated region fallthrough
CT: control target
= control target key end

     0   :  { %s336_s9 = smov 0   ;;  %s356_s0 = inlined_call_operand.vmem [shape: bf16[4,2,2,64], index: 0, kind: input, shape index: {}]   ;;  %s357_s1 = inlined_call_operand.vmem [shape: bf16[4,2,32], index: 1, kind: input, shape index: {}]   ;;  %s358_s2 = inlined_call_operand.vmem [shape: bf16[4,2,2,64], index: 2, kind: output, shape index: {}]  }
   0x1 LB: > { %s289_s10 = sadd.s32 4294967295, %s317_s9   ;;  %p293_p0 = scmp.ge.s32.totalorder %s317_s9, 1  ;;  %s317_s9 = sphi %s336_s9, %s12_s9  }
   0x2   : > { %p123_p1 = scmp.lt.s32.totalorder %s317_s9, 3 }
   0x4   : > { %p124_p2 = pnand %p293_p0, %p123_p1 }
   0x5   : > { %s294_s11 = sshll.u32 (!%p124_p2), %s289_s10, 1  ;;  %s320_s15 = smov (!%p124_p2), 32  }
   0x6   : > { %127 = sbr.rel (%p124_p2) target bundleno = 145 (0x91), region = 28  ;;  %p150_p3 = scmp.lt.s32.totalorder (!%p124_p2), %s294_s11, 3 }
   0xb   : > { %v173_v0 = vlaneseq  ;;  %v319_v1 = vmov 1966171168   ;;  %s360_s11 = smov (!%p150_p3, %s294_s11), 3  ;;  %vm202_vm0 = vcmask 261120   ;;  %vm219_vm1 = vcmask 516096  }
   0xc   : > { %v171_v2 = vunpack.c.l.s4 %v319_v1  ;;  %s158_s14 = scalar_lea.vmem %s357_s1, %s360_s11  ;;  %s295_s16 = sshll.u32 %s360_s11, 1 }
   0xd   : > { %v174_v3 = vshrl.u32 %v173_v0, 7  ;;  %v166_v6 = vld [vmem:[%s158_s14] sm:$0x1]  ;;  %v167_v7 = vld [vmem:[%s158_s14 + $0x1] sm:$0x1]  ;;  %s153_s19 = scalar_lea.vmem %s356_s0, %s295_s16  ;;  %s164_s22 = scalar_lea.vmem %s358_s2, %s295_s16 }
   0xe   : > { %v172_v4 = vunpack.c.0.s8 %v171_v2  ;;  %v211_v12 = vld [vmem:[%s153_s19] sm:$0x1]  ;;  %v212_v13 = vld [vmem:[%s153_s19 + $0x1] sm:$0x1]  ;;  %v213_v18 = vld [vmem:[%s153_s19 + $0x2] sm:$0x1] }
   0xf   : > { %v214_v19 = vld [vmem:[%s153_s19 + $0x3] sm:$0x1] }
  0x10   : > { %v175_v5 = vsub.s32 %v172_v4, %v174_v3 }
  0x12   : > { %v176_v8 = vrot.slane %v166_v6, %v175_v5  ;;  %v190_v9 = vrot.slane %v167_v7, %v175_v5 }
  0x14   : > { %v183_v10 = vrot.slane %v176_v8, %v175_v5  ;;  %v197_v11 = vrot.slane %v190_v9, %v175_v5 }
  0x16   : > { %198 = vrot.lane.b32.xlu0 %v183_v10, %s320_s15 }
  0x1a   : > { %200 = vrot.lane.b32.xlu0 %v197_v11, %s320_s15 }
  0x88   : > { %v199_v14 = vpop.permute.xlu0 %198 }
  0x89   : > { %v205_v15 = vsel %vm202_vm0, %v166_v6, %v199_v14 }
  0x8a   : > { %v215_v16 = vadd.bf16 %v211_v12, %v205_v15  ;;  %v216_v17 = vadd.bf16 %v212_v13, %v205_v15 }
  0x8c   : > { %220 = vst.msk [vmem:[%s164_s22] sm:$0x1] %vm219_vm1, %v215_v16  ;;  %221 = vst.msk [vmem:[%s164_s22 + $0x1] sm:$0x1] %vm219_vm1, %v216_v17  ;;  %v201_v20 = vpop.permute.xlu0 %200 }
  0x8d   : > { %v209_v21 = vsel %vm202_vm0, %v167_v7, %v201_v20 }
  0x8e   : > { %v217_v22 = vadd.bf16 %v213_v18, %v209_v21  ;;  %v218_v23 = vadd.bf16 %v214_v19, %v209_v21 }
  0x90   : > { %222 = vst.msk [vmem:[%s164_s22 + $0x2] sm:$0x1] %vm219_vm1, %v217_v22  ;;  %223 = vst.msk [vmem:[%s164_s22 + $0x3] sm:$0x1] %vm219_vm1, %v218_v23 }
  0x91 PF: > { %s12_s9 = sadd.s32 1, %s317_s9  }
  0x92   : > { %p9_p4 = scmp.ge.s32.totalorder %s12_s9, 4  }
  0x94   :  { %11 = sbr.rel (!%p9_p4) target bundleno = 1 (0x1), region = 61 }

// kernel: model_forward.24
= control target key start
LH: loop header
LB: loop body
LE: loop exit
PB: predicated region body
PF: predicated region fallthrough
CT: control target
= control target key end

     0   :  { %s515_s12 = smov 0   ;;  %s545_s0 = inlined_call_operand.vmem [shape: bf16[128,8], index: 0, kind: input, shape index: {}]   ;;  %s546_s1 = inlined_call_operand.vmem [shape: bf16[8,128], index: 1, kind: input, shape index: {}]   ;;  %s547_s2 = inlined_call_operand.vmem [shape: f32[1,128], index: 2, kind: input, shape index: {}]   ;;  %s548_s3 = inlined_call_operand.vmem [shape: bf16[128,128], index: 3, kind: output, shape index: {}]  }
   0x1 LB: > { %s397_s13 = sadd.s32 4294967295, %s493_s12   ;;  %p401_p0 = scmp.ge.s32.totalorder %s493_s12, 1  ;;  %s493_s12 = sphi %s515_s12, %s13_s12  }
   0x2   : > { %p138_p1 = scmp.lt.s32.totalorder %s493_s12, 3 }
   0x4   : > { %p139_p2 = pnand %p401_p0, %p138_p1 }
   0x5   : > { %s402_s16 = sshll.u32 (!%p139_p2), %s397_s13, 3 }
   0x6   : > { %142 = sbr.rel (%p139_p2) target bundleno = 222 (0xde), region = 32  ;;  %p163_p3 = scmp.lt.s32.totalorder (!%p139_p2), %s402_s16, 15 }
   0xb   : > { %v183_v0 = vld [vmem:[%s546_s1] sm:$0xf]  ;;  %vm224_vm0 = vcmask 1043456   ;;  %s550_s16 = smov (!%p163_p3, %s402_s16), 15  ;;  %vm211_vm1 = vcmask 64512  }
   0xc   : > { %473 = vmatprep.subr.msk.bf16.mxu0 %vm224_vm0, %v183_v0  ;;  %474 = vmatprep.subr.msk.bf16.mxu1 %vm224_vm0, %v183_v0  ;;  %v226_v1 = vsel %vm224_vm0, %v183_v0, 0  ;;  %s403_s17 = sshll.u32 %s550_s16, 2  ;;  %v406_v7 = vld [vmem:[%s547_s2] ss:$0 sm:$0xff] }
   0xd   : > { %462 = vmatpush3.bf16.msra.mxu0 %v226_v1  ;;  %472 = vmatpush3.bf16.msra.mxu1 %v226_v1  ;;  %s166_s20 = scalar_lea.vmem %s545_s0, %s403_s17  ;;  %s172_s25 = scalar_lea.vmem %s548_s3, %s403_s17 }
   0xe   : > { %v483_v2 = vld [vmem:[%s166_s20] sm:$0xff]   ;;  %v484_v3 = vld [vmem:[%s166_s20 + $0x10] sm:$0xff]   ;;  %v485_v4 = vld [vmem:[%s166_s20 + $0x8] sm:$0xff]  }
   0xf   : > { %463 = vmatprep.mubr.msk.bf16.mxu0 %vm211_vm1, %v483_v2  ;;  %467 = vmatprep.mubr.msk.bf16.mxu1 %vm211_vm1, %v484_v3  ;;  %v486_v5 = vld [vmem:[%s166_s20 + $0x18] sm:$0xff]  }
  0x10   : > { %464 = vmatmul.mubr.msk.bf16.vlgmr.msra.gmra.mxu0 %vm211_vm1, %v485_v4  ;;  %468 = vmatmul.mubr.msk.bf16.vlgmr.msra.gmra.mxu1 %vm211_vm1, %v486_v5 }
  0xd0   : > { %v465_v6 = vpop.f32.mrf.mxu0  ;;  %v469_v8 = vpop.f32.mrf.mxu1 }
  0xd1   : > { %v271_v10 = vadd.f32 %v465_v6, %v406_v7  ;;  %v287_v12 = vadd.f32 %v469_v8, %v406_v7 }
  0xd2   : > { %v262_v9 = vpop.f32.mrf.mxu0  ;;  %v278_v11 = vpop.f32.mrf.mxu1 }
  0xd3   : > { %v263_v14 = vadd.f32 %v406_v7, %v262_v9  ;;  %v279_v17 = vadd.f32 %v406_v7, %v278_v11  ;;  %v295_v20 = vmax.f32 %v271_v10, 0.0  ;;  %v299_v24 = vmax.f32 %v287_v12, 0.0 }
  0xd4   : > { %v466_v13 = vpop.f32.mrf.mxu0  ;;  %v470_v16 = vpop.f32.mrf.mxu1 }
  0xd5   : > { %v274_v15 = vadd.f32 %v466_v13, %v406_v7  ;;  %v290_v18 = vadd.f32 %v470_v16, %v406_v7  ;;  %v293_v27 = vmax.f32 %v263_v14, 0.0  ;;  %v297_v30 = vmax.f32 %v279_v17, 0.0 }
  0xd6   : > { %v265_v19 = vpop.f32.mrf.mxu0  ;;  %v281_v23 = vpop.f32.mrf.mxu1 }
  0xd7   : > { %v296_v21 = vmax.f32 %v274_v15, 0.0  ;;  %v266_v22 = vadd.f32 %v406_v7, %v265_v19  ;;  %v300_v25 = vmax.f32 %v290_v18, 0.0  ;;  %v282_v26 = vadd.f32 %v406_v7, %v281_v23 }
  0xd9   : > { %v441_v28 = vpack.c.bf16 %v296_v21, %v295_v20  ;;  %v294_v29 = vmax.f32 %v266_v22, 0.0  ;;  %v451_v31 = vpack.c.bf16 %v300_v25, %v299_v24  ;;  %v298_v32 = vmax.f32 %v282_v26, 0.0 }
  0xdb   : > { %453 = vst [vmem:[%s172_s25 + $0x8] sm:$0xff] %v441_v28   ;;  %v436_v33 = vpack.c.bf16 %v294_v29, %v293_v27  ;;  %455 = vst [vmem:[%s172_s25 + $0x18] sm:$0xff] %v451_v31   ;;  %v446_v34 = vpack.c.bf16 %v298_v32, %v297_v30 }
  0xdd   : > { %437 = vst [vmem:[%s172_s25] sm:$0xff] %v436_v33   ;;  %454 = vst [vmem:[%s172_s25 + $0x10] sm:$0xff] %v446_v34  }
  0xde PF: > { %s13_s12 = sadd.s32 1, %s493_s12  }
  0xdf   : > { %p10_p4 = scmp.ge.s32.totalorder %s13_s12, 4  }
  0xe1   :  { %12 = sbr.rel (!%p10_p4) target bundleno = 1 (0x1), region = 62 }

// kernel: model_forward.30
= control target key start
LH: loop header
LB: loop body
LE: loop exit
PB: predicated region body
PF: predicated region fallthrough
CT: control target
= control target key end

     0   :  { %s382_s9 = smov 0   ;;  %s414_s0 = inlined_call_operand.vmem [shape: bf16[8,2,4,64], index: 0, kind: input, shape index: {}]   ;;  %s415_s1 = inlined_call_operand.vmem [shape: bf16[8,4,32], index: 1, kind: input, shape index: {}]   ;;  %s416_s2 = inlined_call_operand.vmem [shape: bf16[8,2,4,64], index: 2, kind: output, shape index: {}]  }
   0x1 LB: > { %s330_s10 = sadd.s32 4294967295, %s363_s9   ;;  %p334_p0 = scmp.ge.s32.totalorder %s363_s9, 1  ;;  %s363_s9 = sphi %s382_s9, %s12_s9  }
   0x2   : > { %p125_p1 = scmp.lt.s32.totalorder %s363_s9, 3 }
   0x4   : > { %p126_p2 = pnand %p334_p0, %p125_p1 }
   0x5   : > { %s335_s11 = sshll.u32 (!%p126_p2), %s330_s10, 2  ;;  %s366_s16 = smov (!%p126_p2), 32  }
   0x6   : > { %129 = sbr.rel (%p126_p2) target bundleno = 144 (0x90), region = 28  ;;  %p155_p3 = scmp.lt.s32.totalorder (!%p126_p2), %s335_s11, 7 }
   0xb   : > { %v185_v0 = vlaneseq  ;;  %v365_v1 = vmov 1983009808   ;;  %s418_s11 = smov (!%p155_p3, %s335_s11), 7  ;;  %vm218_vm0 = vcmask 261120   ;;  %vm251_vm1 = vcmask 517120  }
   0xc   : > { %v183_v2 = vunpack.c.l.s4 %v365_v1  ;;  %s339_s12 = sshll.u32 %s418_s11, 1  ;;  %s345_s17 = sshll.u32 %s418_s11, 2 }
   0xd   : > { %v186_v3 = vshrl.u32 %v185_v0, 7  ;;  %s165_s15 = scalar_lea.vmem %s415_s1, %s339_s12  ;;  %s159_s20 = scalar_lea.vmem %s414_s0, %s345_s17 }
   0xe   : > { %v184_v4 = vunpack.c.0.s8 %v183_v2  ;;  %v174_v6 = vld [vmem:[%s165_s15] sm:$0x3]  ;;  %v176_v7 = vld [vmem:[%s165_s15 + $0x4] sm:$0x3]  ;;  %v175_v8 = vld [vmem:[%s165_s15 + $0x2] sm:$0x3]  ;;  %s172_s23 = scalar_lea.vmem %s416_s2, %s345_s17 }
   0xf   : > { %v177_v11 = vld [vmem:[%s165_s15 + $0x6] sm:$0x3]  ;;  %v235_v14 = vld [vmem:[%s159_s20] sm:$0x3]  ;;  %v236_v15 = vld [vmem:[%s159_s20 + $0x2] sm:$0x3] }
  0x10   : > { %v187_v5 = vsub.s32 %v184_v4, %v186_v3  ;;  %v237_v21 = vld [vmem:[%s159_s20 + $0x4] sm:$0x3]  ;;  %v238_v22 = vld [vmem:[%s159_s20 + $0x6] sm:$0x3]  ;;  %v241_v23 = vld [vmem:[%s159_s20 + $0xc] sm:$0x3] }
  0x11   : > { %v242_v24 = vld [vmem:[%s159_s20 + $0xe] sm:$0x3]  ;;  %v239_v26 = vld [vmem:[%s159_s20 + $0x8] sm:$0x3]  ;;  %v240_v27 = vld [vmem:[%s159_s20 + $0xa] sm:$0x3] }
  0x12   : > { %v188_v9 = vrot.slane %v174_v6, %v187_v5  ;;  %v202_v10 = vrot.slane %v176_v7, %v187_v5  ;;  %v195_v12 = vrot.slane %v175_v8, %v187_v5  ;;  %v209_v13 = vrot.slane %v177_v11, %v187_v5 }
  0x14   : > { %210 = vrot.lane.b32.xlu0 %v188_v9, %s366_s16  ;;  %214 = vrot.lane.b32.xlu1 %v202_v10, %s366_s16 }
  0x18   : > { %212 = vrot.lane.b32.xlu0 %v195_v12, %s366_s16  ;;  %216 = vrot.lane.b32.xlu1 %v209_v13, %s366_s16 }
  0x86   : > { %v211_v16 = vpop.permute.xlu0 %210  ;;  %v215_v17 = vpop.permute.xlu1 %214 }
  0x87   : > { %v221_v18 = vsel %vm218_vm0, %v174_v6, %v211_v16  ;;  %v229_v25 = vsel %vm218_vm0, %v176_v7, %v215_v17 }
  0x88   : > { %v243_v19 = vadd.bf16 %v235_v14, %v221_v18  ;;  %v244_v20 = vadd.bf16 %v236_v15, %v221_v18  ;;  %v247_v36 = vadd.bf16 %v239_v26, %v229_v25  ;;  %v248_v37 = vadd.bf16 %v240_v27, %v229_v25 }
  0x8a   : > { %252 = vst.msk [vmem:[%s172_s23] sm:$0x3] %vm251_vm1, %v243_v19  ;;  %253 = vst.msk [vmem:[%s172_s23 + $0x2] sm:$0x3] %vm251_vm1, %v244_v20  ;;  %v213_v28 = vpop.permute.xlu0 %212  ;;  %v217_v29 = vpop.permute.xlu1 %216 }
  0x8b   : > { %v225_v30 = vsel %vm218_vm0, %v175_v8, %v213_v28  ;;  %v233_v31 = vsel %vm218_vm0, %v177_v11, %v217_v29  ;;  %256 = vst.msk [vmem:[%s172_s23 + $0x8] sm:$0x3] %vm251_vm1, %v247_v36  ;;  %257 = vst.msk [vmem:[%s172_s23 + $0xa] sm:$0x3] %vm251_vm1, %v248_v37 }
  0x8c   : > { %v245_v32 = vadd.bf16 %v237_v21, %v225_v30  ;;  %v246_v33 = vadd.bf16 %v238_v22, %v225_v30  ;;  %v249_v34 = vadd.bf16 %v241_v23, %v233_v31  ;;  %v250_v35 = vadd.bf16 %v242_v24, %v233_v31 }
  0x8e   : > { %254 = vst.msk [vmem:[%s172_s23 + $0x4] sm:$0x3] %vm251_vm1, %v245_v32  ;;  %255 = vst.msk [vmem:[%s172_s23 + $0x6] sm:$0x3] %vm251_vm1, %v246_v33 }
  0x8f   : > { %258 = vst.msk [vmem:[%s172_s23 + $0xc] sm:$0x3] %vm251_vm1, %v249_v34  ;;  %259 = vst.msk [vmem:[%s172_s23 + $0xe] sm:$0x3] %vm251_vm1, %v250_v35 }
  0x90 PF: > { %s12_s9 = sadd.s32 1, %s363_s9  }
  0x91   : > { %p9_p4 = scmp.ge.s32.totalorder %s12_s9, 4  }
  0x93   :  { %11 = sbr.rel (!%p9_p4) target bundleno = 1 (0x1), region = 61 }

// kernel: model_forward.34
= control target key start
LH: loop header
LB: loop body
LE: loop exit
PB: predicated region body
PF: predicated region fallthrough
CT: control target
= control target key end

     0   :  { %s882_s12 = smov 0   ;;  %s978_s0 = inlined_call_operand.vmem [shape: bf16[128,288], index: 0, kind: input, shape index: {}]   ;;  %s979_s1 = inlined_call_operand.vmem [shape: bf16[288,128], index: 1, kind: input, shape index: {}]   ;;  %s980_s2 = inlined_call_operand.vmem [shape: f32[1,128], index: 2, kind: input, shape index: {}]   ;;  %s981_s3 = inlined_call_operand.vmem [shape: bf16[128,128], index: 3, kind: output, shape index: {}]  }
   0x1 LB: > { %s652_s13 = sadd.s32 4294967295, %s860_s12   ;;  %p656_p0 = scmp.ge.s32.totalorder %s860_s12, 1  ;;  %s860_s12 = sphi %s882_s12, %s13_s12  }
   0x2   : > { %p139_p1 = scmp.lt.s32.totalorder %s860_s12, 3 }
   0x4   : > { %p140_p2 = pnand %p656_p0, %p139_p1 }
   0x5   : > { %s657_s16 = sshll.u32 (!%p140_p2), %s652_s13, 3 }
   0x6   : > { %143 = sbr.rel (%p140_p2) target bundleno = 270 (0x10e), region = 32  ;;  %p165_p3 = scmp.lt.s32.totalorder (!%p140_p2), %s657_s16, 15 }
   0xb   : > { %v820_v0 = vld [vmem:[%s979_s1 + $0x78] sm:$0xff]   ;;  %v822_v2 = vld [vmem:[%s979_s1 + $0x70] sm:$0xff]   ;;  %v824_v4 = vld [vmem:[%s979_s1 + $0x68] sm:$0xff]   ;;  %s983_s16 = smov (!%p165_p3, %s657_s16), 15  ;;  %vm405_vm0 = vcmask 261120  }
   0xc   : > { %v821_v1 = vld [vmem:[%s979_s1 + $0x38] sm:$0xff]   ;;  %737 = vmatprep.subr.bf16.mxu0 %v820_v0  ;;  %795 = vmatprep.subr.bf16.mxu1 %v820_v0  ;;  %v823_v3 = vld [vmem:[%s979_s1 + $0x30] sm:$0xff]   ;;  %v825_v5 = vld [vmem:[%s979_s1 + $0x28] sm:$0xff]   ;;  %s811_s29 = smul.u32 12, %s983_s16  ;;  %s660_s5 = sshll.u32 %s983_s16, 2 }
   0xd   : > { %738 = vmatpush3.bf16.msra.mxu0 %v821_v1  ;;  %803 = vmatpush3.bf16.msra.mxu1 %v821_v1  ;;  %v826_v6 = vld [vmem:[%s979_s1 + $0x60] sm:$0xff]   ;;  %v828_v8 = vld [vmem:[%s979_s1 + $0x58] sm:$0xff]   ;;  %v830_v10 = vld [vmem:[%s979_s1 + $0x50] sm:$0xff]   ;;  %s175_s8 = scalar_lea.vmem %s981_s3, %s660_s5 }
   0xe   : > { %739 = vmatprep.subr.bf16.mxu0 %v822_v2  ;;  %796 = vmatprep.subr.bf16.mxu1 %v822_v2  ;;  %v827_v7 = vld [vmem:[%s979_s1 + $0x20] sm:$0xff]   ;;  %s923_s9 = scalar_lea.vmem %s978_s0, %s811_s29  ;;  %v829_v9 = vld [vmem:[%s979_s1 + $0x18] sm:$0xff]   ;;  %v831_v13 = vld [vmem:[%s979_s1 + $0x10] sm:$0xff]  }
   0xf   : > { %v838_v11 = vld [vmem:[%s923_s9 + $0x4] ss:$12 sps:$4 sm:$0xff]   ;;  %v841_v12 = vld [vmem:[%s923_s9 + $0x4c] ss:$12 sps:$4 sm:$0xff]   ;;  %v839_v20 = vld [vmem:[%s923_s9 + $0x48] ss:$12 sps:$4 sm:$0xff]  }
  0x10   : > { %v832_v14 = vld [vmem:[%s979_s1 + $0x48] sm:$0xff]   ;;  %450 = vmatprep.mubr.bf16.mxu0 %v838_v11  ;;  %474 = vmatprep.mubr.bf16.mxu1 %v841_v12  ;;  %v834_v16 = vld [vmem:[%s979_s1 + $0x40] sm:$0xff]   ;;  %v852_v28 = vld [vmem:[%s923_s9 + $0x30] ss:$12 sps:$4 sm:$0xff]  }
  0x11   : > { %740 = vmatpush3.bf16.msra.mxu0 %v823_v3  ;;  %804 = vmatpush3.bf16.msra.mxu1 %v823_v3  ;;  %v833_v15 = vld [vmem:[%s979_s1 + $0x8] sm:$0xff]   ;;  %v835_v17 = vld [vmem:[%s979_s1] sm:$0xff]   ;;  %v853_v29 = vld [vmem:[%s923_s9 + $0x50] ss:$12 sps:$4 sm:$0xff]  }
  0x12   : > { %741 = vmatprep.subr.bf16.mxu0 %v824_v4  ;;  %797 = vmatprep.subr.bf16.mxu1 %v824_v4  ;;  %v842_v18 = vld [vmem:[%s979_s1 + $0x88] sm:$0xff]   ;;  %v843_v22 = vld [vmem:[%s979_s1 + $0x80] sm:$0xff]  }
  0x13   : > { %v836_v19 = vld [vmem:[%s923_s9] ss:$12 sps:$4 sm:$0xff]   ;;  %v844_v21 = vld [vmem:[%s923_s9 + $0x1c] ss:$12 sps:$4 sm:$0xff]   ;;  %v847_v24 = vld [vmem:[%s923_s9 + $0x18] ss:$12 sps:$4 sm:$0xff]  }
  0x14   : > { %v846_v23 = vld [vmem:[%s923_s9 + $0x8] ss:$12 sps:$4 sm:$0xff]   ;;  %v848_v25 = vld [vmem:[%s923_s9 + $0x20] ss:$12 sps:$4 sm:$0xff]   ;;  %v851_v27 = vld [vmem:[%s923_s9 + $0x38] ss:$12 sps:$4 sm:$0xff]  }
  0x15   : > { %742 = vmatpush3.bf16.msra.mxu0 %v825_v5  ;;  %805 = vmatpush3.bf16.msra.mxu1 %v825_v5  ;;  %v849_v26 = vld [vmem:[%s923_s9 + $0x34] ss:$12 sps:$4 sm:$0xff]  }
  0x16   : > { %743 = vmatprep.subr.bf16.mxu0 %v826_v6  ;;  %798 = vmatprep.subr.bf16.mxu1 %v826_v6  ;;  %v661_v41 = vld [vmem:[%s980_s2] ss:$0 sm:$0xff] }
  0x19   : > { %744 = vmatpush3.bf16.msra.mxu0 %v827_v7  ;;  %806 = vmatpush3.bf16.msra.mxu1 %v827_v7 }
  0x1a   : > { %745 = vmatprep.subr.bf16.mxu0 %v828_v8  ;;  %799 = vmatprep.subr.bf16.mxu1 %v828_v8 }
  0x1d   : > { %746 = vmatpush3.bf16.msra.mxu0 %v829_v9  ;;  %807 = vmatpush3.bf16.msra.mxu1 %v829_v9 }
  0x1e   : > { %747 = vmatprep.subr.bf16.mxu0 %v830_v10  ;;  %800 = vmatprep.subr.bf16.mxu1 %v830_v10 }
  0x21   : > { %748 = vmatpush3.bf16.msra.mxu0 %v831_v13  ;;  %808 = vmatpush3.bf16.msra.mxu1 %v831_v13 }
  0x22   : > { %749 = vmatprep.subr.bf16.mxu0 %v832_v14  ;;  %801 = vmatprep.subr.bf16.mxu1 %v832_v14 }
  0x25   : > { %750 = vmatpush3.bf16.msra.mxu0 %v833_v15  ;;  %809 = vmatpush3.bf16.msra.mxu1 %v833_v15 }
  0x26   : > { %751 = vmatprep.subr.bf16.mxu0 %v834_v16  ;;  %802 = vmatprep.subr.bf16.mxu1 %v834_v16 }
  0x29   : > { %752 = vmatpush3.bf16.msra.mxu0 %v835_v17  ;;  %810 = vmatpush3.bf16.msra.mxu1 %v835_v17 }
  0x2a   : > { %783 = vmatprep.subr.bf16.mxu1 %v842_v18 }
  0x2c   : > { %451 = vmatmul.mubr.bf16.vlgmr.msra.gmra.mxu0 %v836_v19  ;;  %475 = vmatmul.mubr.bf16.vlgmr.msra.gmra.mxu1 %v839_v20 }
  0x2d   : > { %784 = vmatpush3.bf16.msra.mxu1 %v842_v18  ;;  %458 = vmatprep.mubr.bf16.mxu0 %v844_v21 }
  0x2e   : > { %785 = vmatprep.subr.bf16.mxu1 %v843_v22  ;;  %787 = vmatprep.mubr.msk.bf16.mxu1 %vm405_vm0, %v846_v23 }
  0x31   : > { %786 = vmatpush3.bf16.msra.mxu1 %v843_v22 }
  0x34   : > { %459 = vmatmul.mubr.bf16.gmra.mxu0 %v847_v24  ;;  %788 = vmatmul.mubr.msk.bf16.vlgmr.msra.gmra.mxu1 %vm405_vm0, %v848_v25 }
  0x35   : > { %466 = vmatprep.mubr.bf16.mxu0 %v849_v26  ;;  %791 = vmatprep.mubr.msk.bf16.mxu1 %vm405_vm0, %v851_v27 }
  0x3c   : > { %467 = vmatmul.mubr.bf16.gmra.mxu0 %v852_v28  ;;  %792 = vmatmul.mubr.msk.bf16.gmra.mxu1 %vm405_vm0, %v853_v29 }
  0xec   : > { %v753_v30 = vpop.f32.mrf.mxu0  ;;  %v771_v31 = vpop.f32.mrf.mxu1 }
  0xee   : > { %v754_v32 = vpop.f32.mrf.mxu0  ;;  %v772_v33 = vpop.f32.mrf.mxu1 }
  0xef   : > { %v755_v38 = vadd.f32 %v754_v32, %v753_v30  ;;  %v773_v47 = vadd.f32 %v772_v33, %v771_v31 }
  0xf0   : > { %v756_v34 = vpop.f32.mrf.mxu0  ;;  %v774_v35 = vpop.f32.mrf.mxu1 }
  0xf1   : > { %v453_v46 = vadd.f32 %v755_v38, %v661_v41  ;;  %v477_v59 = vadd.f32 %v773_v47, %v661_v41 }
  0xf2   : > { %v757_v36 = vpop.f32.mrf.mxu0  ;;  %v775_v37 = vpop.f32.mrf.mxu1 }
  0xf3   : > { %v758_v42 = vadd.f32 %v757_v36, %v756_v34  ;;  %v776_v53 = vadd.f32 %v775_v37, %v774_v35 }
  0xf4   : > { %v759_v39 = vpop.f32.mrf.mxu0  ;;  %v789_v40 = vpop.f32.mrf.mxu1 }
  0xf5   : > { %v456_v52 = vadd.f32 %v758_v42, %v661_v41  ;;  %v480_v3 = vadd.f32 %v776_v53, %v661_v41 }
  0xf6   : > { %v760_v43 = vpop.f32.mrf.mxu0  ;;  %v517_v44 = vpop.f32.mrf.mxu1 }
  0xf7   : > { %v761_v45 = vadd.f32 %v760_v43, %v759_v39  ;;  %v518_v51 = vadd.f32 %v517_v44, %v453_v46 }
  0xf8   : > { %v762_v48 = vpop.f32.mrf.mxu0  ;;  %v790_v49 = vpop.f32.mrf.mxu1 }
  0xf9   : > { %v461_v50 = vadd.f32 %v761_v45, %v661_v41  ;;  %v548_v62 = vmax.f32 %v518_v51, 0.0 }
  0xfa   : > { %v763_v54 = vpop.f32.mrf.mxu0  ;;  %v520_v55 = vpop.f32.mrf.mxu1 }
  0xfb   : > { %v764_v56 = vadd.f32 %v763_v54, %v762_v48  ;;  %v521_v57 = vadd.f32 %v520_v55, %v456_v52  ;;  %v526_v61 = vadd.f32 %v789_v40, %v461_v50 }
  0xfc   : > { %v765_v58 = vpop.f32.mrf.mxu0  ;;  %v793_v60 = vpop.f32.mrf.mxu1 }
  0xfd   : > { %v464_v63 = vadd.f32 %v764_v56, %v661_v41  ;;  %v549_v0 = vmax.f32 %v521_v57, 0.0  ;;  %v542_v6 = vadd.f32 %v793_v60, %v477_v59  ;;  %v550_v10 = vmax.f32 %v526_v61, 0.0 }
  0xfe   : > { %v766_v1 = vpop.f32.mrf.mxu0  ;;  %v533_v2 = vpop.f32.mrf.mxu1 }
  0xff   : > { %v529_v4 = vadd.f32 %v790_v49, %v464_v63  ;;  %v717_v5 = vpack.c.bf16 %v549_v0, %v548_v62  ;;  %v767_v7 = vadd.f32 %v766_v1, %v765_v58  ;;  %v554_v16 = vmax.f32 %v542_v6, 0.0 }
 0x100   : > { %v768_v8 = vpop.f32.mrf.mxu0  ;;  %v794_v9 = vpop.f32.mrf.mxu1 }
 0x101   : > { %v551_v11 = vmax.f32 %v529_v4, 0.0  ;;  %718 = vst [vmem:[%s175_s8] sm:$0xff] %v717_v5   ;;  %v469_v12 = vadd.f32 %v767_v7, %v661_v41  ;;  %v545_v13 = vadd.f32 %v794_v9, %v480_v3 }
 0x102   : > { %v769_v14 = vpop.f32.mrf.mxu0  ;;  %v536_v22 = vpop.f32.mrf.mxu1 }
 0x103   : > { %v722_v15 = vpack.c.bf16 %v551_v11, %v550_v10  ;;  %v555_v17 = vmax.f32 %v545_v13, 0.0  ;;  %v770_v18 = vadd.f32 %v769_v14, %v768_v8  ;;  %v534_v19 = vadd.f32 %v533_v2, %v469_v12 }
 0x105   : > { %734 = vst [vmem:[%s175_s8 + $0x8] sm:$0xff] %v722_v15   ;;  %v732_v20 = vpack.c.bf16 %v555_v17, %v554_v16  ;;  %v472_v21 = vadd.f32 %v770_v18, %v661_v41  ;;  %v552_v24 = vmax.f32 %v534_v19, 0.0 }
 0x107   : > { %736 = vst [vmem:[%s175_s8 + $0x18] sm:$0xff] %v732_v20   ;;  %v537_v23 = vadd.f32 %v536_v22, %v472_v21 }
 0x109   : > { %v553_v25 = vmax.f32 %v537_v23, 0.0 }
 0x10b   : > { %v727_v26 = vpack.c.bf16 %v553_v25, %v552_v24 }
 0x10d   : > { %735 = vst [vmem:[%s175_s8 + $0x10] sm:$0xff] %v727_v26  }
 0x10e PF: > { %s13_s12 = sadd.s32 1, %s860_s12  }
 0x10f   : > { %p10_p4 = scmp.ge.s32.totalorder %s13_s12, 4  }
 0x111   :  { %12 = sbr.rel (!%p10_p4) target bundleno = 1 (0x1), region = 62 }

// kernel: model_forward.33
= control target key start
LH: loop header
LB: loop body
LE: loop exit
PB: predicated region body
PF: predicated region fallthrough
CT: control target
= control target key end

     0   :  { %s641_s12 = smov 0   ;;  %s719_s0 = inlined_call_operand.vmem [shape: bf16[32,288], index: 0, kind: input, shape index: {}]   ;;  %s720_s1 = inlined_call_operand.vmem [shape: bf16[288,128], index: 1, kind: input, shape index: {}]   ;;  %s721_s2 = inlined_call_operand.vmem [shape: f32[1,128], index: 2, kind: input, shape index: {}]   ;;  %s722_s3 = inlined_call_operand.vmem [shape: bf16[32,128], index: 3, kind: output, shape index: {}]  }
   0x1 LB: > { %s502_s13 = sadd.s32 4294967295, %s617_s12   ;;  %p506_p0 = scmp.ge.s32.totalorder %s617_s12, 1  ;;  %s617_s12 = sphi %s641_s12, %s13_s12  }
   0x2   : > { %p139_p1 = scmp.lt.s32.totalorder %s617_s12, 3 }
   0x4   : > { %p140_p2 = pnand %p506_p0, %p139_p1 }
   0x5   : > { %s507_s18 = sshll.u32 (!%p140_p2), %s502_s13, 1 }
   0x6   : > { %143 = sbr.rel (%p140_p2) target bundleno = 254 (0xfe), region = 32  ;;  %p165_p3 = scmp.lt.s32.totalorder (!%p140_p2), %s507_s18, 3 }
   0xb   : > { %v589_v0 = vld [vmem:[%s720_s1 + $0x78] sm:$0xff]   ;;  %v619_v2 = vmov 0.0   ;;  %v591_v3 = vld [vmem:[%s720_s1 + $0x70] sm:$0xff]   ;;  %v593_v5 = vld [vmem:[%s720_s1 + $0x68] sm:$0xff]   ;;  %vm620_vm0 = vmmov 0   ;;  %s724_s18 = smov (!%p165_p3, %s507_s18), 3 }
   0xc   : > { %v590_v1 = vld [vmem:[%s720_s1 + $0x38] sm:$0xff]   ;;  %570 = vmatprep.subr.bf16.mxu1 %v619_v2  ;;  %545 = vmatprep.subr.bf16.mxu0 %v589_v0  ;;  %v592_v4 = vld [vmem:[%s720_s1 + $0x30] sm:$0xff]   ;;  %v594_v6 = vld [vmem:[%s720_s1 + $0x28] sm:$0xff]   ;;  %s578_s6 = smul.u32 12, %s724_s18  ;;  %vm348_vm1 = vcmask 261120   ;;  %s510_s5 = sshll.u32 %s724_s18, 2 }
   0xd   : > { %546 = vmatpush3.bf16.msra.mxu0 %v590_v1  ;;  %574 = vmatprep.mubr.msk.bf16.mxu1 %vm620_vm0, %v619_v2  ;;  %v595_v7 = vld [vmem:[%s720_s1 + $0x60] sm:$0xff]   ;;  %v597_v9 = vld [vmem:[%s720_s1 + $0x58] sm:$0xff]   ;;  %v603_v10 = vld [vmem:[%s720_s1 + $0x88] sm:$0xff]   ;;  %s175_s8 = scalar_lea.vmem %s722_s3, %s510_s5 }
   0xe   : > { %547 = vmatprep.subr.bf16.mxu0 %v591_v3  ;;  %v596_v8 = vld [vmem:[%s720_s1 + $0x20] sm:$0xff]   ;;  %v598_v11 = vld [vmem:[%s720_s1 + $0x18] sm:$0xff]   ;;  %v599_v12 = vld [vmem:[%s720_s1 + $0x50] sm:$0xff]   ;;  %571 = vmatpush3.bf16.msra.mxu1 %v603_v10  ;;  %s169_s16 = scalar_lea.vmem %s719_s0, %s578_s6 }
   0xf   : > { %572 = vmatprep.subr.bf16.mxu1 %v619_v2  ;;  %v606_v13 = vld [vmem:[%s720_s1 + $0x80] sm:$0xff]   ;;  %v600_v14 = vld [vmem:[%s720_s1 + $0x10] sm:$0xff]   ;;  %v601_v16 = vld [vmem:[%s720_s1 + $0x48] sm:$0xff]  }
  0x10   : > { %v609_v15 = vld [vmem:[%s169_s16 + $0x4] ss:$12 sps:$4 sm:$0xff]   ;;  %v610_v17 = vld [vmem:[%s169_s16 + $0x8] ss:$12 sps:$4 sm:$0xff]   ;;  %v607_v21 = vld [vmem:[%s169_s16] ss:$12 sps:$4 sm:$0xff]  }
  0x11   : > { %548 = vmatpush3.bf16.msra.mxu0 %v592_v4  ;;  %384 = vmatprep.mubr.bf16.mxu0 %v609_v15  ;;  %v602_v18 = vld [vmem:[%s720_s1 + $0x8] sm:$0xff]   ;;  %v604_v19 = vld [vmem:[%s720_s1 + $0x40] sm:$0xff]  }
  0x12   : > { %549 = vmatprep.subr.bf16.mxu0 %v593_v5  ;;  %573 = vmatpush3.bf16.msra.mxu1 %v606_v13  ;;  %v605_v20 = vld [vmem:[%s720_s1] sm:$0xff]  }
  0x13   : > { %v511_v27 = vld [vmem:[%s721_s2] ss:$0 sm:$0xff] }
  0x15   : > { %550 = vmatpush3.bf16.msra.mxu0 %v594_v6  ;;  %575 = vmatmul.mubr.msk.bf16.vlgmr.msra.gmra.mxu1 %vm348_vm1, %v610_v17 }
  0x16   : > { %551 = vmatprep.subr.bf16.mxu0 %v595_v7 }
  0x19   : > { %552 = vmatpush3.bf16.msra.mxu0 %v596_v8 }
  0x1a   : > { %553 = vmatprep.subr.bf16.mxu0 %v597_v9 }
  0x1d   : > { %554 = vmatpush3.bf16.msra.mxu0 %v598_v11 }
  0x1e   : > { %555 = vmatprep.subr.bf16.mxu0 %v599_v12 }
  0x21   : > { %556 = vmatpush3.bf16.msra.mxu0 %v600_v14 }
  0x22   : > { %557 = vmatprep.subr.bf16.mxu0 %v601_v16 }
  0x25   : > { %558 = vmatpush3.bf16.msra.mxu0 %v602_v18 }
  0x26   : > { %559 = vmatprep.subr.bf16.mxu0 %v604_v19 }
  0x29   : > { %560 = vmatpush3.bf16.msra.mxu0 %v605_v20 }
  0x2c   : > { %385 = vmatmul.mubr.bf16.vlgmr.msra.gmra.mxu0 %v607_v21 }
  0xd5   : > { %v427_v22 = vpop.f32.mrf.mxu1 }
  0xd7   : > { %v576_v23 = vpop.f32.mrf.mxu1 }
  0xd9   : > { %v430_v24 = vpop.f32.mrf.mxu1 }
  0xdb   : > { %v577_v25 = vpop.f32.mrf.mxu1 }
  0xec   : > { %v561_v26 = vpop.f32.mrf.mxu0 }
  0xee   : > { %v562_v28 = vpop.f32.mrf.mxu0 }
  0xef   : > { %v563_v29 = vadd.f32 %v562_v28, %v561_v26 }
  0xf0   : > { %v564_v30 = vpop.f32.mrf.mxu0 }
  0xf1   : > { %v387_v31 = vadd.f32 %v563_v29, %v511_v27 }
  0xf2   : > { %v565_v32 = vpop.f32.mrf.mxu0 }
  0xf3   : > { %v566_v33 = vadd.f32 %v565_v32, %v564_v30  ;;  %v428_v34 = vadd.f32 %v427_v22, %v387_v31 }
  0xf5   : > { %v390_v35 = vadd.f32 %v566_v33, %v511_v27  ;;  %v434_v37 = vmax.f32 %v428_v34, 0.0 }
  0xf7   : > { %v431_v36 = vadd.f32 %v430_v24, %v390_v35 }
  0xf9   : > { %v435_v38 = vmax.f32 %v431_v36, 0.0 }
  0xfb   : > { %v543_v39 = vpack.c.bf16 %v435_v38, %v434_v37 }
  0xfd   : > { %544 = vst [vmem:[%s175_s8] sm:$0xff] %v543_v39  }
  0xfe PF: > { %s13_s12 = sadd.s32 1, %s617_s12  }
  0xff   : > { %p10_p4 = scmp.ge.s32.totalorder %s13_s12, 4  }
 0x101   :  { %12 = sbr.rel (!%p10_p4) target bundleno = 1 (0x1), region = 62 }

// kernel: tile.13
= control target key start
LH: loop header
LB: loop body
LE: loop exit
PB: predicated region body
PF: predicated region fallthrough
CT: control target
= control target key end

     0   :  { %s22_s0 = inlined_call_operand.vmem [shape: f32[8], index: 0, kind: input, shape index: {}]   ;;  %s23_s1 = inlined_call_operand.vmem [shape: f32[4,8], index: 1, kind: output, shape index: {}]  }
   0x1   :  { %v4_v0 = vld [vmem:[%s22_s0] ss:$0 sm:$0xff] }
   0x2   :  { %5 = vst [vmem:[%s23_s1] sm:$0xf] %v4_v0 }

// kernel: tile.14
= control target key start
LH: loop header
LB: loop body
LE: loop exit
PB: predicated region body
PF: predicated region fallthrough
CT: control target
= control target key end

     0   :  { %vm8_vm0 = vcmask 64512   ;;  %s40_s8 = smov 8   ;;  %s41_s9 = smov 16   ;;  %vm14_vm1 = vcmask 261312   ;;  %vm20_vm2 = vcmask 195712   ;;  %vm26_vm3 = vcmask 130112   ;;  %s58_s0 = inlined_call_operand.vmem [shape: f32[4,8], index: 0, kind: input, shape index: {}]   ;;  %s59_s1 = inlined_call_operand.vmem [shape: f32[32], index: 1, kind: output, shape index: {}]  }
   0x1   :  { %v5_v0 = vld [vmem:[%s58_s0] sm:$0xf]  ;;  %s39_s0 = smov 24  }
   0x2   :  { %6 = vst [vmem:[#allocation1] sm:$0xf] %v5_v0 }
   0x9   :  { %v11_v1 = vld [vmem:[#allocation1 + $0x3] sm:$0x1]   ;;  %v23_v2 = vld [vmem:[#allocation1 + $0x1] sm:$0x1]   ;;  %v7_v3 = vld [vmem:[#allocation1] sm:$0x1]  }
   0xa   :  { %12 = vrot.lane.b32.xlu0 %v11_v1, %s39_s0  ;;  %24 = vrot.lane.b32.xlu1 %v23_v2, %s40_s8  ;;  %v17_v4 = vld [vmem:[#allocation1 + $0x2] sm:$0x1]   ;;  %9 = vst.msk [vmem:[#allocation0] sm:$0x1] %vm8_vm0, %v7_v3  }
   0xe   :  { %18 = vrot.lane.b32.xlu0 %v17_v4, %s41_s9 }
  0x7c   :  { %v13_v5 = vpop.permute.xlu0 %12   ;;  %v25_v6 = vpop.permute.xlu1 %24  }
  0x7d   :  { %15 = vst.msk [vmem:[#allocation0] sm:$0x1] %vm14_vm1, %v13_v5  }
  0x80   :  { %v19_v7 = vpop.permute.xlu0 %18  }
  0x81   :  { %21 = vst.msk [vmem:[#allocation0] sm:$0x1] %vm20_vm2, %v19_v7  }
  0x82   :  { %27 = vst.msk [vmem:[#allocation0] sm:$0x1] %vm26_vm3, %v25_v6  }
  0x89   :  { %v32_v8 = vld [vmem:[#allocation0] sm:$0x1] }
  0x8a   :  { %35 = vst [vmem:[%s59_s1] sm:$0x1] %v32_v8 }

// kernel: model_forward.32
= control target key start
LH: loop header
LB: loop body
LE: loop exit
PB: predicated region body
PF: predicated region fallthrough
CT: control target
= control target key end

     0   :  { %v348_v1 = vmov 0.0   ;;  %vm349_vm0 = vmmov 0   ;;  %vm178_vm1 = vcmask 261120   ;;  %s436_s1 = inlined_call_operand.vmem [shape: bf16[288,128], index: 1, kind: input, shape index: {}]   ;;  %s437_s0 = inlined_call_operand.vmem [shape: bf16[8,288], index: 0, kind: input, shape index: {}]   ;;  %s438_s2 = inlined_call_operand.vmem [shape: f32[1,128], index: 2, kind: input, shape index: {}]   ;;  %s439_s3 = inlined_call_operand.vmem [shape: bf16[8,128], index: 3, kind: output, shape index: {}]  }
   0x1   :  { %v327_v0 = vld [vmem:[%s436_s1 + $0x78] sm:$0xff]   ;;  %317 = vmatprep.subr.bf16.mxu1 %v348_v1  ;;  %321 = vmatprep.mubr.msk.bf16.mxu1 %vm349_vm0, %v348_v1  ;;  %v329_v3 = vld [vmem:[%s436_s1 + $0x70] sm:$0xff]   ;;  %v331_v5 = vld [vmem:[%s436_s1 + $0x68] sm:$0xff]  }
   0x2   :  { %v328_v2 = vld [vmem:[%s436_s1 + $0x38] sm:$0xff]   ;;  %292 = vmatprep.subr.bf16.mxu0 %v327_v0  ;;  %v330_v4 = vld [vmem:[%s436_s1 + $0x30] sm:$0xff]   ;;  %v332_v6 = vld [vmem:[%s436_s1 + $0x28] sm:$0xff]  }
   0x3   :  { %293 = vmatpush3.bf16.msra.mxu0 %v328_v2  ;;  %v333_v7 = vld [vmem:[%s436_s1 + $0x60] sm:$0xff]   ;;  %v335_v9 = vld [vmem:[%s436_s1 + $0x58] sm:$0xff]   ;;  %v341_v10 = vld [vmem:[%s436_s1 + $0x88] sm:$0xff]  }
   0x4   :  { %294 = vmatprep.subr.bf16.mxu0 %v329_v3  ;;  %v334_v8 = vld [vmem:[%s436_s1 + $0x20] sm:$0xff]   ;;  %v336_v11 = vld [vmem:[%s436_s1 + $0x18] sm:$0xff]   ;;  %v337_v12 = vld [vmem:[%s436_s1 + $0x50] sm:$0xff]   ;;  %318 = vmatpush3.bf16.msra.mxu1 %v341_v10 }
   0x5   :  { %319 = vmatprep.subr.bf16.mxu1 %v348_v1  ;;  %v344_v13 = vld [vmem:[%s436_s1 + $0x80] sm:$0xff]   ;;  %v338_v15 = vld [vmem:[%s436_s1 + $0x10] sm:$0xff]   ;;  %v347_v17 = vld [vmem:[%s437_s0 + $0x8] ss:$0 sps:$4 sm:$0xff]  }
   0x6   :  { %v15_v14 = vld [vmem:[%s437_s0] sm:$0xff]  ;;  %v339_v18 = vld [vmem:[%s436_s1 + $0x48] sm:$0xff]  }
   0x7   :  { %295 = vmatpush3.bf16.msra.mxu0 %v330_v4  ;;  %v271_v16 = vcombine.high %v15_v14, %v15_v14  ;;  %v340_v19 = vld [vmem:[%s436_s1 + $0x8] sm:$0xff]   ;;  %v342_v20 = vld [vmem:[%s436_s1 + $0x40] sm:$0xff]   ;;  %v270_v22 = vcombine.low %v15_v14, %v15_v14 }
   0x8   :  { %296 = vmatprep.subr.bf16.mxu0 %v331_v5  ;;  %320 = vmatpush3.bf16.msra.mxu1 %v344_v13  ;;  %v343_v21 = vld [vmem:[%s436_s1] sm:$0xff]  }
   0x9   :  { %214 = vmatprep.mubr.bf16.mxu0 %v271_v16  ;;  %v269_v28 = vld [vmem:[%s438_s2] ss:$0 sm:$0xff] }
   0xb   :  { %297 = vmatpush3.bf16.msra.mxu0 %v332_v6  ;;  %322 = vmatmul.mubr.msk.bf16.vlgmr.msra.gmra.mxu1 %vm178_vm1, %v347_v17 }
   0xc   :  { %298 = vmatprep.subr.bf16.mxu0 %v333_v7 }
   0xf   :  { %299 = vmatpush3.bf16.msra.mxu0 %v334_v8 }
  0x10   :  { %300 = vmatprep.subr.bf16.mxu0 %v335_v9 }
  0x13   :  { %301 = vmatpush3.bf16.msra.mxu0 %v336_v11 }
  0x14   :  { %302 = vmatprep.subr.bf16.mxu0 %v337_v12 }
  0x17   :  { %303 = vmatpush3.bf16.msra.mxu0 %v338_v15 }
  0x18   :  { %304 = vmatprep.subr.bf16.mxu0 %v339_v18 }
  0x1b   :  { %305 = vmatpush3.bf16.msra.mxu0 %v340_v19 }
  0x1c   :  { %306 = vmatprep.subr.bf16.mxu0 %v342_v20 }
  0x1f   :  { %307 = vmatpush3.bf16.msra.mxu0 %v343_v21 }
  0x22   :  { %215 = vmatmul.mubr.bf16.vlgmr.msra.gmra.mxu0 %v270_v22 }
  0xcb   :  { %v256_v23 = vpop.f32.mrf.mxu1 }
  0xcd   :  { %v323_v24 = vpop.f32.mrf.mxu1 }
  0xcf   :  { %v259_v25 = vpop.f32.mrf.mxu1 }
  0xd1   :  { %v324_v26 = vpop.f32.mrf.mxu1 }
  0xe2   :  { %v308_v27 = vpop.f32.mrf.mxu0 }
  0xe4   :  { %v309_v29 = vpop.f32.mrf.mxu0 }
  0xe5   :  { %v310_v30 = vadd.f32 %v309_v29, %v308_v27 }
  0xe6   :  { %v311_v31 = vpop.f32.mrf.mxu0 }
  0xe7   :  { %v217_v32 = vadd.f32 %v310_v30, %v269_v28 }
  0xe8   :  { %v312_v33 = vpop.f32.mrf.mxu0 }
  0xe9   :  { %v257_v34 = vadd.f32 %v256_v23, %v217_v32 }
  0xeb   :  { %v262_v35 = vmax.f32 %v257_v34, 0.0 }
  0xed   :  { %v263_v36 = vpack.c.bf16 %v262_v35, %v262_v35 }
  0xef   :  { %264 = vst [vmem:[%s439_s3] sm:$0xf] %v263_v36 }

// kernel: model_forward.37
= control target key start
LH: loop header
LB: loop body
LE: loop exit
PB: predicated region body
PF: predicated region fallthrough
CT: control target
= control target key end

     0   :  { %s1100_s12 = smov 0   ;;  %s1229_s0 = inlined_call_operand.vmem [shape: bf16[512,8], index: 0, kind: input, shape index: {}]   ;;  %s1230_s1 = inlined_call_operand.vmem [shape: bf16[8,128], index: 1, kind: input, shape index: {}]   ;;  %s1231_s2 = inlined_call_operand.vmem [shape: f32[1,128], index: 2, kind: input, shape index: {}]   ;;  %s1232_s3 = inlined_call_operand.vmem [shape: f32[512,128], index: 3, kind: output, shape index: {}]  }
   0x1 LB: > { %s789_s13 = sadd.s32 4294967295, %s1078_s12   ;;  %p793_p0 = scmp.ge.s32.totalorder %s1078_s12, 1  ;;  %s1078_s12 = sphi %s1100_s12, %s13_s12  }
   0x2   : > { %p138_p1 = scmp.lt.s32.totalorder %s1078_s12, 3 }
   0x4   : > { %p139_p2 = pnand %p793_p0, %p138_p1 }
   0x5   : > { %s794_s16 = sshll.u32 (!%p139_p2), %s789_s13, 5 }
   0x6   : > { %142 = sbr.rel (%p139_p2) target bundleno = 291 (0x123), region = 32  ;;  %p163_p3 = scmp.lt.s32.totalorder (!%p139_p2), %s794_s16, 63 }
   0xb   : > { %v207_v0 = vld [vmem:[%s1230_s1] sm:$0xf]  ;;  %vm344_vm0 = vcmask 1043456   ;;  %s1234_s16 = smov (!%p163_p3, %s794_s16), 63  ;;  %vm295_vm1 = vcmask 64512  }
   0xc   : > { %918 = vmatprep.subr.msk.bf16.mxu0 %vm344_vm0, %v207_v0  ;;  %919 = vmatprep.subr.msk.bf16.mxu1 %vm344_vm0, %v207_v0  ;;  %v346_v1 = vsel %vm344_vm0, %v207_v0, 0  ;;  %s795_s17 = sshll.u32 %s1234_s16, 2  ;;  %v1154_v18 = vld [vmem:[%s1231_s2] ss:$0 sm:$0xff]  ;;  %s797_s23 = sshll.u32 %s1234_s16, 3 }
   0xd   : > { %883 = vmatpush3.bf16.msra.mxu0 %v346_v1  ;;  %917 = vmatpush3.bf16.msra.mxu1 %v346_v1  ;;  %s1117_s20 = scalar_lea.vmem %s1229_s0, %s795_s17  ;;  %s1179_s26 = scalar_lea.vmem %s1232_s3, %s797_s23 }
   0xe   : > { %v928_v2 = vld [vmem:[%s1117_s20] sm:$0xff]   ;;  %v930_v4 = vld [vmem:[%s1117_s20 + $0x8] sm:$0xff]   ;;  %v932_v6 = vld [vmem:[%s1117_s20 + $0x10] sm:$0xff]  }
   0xf   : > { %v929_v3 = vld [vmem:[%s1117_s20 + $0x40] sm:$0xff]   ;;  %884 = vmatprep.mubr.msk.bf16.mxu0 %vm295_vm1, %v928_v2  ;;  %v931_v5 = vld [vmem:[%s1117_s20 + $0x48] sm:$0xff]   ;;  %v933_v7 = vld [vmem:[%s1117_s20 + $0x50] sm:$0xff]  }
  0x10   : > { %900 = vmatprep.mubr.msk.bf16.mxu1 %vm295_vm1, %v929_v3  ;;  %885 = vmatmul.mubr.msk.bf16.vlgmr.msra.gmra.mxu0 %vm295_vm1, %v930_v4  ;;  %v934_v8 = vld [vmem:[%s1117_s20 + $0x18] sm:$0xff]   ;;  %v936_v10 = vld [vmem:[%s1117_s20 + $0x20] sm:$0xff]   ;;  %v938_v12 = vld [vmem:[%s1117_s20 + $0x28] sm:$0xff]  }
  0x11   : > { %901 = vmatmul.mubr.msk.bf16.vlgmr.msra.gmra.mxu1 %vm295_vm1, %v931_v5  ;;  %888 = vmatprep.mubr.msk.bf16.mxu0 %vm295_vm1, %v932_v6  ;;  %v935_v9 = vld [vmem:[%s1117_s20 + $0x58] sm:$0xff]   ;;  %v937_v11 = vld [vmem:[%s1117_s20 + $0x60] sm:$0xff]   ;;  %v939_v13 = vld [vmem:[%s1117_s20 + $0x68] sm:$0xff]  }
  0x12   : > { %904 = vmatprep.mubr.msk.bf16.mxu1 %vm295_vm1, %v933_v7  ;;  %v940_v14 = vld [vmem:[%s1117_s20 + $0x30] sm:$0xff]   ;;  %v942_v16 = vld [vmem:[%s1117_s20 + $0x38] sm:$0xff]  }
  0x13   : > { %v941_v15 = vld [vmem:[%s1117_s20 + $0x70] sm:$0xff]   ;;  %v943_v17 = vld [vmem:[%s1117_s20 + $0x78] sm:$0xff]  }
  0x18   : > { %889 = vmatmul.mubr.msk.bf16.gmra.mxu0 %vm295_vm1, %v934_v8 }
  0x19   : > { %905 = vmatmul.mubr.msk.bf16.gmra.mxu1 %vm295_vm1, %v935_v9  ;;  %892 = vmatprep.mubr.msk.bf16.mxu0 %vm295_vm1, %v936_v10 }
  0x1a   : > { %908 = vmatprep.mubr.msk.bf16.mxu1 %vm295_vm1, %v937_v11 }
  0x20   : > { %893 = vmatmul.mubr.msk.bf16.gmra.mxu0 %vm295_vm1, %v938_v12 }
  0x21   : > { %909 = vmatmul.mubr.msk.bf16.gmra.mxu1 %vm295_vm1, %v939_v13  ;;  %896 = vmatprep.mubr.msk.bf16.mxu0 %vm295_vm1, %v940_v14 }
  0x22   : > { %912 = vmatprep.mubr.msk.bf16.mxu1 %vm295_vm1, %v941_v15 }
  0x28   : > { %897 = vmatmul.mubr.msk.bf16.gmra.mxu0 %vm295_vm1, %v942_v16 }
  0x29   : > { %913 = vmatmul.mubr.msk.bf16.gmra.mxu1 %vm295_vm1, %v943_v17 }
  0xd0   : > { %v886_v19 = vpop.f32.mrf.mxu0 }
  0xd1   : > { %v391_v20 = vadd.f32 %v886_v19, %v1154_v18  ;;  %v902_v21 = vpop.f32.mrf.mxu1 }
  0xd2   : > { %v455_v22 = vadd.f32 %v902_v21, %v1154_v18  ;;  %v382_v23 = vpop.f32.mrf.mxu0 }
  0xd3   : > { %v833_v24 = vmul.f32 -1.442695, %v391_v20  ;;  %v383_v25 = vadd.f32 %v1154_v18, %v382_v23  ;;  %v446_v26 = vpop.f32.mrf.mxu1 }
  0xd4   : > { %v849_v27 = vmul.f32 -1.442695, %v455_v22  ;;  %v447_v28 = vadd.f32 %v1154_v18, %v446_v26  ;;  %v887_v29 = vpop.f32.mrf.mxu0 }
  0xd5   : > { %944 = vpow2.f32 %v833_v24  ;;  %v831_v30 = vmul.f32 -1.442695, %v383_v25  ;;  %v394_v31 = vadd.f32 %v887_v29, %v1154_v18  ;;  %v903_v32 = vpop.f32.mrf.mxu1 }
  0xd6   : > { %946 = vpow2.f32 %v849_v27  ;;  %v847_v33 = vmul.f32 -1.442695, %v447_v28  ;;  %v458_v34 = vadd.f32 %v903_v32, %v1154_v18  ;;  %v385_v35 = vpop.f32.mrf.mxu0 }
  0xd7   : > { %948 = vpow2.f32 %v831_v30  ;;  %v834_v36 = vmul.f32 -1.442695, %v394_v31  ;;  %v386_v37 = vadd.f32 %v1154_v18, %v385_v35  ;;  %v449_v38 = vpop.f32.mrf.mxu1 }
  0xd8   : > { %950 = vpow2.f32 %v847_v33  ;;  %v850_v39 = vmul.f32 -1.442695, %v458_v34  ;;  %v450_v40 = vadd.f32 %v1154_v18, %v449_v38  ;;  %v890_v41 = vpop.f32.mrf.mxu0 }
  0xd9   : > { %952 = vpow2.f32 %v834_v36  ;;  %v832_v42 = vmul.f32 -1.442695, %v386_v37  ;;  %v407_v43 = vadd.f32 %v890_v41, %v1154_v18  ;;  %v906_v44 = vpop.f32.mrf.mxu1 }
  0xda   : > { %954 = vpow2.f32 %v850_v39  ;;  %v848_v45 = vmul.f32 -1.442695, %v450_v40  ;;  %v471_v46 = vadd.f32 %v906_v44, %v1154_v18  ;;  %v398_v47 = vpop.f32.mrf.mxu0 }
  0xdb   : > { %956 = vpow2.f32 %v832_v42  ;;  %v837_v48 = vmul.f32 -1.442695, %v407_v43  ;;  %v399_v49 = vadd.f32 %v1154_v18, %v398_v47  ;;  %v462_v50 = vpop.f32.mrf.mxu1 }
  0xdc   : > { %958 = vpow2.f32 %v848_v45  ;;  %v853_v51 = vmul.f32 -1.442695, %v471_v46  ;;  %v463_v52 = vadd.f32 %v1154_v18, %v462_v50  ;;  %v891_v53 = vpop.f32.mrf.mxu0 }
  0xdd   : > { %960 = vpow2.f32 %v837_v48  ;;  %v835_v54 = vmul.f32 -1.442695, %v399_v49  ;;  %v410_v55 = vadd.f32 %v891_v53, %v1154_v18  ;;  %v907_v56 = vpop.f32.mrf.mxu1 }
  0xde   : > { %962 = vpow2.f32 %v853_v51  ;;  %v851_v57 = vmul.f32 -1.442695, %v463_v52  ;;  %v474_v58 = vadd.f32 %v907_v56, %v1154_v18  ;;  %v401_v59 = vpop.f32.mrf.mxu0 }
  0xdf   : > { %964 = vpow2.f32 %v835_v54  ;;  %v838_v60 = vmul.f32 -1.442695, %v410_v55  ;;  %v402_v61 = vadd.f32 %v1154_v18, %v401_v59  ;;  %v465_v62 = vpop.f32.mrf.mxu1 }
  0xe0   : > { %966 = vpow2.f32 %v851_v57  ;;  %v854_v63 = vmul.f32 -1.442695, %v474_v58  ;;  %v466_v0 = vadd.f32 %v1154_v18, %v465_v62  ;;  %v894_v1 = vpop.f32.mrf.mxu0 }
  0xe1   : > { %968 = vpow2.f32 %v838_v60  ;;  %v836_v2 = vmul.f32 -1.442695, %v402_v61  ;;  %v910_v3 = vpop.f32.mrf.mxu1  ;;  %v423_v36 = vadd.f32 %v894_v1, %v1154_v18 }
  0xe2   : > { %v945_v4 = vpop.eup %944  ;;  %970 = vpow2.f32 %v854_v63  ;;  %v852_v5 = vmul.f32 -1.442695, %v466_v0  ;;  %v414_v6 = vpop.f32.mrf.mxu0  ;;  %v487_v40 = vadd.f32 %v910_v3, %v1154_v18 }
  0xe3   : > { %v947_v7 = vpop.eup %946  ;;  %v607_v8 = vadd.f32 1.0, %v945_v4  ;;  %972 = vpow2.f32 %v836_v2  ;;  %v478_v9 = vpop.f32.mrf.mxu1  ;;  %v415_v43 = vadd.f32 %v1154_v18, %v414_v6  ;;  %v841_v50 = vmul.f32 -1.442695, %v423_v36 }
  0xe4   : > { %v949_v10 = vpop.eup %948  ;;  %v623_v11 = vadd.f32 1.0, %v947_v7  ;;  %974 = vpow2.f32 %v852_v5  ;;  %v895_v12 = vpop.f32.mrf.mxu0  ;;  %v479_v46 = vadd.f32 %v1154_v18, %v478_v9  ;;  %v857_v55 = vmul.f32 -1.442695, %v487_v40 }
  0xe5   : > { %v951_v13 = vpop.eup %950  ;;  %976 = vrcp.f32 %v607_v8  ;;  %v605_v14 = vadd.f32 1.0, %v949_v10  ;;  %v911_v15 = vpop.f32.mrf.mxu1  ;;  %v426_v51 = vadd.f32 %v895_v12, %v1154_v18  ;;  %v839_v58 = vmul.f32 -1.442695, %v415_v43 }
  0xe6   : > { %v953_v16 = vpop.eup %952  ;;  %978 = vrcp.f32 %v623_v11  ;;  %v621_v17 = vadd.f32 1.0, %v951_v13  ;;  %v417_v23 = vpop.f32.mrf.mxu0  ;;  %v490_v56 = vadd.f32 %v911_v15, %v1154_v18  ;;  %v855_v61 = vmul.f32 -1.442695, %v479_v46 }
  0xe7   : > { %v955_v19 = vpop.eup %954  ;;  %980 = vrcp.f32 %v605_v14  ;;  %v608_v20 = vadd.f32 1.0, %v953_v16  ;;  %v481_v26 = vpop.f32.mrf.mxu1  ;;  %v418_v59 = vadd.f32 %v1154_v18, %v417_v23  ;;  %v842_v1 = vmul.f32 -1.442695, %v426_v51 }
  0xe8   : > { %v957_v21 = vpop.eup %956  ;;  %982 = vrcp.f32 %v621_v17  ;;  %v624_v22 = vadd.f32 1.0, %v955_v19  ;;  %v898_v33 = vpop.f32.mrf.mxu0  ;;  %v482_v62 = vadd.f32 %v1154_v18, %v481_v26  ;;  %v858_v5 = vmul.f32 -1.442695, %v490_v56 }
  0xe9   : > { %v959_v24 = vpop.eup %958  ;;  %984 = vrcp.f32 %v608_v20  ;;  %v606_v25 = vadd.f32 1.0, %v957_v21  ;;  %v914_v37 = vpop.f32.mrf.mxu1  ;;  %v439_v2 = vadd.f32 %v898_v33, %v1154_v18  ;;  %v840_v8 = vmul.f32 -1.442695, %v418_v59 }
  0xea   : > { %v961_v27 = vpop.eup %960  ;;  %986 = vrcp.f32 %v624_v22  ;;  %v622_v28 = vadd.f32 1.0, %v959_v24  ;;  %v430_v47 = vpop.f32.mrf.mxu0  ;;  %v503_v6 = vadd.f32 %v914_v37, %v1154_v18  ;;  %v856_v11 = vmul.f32 -1.442695, %v482_v62 }
  0xeb   : > { %v963_v29 = vpop.eup %962  ;;  %988 = vrcp.f32 %v606_v25  ;;  %v611_v30 = vadd.f32 1.0, %v961_v27  ;;  %v494_v52 = vpop.f32.mrf.mxu1  ;;  %v431_v9 = vadd.f32 %v1154_v18, %v430_v47  ;;  %v845_v15 = vmul.f32 -1.442695, %v439_v2 }
  0xec   : > { %v965_v31 = vpop.eup %964  ;;  %990 = vrcp.f32 %v622_v28  ;;  %v627_v32 = vadd.f32 1.0, %v963_v29  ;;  %v899_v63 = vpop.f32.mrf.mxu0  ;;  %v495_v12 = vadd.f32 %v1154_v18, %v494_v52  ;;  %v861_v20 = vmul.f32 -1.442695, %v503_v6 }
  0xed   : > { %v967_v34 = vpop.eup %966  ;;  %992 = vrcp.f32 %v611_v30  ;;  %v609_v35 = vadd.f32 1.0, %v965_v31  ;;  %v915_v3 = vpop.f32.mrf.mxu1  ;;  %v442_v16 = vadd.f32 %v899_v63, %v1154_v18  ;;  %v843_v23 = vmul.f32 -1.442695, %v431_v9 }
  0xee   : > { %v969_v38 = vpop.eup %968  ;;  %994 = vrcp.f32 %v627_v32  ;;  %v625_v39 = vadd.f32 1.0, %v967_v34  ;;  %v433_v13 = vpop.f32.mrf.mxu0  ;;  %v506_v21 = vadd.f32 %v915_v3, %v1154_v18  ;;  %v859_v26 = vmul.f32 -1.442695, %v495_v12 }
  0xef   : > { %v971_v41 = vpop.eup %970  ;;  %996 = vrcp.f32 %v609_v35  ;;  %v612_v42 = vadd.f32 1.0, %v969_v38  ;;  %v497_v17 = vpop.f32.mrf.mxu1  ;;  %v434_v24 = vadd.f32 %v1154_v18, %v433_v13  ;;  %v846_v29 = vmul.f32 -1.442695, %v442_v16 }
  0xf0   : > { %v973_v44 = vpop.eup %972  ;;  %998 = vrcp.f32 %v625_v39  ;;  %v628_v45 = vadd.f32 1.0, %v971_v41  ;;  %v498_v27 = vadd.f32 %v1154_v18, %v497_v17  ;;  %v862_v31 = vmul.f32 -1.442695, %v506_v21 }
  0xf1   : > { %v975_v48 = vpop.eup %974  ;;  %1000 = vrcp.f32 %v612_v42  ;;  %v610_v49 = vadd.f32 1.0, %v973_v44  ;;  %v844_v33 = vmul.f32 -1.442695, %v434_v24 }
  0xf2   : > { %v977_v53 = vpop.eup %976  ;;  %1002 = vrcp.f32 %v628_v45  ;;  %v626_v54 = vadd.f32 1.0, %v975_v48  ;;  %v860_v35 = vmul.f32 -1.442695, %v498_v27 }
  0xf3   : > { %v979_v57 = vpop.eup %978  ;;  %703 = vst [vmem:[%s1179_s26 + $0x10] sm:$0xff] %v977_v53  ;;  %1004 = vrcp.f32 %v610_v49 }
  0xf4   : > { %v981_v60 = vpop.eup %980  ;;  %719 = vst [vmem:[%s1179_s26 + $0x90] sm:$0xff] %v979_v57  ;;  %1006 = vrcp.f32 %v626_v54 }
  0xf5   : > { %v983_v0 = vpop.eup %982  ;;  %701 = vst [vmem:[%s1179_s26] sm:$0xff] %v981_v60  ;;  %1008 = vpow2.f32 %v841_v50 }
  0xf6   : > { %v985_v4 = vpop.eup %984  ;;  %717 = vst [vmem:[%s1179_s26 + $0x80] sm:$0xff] %v983_v0  ;;  %1010 = vpow2.f32 %v857_v55 }
  0xf7   : > { %v987_v7 = vpop.eup %986  ;;  %704 = vst [vmem:[%s1179_s26 + $0x18] sm:$0xff] %v985_v4  ;;  %1012 = vpow2.f32 %v839_v58 }
  0xf8   : > { %v989_v10 = vpop.eup %988  ;;  %720 = vst [vmem:[%s1179_s26 + $0x98] sm:$0xff] %v987_v7  ;;  %1014 = vpow2.f32 %v855_v61 }
  0xf9   : > { %v991_v14 = vpop.eup %990  ;;  %702 = vst [vmem:[%s1179_s26 + $0x8] sm:$0xff] %v989_v10  ;;  %1016 = vpow2.f32 %v842_v1 }
  0xfa   : > { %v993_v19 = vpop.eup %992  ;;  %718 = vst [vmem:[%s1179_s26 + $0x88] sm:$0xff] %v991_v14  ;;  %1018 = vpow2.f32 %v858_v5 }
  0xfb   : > { %v995_v22 = vpop.eup %994  ;;  %707 = vst [vmem:[%s1179_s26 + $0x30] sm:$0xff] %v993_v19  ;;  %1020 = vpow2.f32 %v840_v8 }
  0xfc   : > { %v997_v25 = vpop.eup %996  ;;  %723 = vst [vmem:[%s1179_s26 + $0xb0] sm:$0xff] %v995_v22  ;;  %1022 = vpow2.f32 %v856_v11 }
  0xfd   : > { %v999_v28 = vpop.eup %998  ;;  %705 = vst [vmem:[%s1179_s26 + $0x20] sm:$0xff] %v997_v25  ;;  %1024 = vpow2.f32 %v845_v15 }
  0xfe   : > { %v1001_v30 = vpop.eup %1000  ;;  %721 = vst [vmem:[%s1179_s26 + $0xa0] sm:$0xff] %v999_v28  ;;  %1026 = vpow2.f32 %v861_v20 }
  0xff   : > { %v1003_v32 = vpop.eup %1002  ;;  %708 = vst [vmem:[%s1179_s26 + $0x38] sm:$0xff] %v1001_v30  ;;  %1028 = vpow2.f32 %v843_v23 }
 0x100   : > { %v1005_v34 = vpop.eup %1004  ;;  %724 = vst [vmem:[%s1179_s26 + $0xb8] sm:$0xff] %v1003_v32  ;;  %1030 = vpow2.f32 %v859_v26 }
 0x101   : > { %v1007_v36 = vpop.eup %1006  ;;  %706 = vst [vmem:[%s1179_s26 + $0x28] sm:$0xff] %v1005_v34  ;;  %1032 = vpow2.f32 %v846_v29 }
 0x102   : > { %v1009_v18 = vpop.eup %1008  ;;  %722 = vst [vmem:[%s1179_s26 + $0xa8] sm:$0xff] %v1007_v36  ;;  %1034 = vpow2.f32 %v862_v31 }
 0x103   : > { %v1011_v37 = vpop.eup %1010  ;;  %v615_v38 = vadd.f32 1.0, %v1009_v18  ;;  %1036 = vpow2.f32 %v844_v33 }
 0x104   : > { %v1013_v39 = vpop.eup %1012  ;;  %v631_v40 = vadd.f32 1.0, %v1011_v37  ;;  %1038 = vpow2.f32 %v860_v35 }
 0x105   : > { %v1015_v41 = vpop.eup %1014  ;;  %1040 = vrcp.f32 %v615_v38  ;;  %v613_v42 = vadd.f32 1.0, %v1013_v39 }
 0x106   : > { %v1017_v43 = vpop.eup %1016  ;;  %1042 = vrcp.f32 %v631_v40  ;;  %v629_v44 = vadd.f32 1.0, %v1015_v41 }
 0x107   : > { %v1019_v45 = vpop.eup %1018  ;;  %1044 = vrcp.f32 %v613_v42  ;;  %v616_v46 = vadd.f32 1.0, %v1017_v43 }
 0x108   : > { %v1021_v47 = vpop.eup %1020  ;;  %1046 = vrcp.f32 %v629_v44  ;;  %v632_v48 = vadd.f32 1.0, %v1019_v45 }
 0x109   : > { %v1023_v49 = vpop.eup %1022  ;;  %1048 = vrcp.f32 %v616_v46  ;;  %v614_v50 = vadd.f32 1.0, %v1021_v47 }
 0x10a   : > { %v1025_v51 = vpop.eup %1024  ;;  %1050 = vrcp.f32 %v632_v48  ;;  %v630_v52 = vadd.f32 1.0, %v1023_v49 }
 0x10b   : > { %v1027_v53 = vpop.eup %1026  ;;  %1052 = vrcp.f32 %v614_v50  ;;  %v619_v54 = vadd.f32 1.0, %v1025_v51 }
 0x10c   : > { %v1029_v55 = vpop.eup %1028  ;;  %1054 = vrcp.f32 %v630_v52  ;;  %v635_v56 = vadd.f32 1.0, %v1027_v53 }
 0x10d   : > { %v1031_v57 = vpop.eup %1030  ;;  %1056 = vrcp.f32 %v619_v54  ;;  %v617_v58 = vadd.f32 1.0, %v1029_v55 }
 0x10e   : > { %v1033_v59 = vpop.eup %1032  ;;  %1058 = vrcp.f32 %v635_v56  ;;  %v633_v60 = vadd.f32 1.0, %v1031_v57 }
 0x10f   : > { %v1035_v61 = vpop.eup %1034  ;;  %1060 = vrcp.f32 %v617_v58  ;;  %v620_v62 = vadd.f32 1.0, %v1033_v59 }
 0x110   : > { %v1037_v63 = vpop.eup %1036  ;;  %1062 = vrcp.f32 %v633_v60  ;;  %v636_v0 = vadd.f32 1.0, %v1035_v61 }
 0x111   : > { %v1039_v1 = vpop.eup %1038  ;;  %1064 = vrcp.f32 %v620_v62  ;;  %v618_v2 = vadd.f32 1.0, %v1037_v63 }
 0x112   : > { %v1041_v3 = vpop.eup %1040  ;;  %1066 = vrcp.f32 %v636_v0  ;;  %v634_v4 = vadd.f32 1.0, %v1039_v1 }
 0x113   : > { %v1043_v5 = vpop.eup %1042  ;;  %711 = vst [vmem:[%s1179_s26 + $0x50] sm:$0xff] %v1041_v3  ;;  %1068 = vrcp.f32 %v618_v2 }
 0x114   : > { %v1045_v6 = vpop.eup %1044  ;;  %727 = vst [vmem:[%s1179_s26 + $0xd0] sm:$0xff] %v1043_v5  ;;  %1070 = vrcp.f32 %v634_v4 }
 0x115   : > { %v1047_v7 = vpop.eup %1046  ;;  %709 = vst [vmem:[%s1179_s26 + $0x40] sm:$0xff] %v1045_v6 }
 0x116   : > { %v1049_v8 = vpop.eup %1048  ;;  %725 = vst [vmem:[%s1179_s26 + $0xc0] sm:$0xff] %v1047_v7 }
 0x117   : > { %v1051_v9 = vpop.eup %1050  ;;  %712 = vst [vmem:[%s1179_s26 + $0x58] sm:$0xff] %v1049_v8 }
 0x118   : > { %v1053_v10 = vpop.eup %1052  ;;  %728 = vst [vmem:[%s1179_s26 + $0xd8] sm:$0xff] %v1051_v9 }
 0x119   : > { %v1055_v11 = vpop.eup %1054  ;;  %710 = vst [vmem:[%s1179_s26 + $0x48] sm:$0xff] %v1053_v10 }
 0x11a   : > { %v1057_v12 = vpop.eup %1056  ;;  %726 = vst [vmem:[%s1179_s26 + $0xc8] sm:$0xff] %v1055_v11 }
 0x11b   : > { %v1059_v13 = vpop.eup %1058  ;;  %715 = vst [vmem:[%s1179_s26 + $0x70] sm:$0xff] %v1057_v12 }
 0x11c   : > { %v1061_v14 = vpop.eup %1060  ;;  %731 = vst [vmem:[%s1179_s26 + $0xf0] sm:$0xff] %v1059_v13 }
 0x11d   : > { %v1063_v15 = vpop.eup %1062  ;;  %713 = vst [vmem:[%s1179_s26 + $0x60] sm:$0xff] %v1061_v14 }
 0x11e   : > { %v1065_v16 = vpop.eup %1064  ;;  %729 = vst [vmem:[%s1179_s26 + $0xe0] sm:$0xff] %v1063_v15 }
 0x11f   : > { %v1067_v17 = vpop.eup %1066  ;;  %716 = vst [vmem:[%s1179_s26 + $0x78] sm:$0xff] %v1065_v16 }
 0x120   : > { %v1069_v19 = vpop.eup %1068  ;;  %732 = vst [vmem:[%s1179_s26 + $0xf8] sm:$0xff] %v1067_v17 }
 0x121   : > { %v1071_v20 = vpop.eup %1070  ;;  %714 = vst [vmem:[%s1179_s26 + $0x68] sm:$0xff] %v1069_v19 }
 0x122   : > { %730 = vst [vmem:[%s1179_s26 + $0xe8] sm:$0xff] %v1071_v20 }
 0x123 PF: > { %s13_s12 = sadd.s32 1, %s1078_s12  }
 0x124   : > { %p10_p4 = scmp.ge.s32.totalorder %s13_s12, 4  }
 0x126   :  { %12 = sbr.rel (!%p10_p4) target bundleno = 1 (0x1), region = 62 }

</bundles_post_ra>
